<compile_context>
chip_gen: v6e
topology: v6e:2x2x1
jax: 0.10.0
libtpu: 0.0.40
codegen_flags: <defaults>
</compile_context>

<pallas_src>
import jax
import jax.numpy as jnp
from jax.experimental import pallas as pl
from jax.experimental.pallas import tpu as pltpu


# (c_in, c_out, stride, normalize, activate) -- fixed by the PyTorch module.
_CFG = (
    (1, 64, 2, False, True),
    (64, 128, 2, True, True),
    (128, 256, 2, True, True),
    (256, 512, 1, True, True),
    (512, 1, 1, False, False),
)
_K = 4          # Conv1d kernel_size
_EPS = 1e-5     # InstanceNorm1d eps
_MAX_TB = 16    # batch elements per grid step (VMEM-safe on v5e/v6e/v7x)


def _conv_block(h, w_flat, b, *, stride, normalize, activate):
    """Conv1d(k=4, p=1, stride) [+InstanceNorm1d] [+LeakyReLU(0.2)].

    h:      (TB, L_in, C_in) f32 activations (length on sublanes, channels on lanes).
    w_flat: (4*C_in, C_out) bf16, tap-major rows: w_flat[t*C_in + ci, co].
    b:      (1, C_out) f32.
    Returns (TB, L_out, C_out) f32.  Batch is folded into the matmul M dim;
    InstanceNorm statistics are per batch element (reduce over axis=1).
    """
    tb, l_in, c_in = h.shape
    c_out = w_flat.shape[1]
    zero = jnp.zeros((tb, 1, c_in), jnp.float32)
    hp = jnp.concatenate([zero, h, zero], axis=1)          # pad=1: (TB, L_in+2, C_in)

    if stride == 2:
        # Strided im2col via even/odd row de-interleave: taps 0,2 read even
        # rows, taps 1,3 read odd rows.  No stride-1 over-compute, no
        # selection matmul, everything stays f32 until the MXU operand cast.
        l_out = l_in // 2
        hp2 = hp.reshape(tb, (l_in + 2) // 2, 2, c_in)
        even = hp2[:, :, 0, :]                             # rows 0,2,4,...
        odd = hp2[:, :, 1, :]                              # rows 1,3,5,...
        a = jnp.concatenate(
            [even[:, 0:l_out, :], odd[:, 0:l_out, :],
             even[:, 1:l_out + 1, :], odd[:, 1:l_out + 1, :]], axis=-1)
    else:
        l_out = l_in - 1
        a = jnp.concatenate([hp[:, t:t + l_out, :] for t in range(_K)], axis=-1)

    a2 = a.reshape(tb * l_out, _K * c_in).astype(jnp.bfloat16)
    y = jnp.dot(a2, w_flat, preferred_element_type=jnp.float32)
    y = y.reshape(tb, l_out, c_out) + b                    # (TB, L_out, C_out) f32

    if normalize:   # InstanceNorm1d(affine=False, eps=1e-5): biased stats over L.
        mean = jnp.mean(y, axis=1, keepdims=True)
        var = jnp.mean((y - mean) ** 2, axis=1, keepdims=True)
        y = (y - mean) * jax.lax.rsqrt(var + _EPS)

    if activate:    # LeakyReLU(0.2)
        y = jnp.where(y > 0, y, 0.2 * y)
    return y


def _disc_kernel(xc_ref, w0_ref, b0_ref, w1_ref, b1_ref, w2_ref, b2_ref,
                 w3_ref, b3_ref, w4_ref, b4_ref, o_ref):
    # ---- Layer 0: Conv1d(1->64, k4, s2, p1) + LeakyReLU.  C_in == 1, so run
    # it on the VPU as 4 broadcast MACs (length already on sublanes, so the
    # per-tap value only needs a cheap lane broadcast against the 64 filters).
    xc = xc_ref[...]                                       # (TB, L0, 4) f32
    w0 = w0_ref[...]                                       # (4, 64) f32
    h = (xc[:, :, 0:1] * w0[0][None, None, :]
         + xc[:, :, 1:2] * w0[1][None, None, :]
         + xc[:, :, 2:3] * w0[2][None, None, :]
         + xc[:, :, 3:4] * w0[3][None, None, :])
    h = h + b0_ref[...]                                    # (TB, L0, 64)
    h = jnp.where(h > 0, h, 0.2 * h)

    # ---- Layers 1..3: one batched im2col matmul each (batch folded into M).
    h = _conv_block(h, w1_ref[...], b1_ref[...], stride=2, normalize=True, activate=True)
    h = _conv_block(h, w2_ref[...], b2_ref[...], stride=2, normalize=True, activate=True)
    h = _conv_block(h, w3_ref[...], b3_ref[...], stride=1, normalize=True, activate=True)

    # ---- Layer 4: Conv1d(512->1, k4, s1, p1).  C_out == 1 -> VPU multiply +
    # cross-lane sum instead of an N=1 MXU matmul; weight is lane-dense (4,512).
    tb, l3, c3 = h.shape
    zero = jnp.zeros((tb, 1, c3), jnp.float32)
    hp = jnp.concatenate([zero, h, zero], axis=1)          # (TB, l3+2, 512)
    w4 = w4_ref[...]                                       # (4, 512) f32
    lf = l3 - 1
    s0 = jnp.sum(hp * w4[0][None, None, :], axis=-1)       # (TB, l3+2)
    s1 = jnp.sum(hp * w4[1][None, None, :], axis=-1)
    s2 = jnp.sum(hp * w4[2][None, None, :], axis=-1)
    s3 = jnp.sum(hp * w4[3][None, None, :], axis=-1)
    out = (s0[:, 0:lf] + s1[:, 1:lf + 1] + s2[:, 2:lf + 2] + s3[:, 3:lf + 3]
           + b4_ref[...])                                  # (TB, lf) + (1, 1)
    o_ref[...] = out                                       # lane/sublane-dense store


def _prep_matmul_weight(w_oik):
    """(C_out, C_in, K) PyTorch conv weight -> (K*C_in, C_out) bf16, tap-major."""
    c_out, c_in, k = w_oik.shape
    return jnp.transpose(w_oik, (2, 1, 0)).reshape(k * c_in, c_out).astype(jnp.bfloat16)


def _out_len(l_in, stride):
    return (l_in + 2 - _K) // stride + 1


@jax.jit
def discriminator_forward(params, x_ncl):
    """params: list of {'w': (C_out,C_in,4), 'b': (C_out,)}.  x_ncl: (N, 1, L)."""
    n, c_in, l = x_ncl.shape
    assert c_in == 1, "kernel specializes the first layer for input_channels == 1"
    # Per-layer lengths: 64 -> 32 -> 16 -> 8 -> 7 -> 6.
    l0 = _out_len(l, 2)
    l1 = _out_len(l0, 2)
    l2 = _out_len(l1, 2)
    l3 = _out_len(l2, 1)
    lf = _out_len(l3, 1)
    assert l % 2 == 0 and l0 % 2 == 0 and l1 % 2 == 0 and lf >= 1, (l, l0, l1, lf)

    # Batch blocking: TB elements per grid step; pad batch if needed.  For
    # n > _MAX_TB this keeps >=2 grid steps (v7x megacore sharding).
    tb = n if n <= _MAX_TB else _MAX_TB
    n_pad = pl.cdiv(n, tb) * tb

    # Layer-0 prep: pad once, build the stride-2 im2col (N, L0, 4) of the
    # scalar input (length lands on sublanes, matching the layer-0 output).
    x_pad = jnp.pad(x_ncl[:, 0, :].astype(jnp.float32), ((0, 0), (1, 1)))
    x_cols = jnp.stack([x_pad[:, t:t + 2 * l0:2] for t in range(_K)], axis=-1)
    if n_pad != n:
        x_cols = jnp.pad(x_cols, ((0, n_pad - n), (0, 0), (0, 0)))

    w0 = jnp.transpose(params[0]["w"], (2, 1, 0)).reshape(_K, -1).astype(jnp.float32)
    b0 = params[0]["b"].reshape(1, -1).astype(jnp.float32)
    w1, w2, w3 = (_prep_matmul_weight(p["w"]) for p in params[1:4])
    b1, b2, b3 = (p["b"].reshape(1, -1).astype(jnp.float32) for p in params[1:4])
    w4 = jnp.transpose(params[4]["w"][0], (1, 0)).astype(jnp.float32)   # (4, 512)
    b4 = params[4]["b"].reshape(1, 1).astype(jnp.float32)

    const = lambda i: (0, 0)   # weights/biases: fetched once (constant index map)
    out = pl.pallas_call(
        _disc_kernel,
        out_shape=jax.ShapeDtypeStruct((n_pad, lf), jnp.float32),
        grid=(n_pad // tb,),
        in_specs=[
            pl.BlockSpec((tb, l0, _K), lambda i: (i, 0, 0)),
            pl.BlockSpec(w0.shape, const), pl.BlockSpec(b0.shape, const),
            pl.BlockSpec(w1.shape, const), pl.BlockSpec(b1.shape, const),
            pl.BlockSpec(w2.shape, const), pl.BlockSpec(b2.shape, const),
            pl.BlockSpec(w3.shape, const), pl.BlockSpec(b3.shape, const),
            pl.BlockSpec(w4.shape, const), pl.BlockSpec(b4.shape, const),
        ],
        out_specs=pl.BlockSpec((tb, lf), lambda i: (i, 0)),
        compiler_params=pltpu.CompilerParams(dimension_semantics=("parallel",)),
    )(x_cols, w0, b0, w1, b1, w2, b2, w3, b3, w4, b4)
    return out[:n][:, None, :]                             # (N, 1, L_final) NCL


def init_discriminator_params(key, input_channels=1):
    assert input_channels == 1
    params = []
    for (c_in, c_out, _stride, _norm, _act) in _CFG:
        key, wk, bk = jax.random.split(key, 3)
        fan_in = c_in * _K
        w = jax.random.normal(wk, (c_out, c_in, _K), jnp.float32) / jnp.sqrt(fan_in)
        b = 0.01 * jax.random.normal(bk, (c_out,), jnp.float32)
        params.append(dict(w=w, b=b))
    return params


def _reference_forward(params, x_ncl):
    """Pure-JAX f32 reference matching the PyTorch module semantics."""
    h = x_ncl.astype(jnp.float32)
    for p, (_ci, _co, stride, normalize, activate) in zip(params, _CFG):
        h = jax.lax.conv_general_dilated(
            h, p["w"], window_strides=(stride,), padding=[(1, 1)],
            dimension_numbers=("NCH", "OIH", "NCH"),
            precision=jax.lax.Precision.HIGHEST)
        h = h + p["b"][None, :, None]
        if normalize:
            mean = jnp.mean(h, axis=-1, keepdims=True)
            var = jnp.mean((h - mean) ** 2, axis=-1, keepdims=True)
            h = (h - mean) * jax.lax.rsqrt(var + _EPS)
        if activate:
            h = jnp.where(h > 0, h, 0.2 * h)
    return h


if __name__ == "__main__":
    key = jax.random.PRNGKey(0)
    pkey, xkey = jax.random.split(key)
    params = init_discriminator_params(pkey, input_channels=1)

    # NCL input consistent with the module: batch=2, channels=1, length=64.
    x = jax.random.normal(xkey, (2, 1, 64), jnp.float32)

    out = jax.block_until_ready(discriminator_forward(params, x))
    ref = jax.block_until_ready(_reference_forward(params, x))

    assert out.shape == (2, 1, 6), out.shape               # 64 ->32 ->16 ->8 ->7 ->6
    assert bool(jnp.all(jnp.isfinite(out)))
    max_err = float(jnp.max(jnp.abs(out - ref)))
    # Kernel uses bf16 MXU operands with f32 accumulation; reference is full f32.
    assert bool(jnp.allclose(out, ref, atol=5e-2, rtol=5e-2)), max_err
    print("KERNEL_OK")
</pallas_src>

<mosaic_0001>
module attributes {stable_mosaic.version = 11 : i64} {
  func.func @_disc_kernel(%arg0: i32, %arg1: memref<2x32x4xf32, #tpu.memory_space<vmem>>, %arg2: memref<4x64xf32, #tpu.memory_space<vmem>>, %arg3: memref<1x64xf32, #tpu.memory_space<vmem>>, %arg4: memref<256x128xbf16, #tpu.memory_space<vmem>>, %arg5: memref<1x128xf32, #tpu.memory_space<vmem>>, %arg6: memref<512x256xbf16, #tpu.memory_space<vmem>>, %arg7: memref<1x256xf32, #tpu.memory_space<vmem>>, %arg8: memref<1024x512xbf16, #tpu.memory_space<vmem>>, %arg9: memref<1x512xf32, #tpu.memory_space<vmem>>, %arg10: memref<4x512xf32, #tpu.memory_space<vmem>>, %arg11: memref<1x1xf32, #tpu.memory_space<vmem>>, %arg12: memref<2x6xf32, #tpu.memory_space<vmem>>) attributes {dimension_semantics = [#tpu.dimension_semantics<parallel>], iteration_bounds = array<i64: 1>, scalar_prefetch = 0 : i64, scratch_operands = 0 : i64, tpu.core_type = #tpu.core_type<tc>, window_params = [{transform_indices = @transform_0, window_bounds = array<i64: 2, 32, 4>}, {pipeline_mode = #tpu.pipeline_mode<synchronous>, transform_indices = @transform_1, window_bounds = array<i64: 4, 64>}, {pipeline_mode = #tpu.pipeline_mode<synchronous>, transform_indices = @transform_2, window_bounds = array<i64: 1, 64>}, {pipeline_mode = #tpu.pipeline_mode<synchronous>, transform_indices = @transform_3, window_bounds = array<i64: 256, 128>}, {pipeline_mode = #tpu.pipeline_mode<synchronous>, transform_indices = @transform_4, window_bounds = array<i64: 1, 128>}, {pipeline_mode = #tpu.pipeline_mode<synchronous>, transform_indices = @transform_5, window_bounds = array<i64: 512, 256>}, {pipeline_mode = #tpu.pipeline_mode<synchronous>, transform_indices = @transform_6, window_bounds = array<i64: 1, 256>}, {pipeline_mode = #tpu.pipeline_mode<synchronous>, transform_indices = @transform_7, window_bounds = array<i64: 1024, 512>}, {pipeline_mode = #tpu.pipeline_mode<synchronous>, transform_indices = @transform_8, window_bounds = array<i64: 1, 512>}, {pipeline_mode = #tpu.pipeline_mode<synchronous>, transform_indices = @transform_9, window_bounds = array<i64: 4, 512>}, {pipeline_mode = #tpu.pipeline_mode<synchronous>, transform_indices = @transform_10, window_bounds = array<i64: 1, 1>}, {transform_indices = @transform_11, window_bounds = array<i64: 2, 6>}]} {
    %c0 = arith.constant 0 : index
    %c0_0 = arith.constant 0 : index
    %c0_1 = arith.constant 0 : index
    %0 = vector.load %arg1[%c0, %c0_0, %c0_1] : memref<2x32x4xf32, #tpu.memory_space<vmem>>, vector<2x32x4xf32>
    %c0_2 = arith.constant 0 : index
    %c0_3 = arith.constant 0 : index
    %1 = vector.load %arg2[%c0_2, %c0_3] : memref<4x64xf32, #tpu.memory_space<vmem>>, vector<4x64xf32>
    %2 = vector.extract_strided_slice %0 {offsets = [0, 0, 0], sizes = [2, 32, 1], strides = [1, 1, 1]} : vector<2x32x4xf32> to vector<2x32x1xf32>
    %3 = vector.extract_strided_slice %1 {offsets = [0, 0], sizes = [1, 64], strides = [1, 1]} : vector<4x64xf32> to vector<1x64xf32>
    %4 = vector.shape_cast %3 : vector<1x64xf32> to vector<64xf32>
    %5 = vector.shape_cast %4 : vector<64xf32> to vector<1x1x64xf32>
    %6 = vector.broadcast %2 : vector<2x32x1xf32> to vector<2x32x64xf32>
    %7 = vector.broadcast %5 : vector<1x1x64xf32> to vector<2x32x64xf32>
    %8 = arith.mulf %6, %7 : vector<2x32x64xf32>
    %9 = vector.extract_strided_slice %0 {offsets = [0, 0, 1], sizes = [2, 32, 1], strides = [1, 1, 1]} : vector<2x32x4xf32> to vector<2x32x1xf32>
    %10 = vector.extract_strided_slice %1 {offsets = [1, 0], sizes = [1, 64], strides = [1, 1]} : vector<4x64xf32> to vector<1x64xf32>
    %11 = vector.shape_cast %10 : vector<1x64xf32> to vector<64xf32>
    %12 = vector.shape_cast %11 : vector<64xf32> to vector<1x1x64xf32>
    %13 = vector.broadcast %9 : vector<2x32x1xf32> to vector<2x32x64xf32>
    %14 = vector.broadcast %12 : vector<1x1x64xf32> to vector<2x32x64xf32>
    %15 = arith.mulf %13, %14 : vector<2x32x64xf32>
    %16 = arith.addf %8, %15 : vector<2x32x64xf32>
    %17 = vector.extract_strided_slice %0 {offsets = [0, 0, 2], sizes = [2, 32, 1], strides = [1, 1, 1]} : vector<2x32x4xf32> to vector<2x32x1xf32>
    %18 = vector.extract_strided_slice %1 {offsets = [2, 0], sizes = [1, 64], strides = [1, 1]} : vector<4x64xf32> to vector<1x64xf32>
    %19 = vector.shape_cast %18 : vector<1x64xf32> to vector<64xf32>
    %20 = vector.shape_cast %19 : vector<64xf32> to vector<1x1x64xf32>
    %21 = vector.broadcast %17 : vector<2x32x1xf32> to vector<2x32x64xf32>
    %22 = vector.broadcast %20 : vector<1x1x64xf32> to vector<2x32x64xf32>
    %23 = arith.mulf %21, %22 : vector<2x32x64xf32>
    %24 = arith.addf %16, %23 : vector<2x32x64xf32>
    %25 = vector.extract_strided_slice %0 {offsets = [0, 0, 3], sizes = [2, 32, 1], strides = [1, 1, 1]} : vector<2x32x4xf32> to vector<2x32x1xf32>
    %26 = vector.extract_strided_slice %1 {offsets = [3, 0], sizes = [1, 64], strides = [1, 1]} : vector<4x64xf32> to vector<1x64xf32>
    %27 = vector.shape_cast %26 : vector<1x64xf32> to vector<64xf32>
    %28 = vector.shape_cast %27 : vector<64xf32> to vector<1x1x64xf32>
    %29 = vector.broadcast %25 : vector<2x32x1xf32> to vector<2x32x64xf32>
    %30 = vector.broadcast %28 : vector<1x1x64xf32> to vector<2x32x64xf32>
    %31 = arith.mulf %29, %30 : vector<2x32x64xf32>
    %32 = arith.addf %24, %31 : vector<2x32x64xf32>
    %c0_4 = arith.constant 0 : index
    %c0_5 = arith.constant 0 : index
    %33 = vector.load %arg3[%c0_4, %c0_5] : memref<1x64xf32, #tpu.memory_space<vmem>>, vector<1x64xf32>
    %34 = vector.shape_cast %33 : vector<1x64xf32> to vector<1x1x64xf32>
    %35 = vector.broadcast %34 : vector<1x1x64xf32> to vector<2x32x64xf32>
    %36 = arith.addf %32, %35 : vector<2x32x64xf32>
    %cst = arith.constant 0.000000e+00 : f32
    %37 = vector.broadcast %cst : f32 to vector<2x32x64xf32>
    %38 = arith.cmpf ogt, %36, %37 : vector<2x32x64xf32>
    %cst_6 = arith.constant 2.000000e-01 : f32
    %39 = vector.broadcast %cst_6 : f32 to vector<2x32x64xf32>
    %40 = arith.mulf %39, %36 : vector<2x32x64xf32>
    %41 = arith.select %38, %36, %40 : vector<2x32x64xi1>, vector<2x32x64xf32>
    %c0_7 = arith.constant 0 : index
    %c0_8 = arith.constant 0 : index
    %42 = vector.load %arg4[%c0_7, %c0_8] : memref<256x128xbf16, #tpu.memory_space<vmem>>, vector<256x128xbf16>
    %c0_9 = arith.constant 0 : index
    %c0_10 = arith.constant 0 : index
    %43 = vector.load %arg5[%c0_9, %c0_10] : memref<1x128xf32, #tpu.memory_space<vmem>>, vector<1x128xf32>
    %cst_11 = arith.constant 0.000000e+00 : f32
    %44 = vector.broadcast %cst_11 : f32 to vector<2x1x64xf32>
    %45 = tpu.concatenate %44, %41, %44 in 1 : vector<2x1x64xf32>, vector<2x32x64xf32>, vector<2x1x64xf32> -> vector<2x34x64xf32>
    %46 = vector.shape_cast %45 : vector<2x34x64xf32> to vector<2x17x2x64xf32>
    %47 = vector.extract_strided_slice %46 {offsets = [0, 0, 0, 0], sizes = [2, 17, 1, 64], strides = [1, 1, 1, 1]} : vector<2x17x2x64xf32> to vector<2x17x1x64xf32>
    %48 = vector.shape_cast %47 : vector<2x17x1x64xf32> to vector<2x17x64xf32>
    %49 = vector.extract_strided_slice %46 {offsets = [0, 0, 1, 0], sizes = [2, 17, 1, 64], strides = [1, 1, 1, 1]} : vector<2x17x2x64xf32> to vector<2x17x1x64xf32>
    %50 = vector.shape_cast %49 : vector<2x17x1x64xf32> to vector<2x17x64xf32>
    %51 = vector.extract_strided_slice %48 {offsets = [0, 0, 0], sizes = [2, 16, 64], strides = [1, 1, 1]} : vector<2x17x64xf32> to vector<2x16x64xf32>
    %52 = vector.extract_strided_slice %50 {offsets = [0, 0, 0], sizes = [2, 16, 64], strides = [1, 1, 1]} : vector<2x17x64xf32> to vector<2x16x64xf32>
    %53 = vector.extract_strided_slice %48 {offsets = [0, 1, 0], sizes = [2, 16, 64], strides = [1, 1, 1]} : vector<2x17x64xf32> to vector<2x16x64xf32>
    %54 = vector.extract_strided_slice %50 {offsets = [0, 1, 0], sizes = [2, 16, 64], strides = [1, 1, 1]} : vector<2x17x64xf32> to vector<2x16x64xf32>
    %55 = tpu.concatenate %51, %52, %53, %54 in 2 : vector<2x16x64xf32>, vector<2x16x64xf32>, vector<2x16x64xf32>, vector<2x16x64xf32> -> vector<2x16x256xf32>
    %56 = vector.shape_cast %55 : vector<2x16x256xf32> to vector<32x256xf32>
    %57 = arith.truncf %56 : vector<32x256xf32> to vector<32x256xbf16>
    %cst_12 = arith.constant dense<0.000000e+00> : vector<32x128xf32>
    %58 = tpu.matmul %57, %42, %cst_12 {dimension_numbers = #tpu.dot_dimension_numbers<[1], [0], [0], [1], [0, 0, 1, 1], [], []>} : vector<32x256xbf16>, vector<256x128xbf16>, vector<32x128xf32> -> vector<32x128xf32>
    %59 = vector.shape_cast %58 : vector<32x128xf32> to vector<2x16x128xf32>
    %60 = vector.shape_cast %43 : vector<1x128xf32> to vector<1x1x128xf32>
    %61 = vector.broadcast %60 : vector<1x1x128xf32> to vector<2x16x128xf32>
    %62 = arith.addf %59, %61 : vector<2x16x128xf32>
    %cst_13 = arith.constant dense<0.000000e+00> : vector<2x128xf32>
    %63 = vector.multi_reduction <add>, %62, %cst_13 [1] : vector<2x16x128xf32> to vector<2x128xf32>
    %64 = vector.shape_cast %63 : vector<2x128xf32> to vector<2x1x128xf32>
    %cst_14 = arith.constant 1.600000e+01 : f32
    %65 = vector.broadcast %cst_14 : f32 to vector<2x1x128xf32>
    %66 = arith.divf %64, %65 : vector<2x1x128xf32>
    %67 = vector.broadcast %66 : vector<2x1x128xf32> to vector<2x16x128xf32>
    %68 = arith.subf %62, %67 : vector<2x16x128xf32>
    %69 = arith.mulf %68, %68 : vector<2x16x128xf32>
    %cst_15 = arith.constant dense<0.000000e+00> : vector<2x128xf32>
    %70 = vector.multi_reduction <add>, %69, %cst_15 [1] : vector<2x16x128xf32> to vector<2x128xf32>
    %71 = vector.shape_cast %70 : vector<2x128xf32> to vector<2x1x128xf32>
    %cst_16 = arith.constant 1.600000e+01 : f32
    %72 = vector.broadcast %cst_16 : f32 to vector<2x1x128xf32>
    %73 = arith.divf %71, %72 : vector<2x1x128xf32>
    %74 = vector.broadcast %66 : vector<2x1x128xf32> to vector<2x16x128xf32>
    %75 = arith.subf %62, %74 : vector<2x16x128xf32>
    %cst_17 = arith.constant 9.99999974E-6 : f32
    %76 = vector.broadcast %cst_17 : f32 to vector<2x1x128xf32>
    %77 = arith.addf %73, %76 : vector<2x1x128xf32>
    %78 = math.rsqrt %77 : vector<2x1x128xf32>
    %79 = vector.broadcast %78 : vector<2x1x128xf32> to vector<2x16x128xf32>
    %80 = arith.mulf %75, %79 : vector<2x16x128xf32>
    %cst_18 = arith.constant 0.000000e+00 : f32
    %81 = vector.broadcast %cst_18 : f32 to vector<2x16x128xf32>
    %82 = arith.cmpf ogt, %80, %81 : vector<2x16x128xf32>
    %cst_19 = arith.constant 2.000000e-01 : f32
    %83 = vector.broadcast %cst_19 : f32 to vector<2x16x128xf32>
    %84 = arith.mulf %83, %80 : vector<2x16x128xf32>
    %85 = arith.select %82, %80, %84 : vector<2x16x128xi1>, vector<2x16x128xf32>
    %c0_20 = arith.constant 0 : index
    %c0_21 = arith.constant 0 : index
    %86 = vector.load %arg6[%c0_20, %c0_21] : memref<512x256xbf16, #tpu.memory_space<vmem>>, vector<512x256xbf16>
    %c0_22 = arith.constant 0 : index
    %c0_23 = arith.constant 0 : index
    %87 = vector.load %arg7[%c0_22, %c0_23] : memref<1x256xf32, #tpu.memory_space<vmem>>, vector<1x256xf32>
    %cst_24 = arith.constant 0.000000e+00 : f32
    %88 = vector.broadcast %cst_24 : f32 to vector<2x1x128xf32>
    %89 = tpu.concatenate %88, %85, %88 in 1 : vector<2x1x128xf32>, vector<2x16x128xf32>, vector<2x1x128xf32> -> vector<2x18x128xf32>
    %90 = vector.shape_cast %89 : vector<2x18x128xf32> to vector<2x9x2x128xf32>
    %91 = vector.extract_strided_slice %90 {offsets = [0, 0, 0, 0], sizes = [2, 9, 1, 128], strides = [1, 1, 1, 1]} : vector<2x9x2x128xf32> to vector<2x9x1x128xf32>
    %92 = vector.shape_cast %91 : vector<2x9x1x128xf32> to vector<2x9x128xf32>
    %93 = vector.extract_strided_slice %90 {offsets = [0, 0, 1, 0], sizes = [2, 9, 1, 128], strides = [1, 1, 1, 1]} : vector<2x9x2x128xf32> to vector<2x9x1x128xf32>
    %94 = vector.shape_cast %93 : vector<2x9x1x128xf32> to vector<2x9x128xf32>
    %95 = vector.extract_strided_slice %92 {offsets = [0, 0, 0], sizes = [2, 8, 128], strides = [1, 1, 1]} : vector<2x9x128xf32> to vector<2x8x128xf32>
    %96 = vector.extract_strided_slice %94 {offsets = [0, 0, 0], sizes = [2, 8, 128], strides = [1, 1, 1]} : vector<2x9x128xf32> to vector<2x8x128xf32>
    %97 = vector.extract_strided_slice %92 {offsets = [0, 1, 0], sizes = [2, 8, 128], strides = [1, 1, 1]} : vector<2x9x128xf32> to vector<2x8x128xf32>
    %98 = vector.extract_strided_slice %94 {offsets = [0, 1, 0], sizes = [2, 8, 128], strides = [1, 1, 1]} : vector<2x9x128xf32> to vector<2x8x128xf32>
    %99 = tpu.concatenate %95, %96, %97, %98 in 2 : vector<2x8x128xf32>, vector<2x8x128xf32>, vector<2x8x128xf32>, vector<2x8x128xf32> -> vector<2x8x512xf32>
    %100 = vector.shape_cast %99 : vector<2x8x512xf32> to vector<16x512xf32>
    %101 = arith.truncf %100 : vector<16x512xf32> to vector<16x512xbf16>
    %cst_25 = arith.constant dense<0.000000e+00> : vector<16x256xf32>
    %102 = tpu.matmul %101, %86, %cst_25 {dimension_numbers = #tpu.dot_dimension_numbers<[1], [0], [0], [1], [0, 0, 1, 1], [], []>} : vector<16x512xbf16>, vector<512x256xbf16>, vector<16x256xf32> -> vector<16x256xf32>
    %103 = vector.shape_cast %102 : vector<16x256xf32> to vector<2x8x256xf32>
    %104 = vector.shape_cast %87 : vector<1x256xf32> to vector<1x1x256xf32>
    %105 = vector.broadcast %104 : vector<1x1x256xf32> to vector<2x8x256xf32>
    %106 = arith.addf %103, %105 : vector<2x8x256xf32>
    %cst_26 = arith.constant dense<0.000000e+00> : vector<2x256xf32>
    %107 = vector.multi_reduction <add>, %106, %cst_26 [1] : vector<2x8x256xf32> to vector<2x256xf32>
    %108 = vector.shape_cast %107 : vector<2x256xf32> to vector<2x1x256xf32>
    %cst_27 = arith.constant 8.000000e+00 : f32
    %109 = vector.broadcast %cst_27 : f32 to vector<2x1x256xf32>
    %110 = arith.divf %108, %109 : vector<2x1x256xf32>
    %111 = vector.broadcast %110 : vector<2x1x256xf32> to vector<2x8x256xf32>
    %112 = arith.subf %106, %111 : vector<2x8x256xf32>
    %113 = arith.mulf %112, %112 : vector<2x8x256xf32>
    %cst_28 = arith.constant dense<0.000000e+00> : vector<2x256xf32>
    %114 = vector.multi_reduction <add>, %113, %cst_28 [1] : vector<2x8x256xf32> to vector<2x256xf32>
    %115 = vector.shape_cast %114 : vector<2x256xf32> to vector<2x1x256xf32>
    %cst_29 = arith.constant 8.000000e+00 : f32
    %116 = vector.broadcast %cst_29 : f32 to vector<2x1x256xf32>
    %117 = arith.divf %115, %116 : vector<2x1x256xf32>
    %118 = vector.broadcast %110 : vector<2x1x256xf32> to vector<2x8x256xf32>
    %119 = arith.subf %106, %118 : vector<2x8x256xf32>
    %cst_30 = arith.constant 9.99999974E-6 : f32
    %120 = vector.broadcast %cst_30 : f32 to vector<2x1x256xf32>
    %121 = arith.addf %117, %120 : vector<2x1x256xf32>
    %122 = math.rsqrt %121 : vector<2x1x256xf32>
    %123 = vector.broadcast %122 : vector<2x1x256xf32> to vector<2x8x256xf32>
    %124 = arith.mulf %119, %123 : vector<2x8x256xf32>
    %cst_31 = arith.constant 0.000000e+00 : f32
    %125 = vector.broadcast %cst_31 : f32 to vector<2x8x256xf32>
    %126 = arith.cmpf ogt, %124, %125 : vector<2x8x256xf32>
    %cst_32 = arith.constant 2.000000e-01 : f32
    %127 = vector.broadcast %cst_32 : f32 to vector<2x8x256xf32>
    %128 = arith.mulf %127, %124 : vector<2x8x256xf32>
    %129 = arith.select %126, %124, %128 : vector<2x8x256xi1>, vector<2x8x256xf32>
    %c0_33 = arith.constant 0 : index
    %c0_34 = arith.constant 0 : index
    %130 = vector.load %arg8[%c0_33, %c0_34] : memref<1024x512xbf16, #tpu.memory_space<vmem>>, vector<1024x512xbf16>
    %c0_35 = arith.constant 0 : index
    %c0_36 = arith.constant 0 : index
    %131 = vector.load %arg9[%c0_35, %c0_36] : memref<1x512xf32, #tpu.memory_space<vmem>>, vector<1x512xf32>
    %cst_37 = arith.constant 0.000000e+00 : f32
    %132 = vector.broadcast %cst_37 : f32 to vector<2x1x256xf32>
    %133 = tpu.concatenate %132, %129, %132 in 1 : vector<2x1x256xf32>, vector<2x8x256xf32>, vector<2x1x256xf32> -> vector<2x10x256xf32>
    %134 = vector.extract_strided_slice %133 {offsets = [0, 0, 0], sizes = [2, 7, 256], strides = [1, 1, 1]} : vector<2x10x256xf32> to vector<2x7x256xf32>
    %135 = vector.extract_strided_slice %133 {offsets = [0, 1, 0], sizes = [2, 7, 256], strides = [1, 1, 1]} : vector<2x10x256xf32> to vector<2x7x256xf32>
    %136 = vector.extract_strided_slice %133 {offsets = [0, 2, 0], sizes = [2, 7, 256], strides = [1, 1, 1]} : vector<2x10x256xf32> to vector<2x7x256xf32>
    %137 = vector.extract_strided_slice %133 {offsets = [0, 3, 0], sizes = [2, 7, 256], strides = [1, 1, 1]} : vector<2x10x256xf32> to vector<2x7x256xf32>
    %138 = tpu.concatenate %134, %135, %136, %137 in 2 : vector<2x7x256xf32>, vector<2x7x256xf32>, vector<2x7x256xf32>, vector<2x7x256xf32> -> vector<2x7x1024xf32>
    %139 = vector.shape_cast %138 : vector<2x7x1024xf32> to vector<14x1024xf32>
    %140 = arith.truncf %139 : vector<14x1024xf32> to vector<14x1024xbf16>
    %cst_38 = arith.constant dense<0.000000e+00> : vector<14x512xf32>
    %141 = tpu.matmul %140, %130, %cst_38 {dimension_numbers = #tpu.dot_dimension_numbers<[1], [0], [0], [1], [0, 0, 1, 1], [], []>} : vector<14x1024xbf16>, vector<1024x512xbf16>, vector<14x512xf32> -> vector<14x512xf32>
    %142 = vector.shape_cast %141 : vector<14x512xf32> to vector<2x7x512xf32>
    %143 = vector.shape_cast %131 : vector<1x512xf32> to vector<1x1x512xf32>
    %144 = vector.broadcast %143 : vector<1x1x512xf32> to vector<2x7x512xf32>
    %145 = arith.addf %142, %144 : vector<2x7x512xf32>
    %cst_39 = arith.constant dense<0.000000e+00> : vector<2x512xf32>
    %146 = vector.multi_reduction <add>, %145, %cst_39 [1] : vector<2x7x512xf32> to vector<2x512xf32>
    %147 = vector.shape_cast %146 : vector<2x512xf32> to vector<2x1x512xf32>
    %cst_40 = arith.constant 7.000000e+00 : f32
    %148 = vector.broadcast %cst_40 : f32 to vector<2x1x512xf32>
    %149 = arith.divf %147, %148 : vector<2x1x512xf32>
    %150 = vector.broadcast %149 : vector<2x1x512xf32> to vector<2x7x512xf32>
    %151 = arith.subf %145, %150 : vector<2x7x512xf32>
    %152 = arith.mulf %151, %151 : vector<2x7x512xf32>
    %cst_41 = arith.constant dense<0.000000e+00> : vector<2x512xf32>
    %153 = vector.multi_reduction <add>, %152, %cst_41 [1] : vector<2x7x512xf32> to vector<2x512xf32>
    %154 = vector.shape_cast %153 : vector<2x512xf32> to vector<2x1x512xf32>
    %cst_42 = arith.constant 7.000000e+00 : f32
    %155 = vector.broadcast %cst_42 : f32 to vector<2x1x512xf32>
    %156 = arith.divf %154, %155 : vector<2x1x512xf32>
    %157 = vector.broadcast %149 : vector<2x1x512xf32> to vector<2x7x512xf32>
    %158 = arith.subf %145, %157 : vector<2x7x512xf32>
    %cst_43 = arith.constant 9.99999974E-6 : f32
    %159 = vector.broadcast %cst_43 : f32 to vector<2x1x512xf32>
    %160 = arith.addf %156, %159 : vector<2x1x512xf32>
    %161 = math.rsqrt %160 : vector<2x1x512xf32>
    %162 = vector.broadcast %161 : vector<2x1x512xf32> to vector<2x7x512xf32>
    %163 = arith.mulf %158, %162 : vector<2x7x512xf32>
    %cst_44 = arith.constant 0.000000e+00 : f32
    %164 = vector.broadcast %cst_44 : f32 to vector<2x7x512xf32>
    %165 = arith.cmpf ogt, %163, %164 : vector<2x7x512xf32>
    %cst_45 = arith.constant 2.000000e-01 : f32
    %166 = vector.broadcast %cst_45 : f32 to vector<2x7x512xf32>
    %167 = arith.mulf %166, %163 : vector<2x7x512xf32>
    %168 = arith.select %165, %163, %167 : vector<2x7x512xi1>, vector<2x7x512xf32>
    %cst_46 = arith.constant 0.000000e+00 : f32
    %169 = vector.broadcast %cst_46 : f32 to vector<2x1x512xf32>
    %170 = tpu.concatenate %169, %168, %169 in 1 : vector<2x1x512xf32>, vector<2x7x512xf32>, vector<2x1x512xf32> -> vector<2x9x512xf32>
    %c0_47 = arith.constant 0 : index
    %c0_48 = arith.constant 0 : index
    %171 = vector.load %arg10[%c0_47, %c0_48] : memref<4x512xf32, #tpu.memory_space<vmem>>, vector<4x512xf32>
    %172 = vector.extract_strided_slice %171 {offsets = [0, 0], sizes = [1, 512], strides = [1, 1]} : vector<4x512xf32> to vector<1x512xf32>
    %173 = vector.shape_cast %172 : vector<1x512xf32> to vector<512xf32>
    %174 = vector.shape_cast %173 : vector<512xf32> to vector<1x1x512xf32>
    %175 = vector.broadcast %174 : vector<1x1x512xf32> to vector<2x9x512xf32>
    %176 = arith.mulf %170, %175 : vector<2x9x512xf32>
    %cst_49 = arith.constant dense<0.000000e+00> : vector<2x9xf32>
    %177 = vector.multi_reduction <add>, %176, %cst_49 [2] : vector<2x9x512xf32> to vector<2x9xf32>
    %178 = vector.extract_strided_slice %171 {offsets = [1, 0], sizes = [1, 512], strides = [1, 1]} : vector<4x512xf32> to vector<1x512xf32>
    %179 = vector.shape_cast %178 : vector<1x512xf32> to vector<512xf32>
    %180 = vector.shape_cast %179 : vector<512xf32> to vector<1x1x512xf32>
    %181 = vector.broadcast %180 : vector<1x1x512xf32> to vector<2x9x512xf32>
    %182 = arith.mulf %170, %181 : vector<2x9x512xf32>
    %cst_50 = arith.constant dense<0.000000e+00> : vector<2x9xf32>
    %183 = vector.multi_reduction <add>, %182, %cst_50 [2] : vector<2x9x512xf32> to vector<2x9xf32>
    %184 = vector.extract_strided_slice %171 {offsets = [2, 0], sizes = [1, 512], strides = [1, 1]} : vector<4x512xf32> to vector<1x512xf32>
    %185 = vector.shape_cast %184 : vector<1x512xf32> to vector<512xf32>
    %186 = vector.shape_cast %185 : vector<512xf32> to vector<1x1x512xf32>
    %187 = vector.broadcast %186 : vector<1x1x512xf32> to vector<2x9x512xf32>
    %188 = arith.mulf %170, %187 : vector<2x9x512xf32>
    %cst_51 = arith.constant dense<0.000000e+00> : vector<2x9xf32>
    %189 = vector.multi_reduction <add>, %188, %cst_51 [2] : vector<2x9x512xf32> to vector<2x9xf32>
    %190 = vector.extract_strided_slice %171 {offsets = [3, 0], sizes = [1, 512], strides = [1, 1]} : vector<4x512xf32> to vector<1x512xf32>
    %191 = vector.shape_cast %190 : vector<1x512xf32> to vector<512xf32>
    %192 = vector.shape_cast %191 : vector<512xf32> to vector<1x1x512xf32>
    %193 = vector.broadcast %192 : vector<1x1x512xf32> to vector<2x9x512xf32>
    %194 = arith.mulf %170, %193 : vector<2x9x512xf32>
    %cst_52 = arith.constant dense<0.000000e+00> : vector<2x9xf32>
    %195 = vector.multi_reduction <add>, %194, %cst_52 [2] : vector<2x9x512xf32> to vector<2x9xf32>
    %196 = vector.extract_strided_slice %177 {offsets = [0, 0], sizes = [2, 6], strides = [1, 1]} : vector<2x9xf32> to vector<2x6xf32>
    %197 = vector.extract_strided_slice %183 {offsets = [0, 1], sizes = [2, 6], strides = [1, 1]} : vector<2x9xf32> to vector<2x6xf32>
    %198 = arith.addf %196, %197 : vector<2x6xf32>
    %199 = vector.extract_strided_slice %189 {offsets = [0, 2], sizes = [2, 6], strides = [1, 1]} : vector<2x9xf32> to vector<2x6xf32>
    %200 = arith.addf %198, %199 : vector<2x6xf32>
    %201 = vector.extract_strided_slice %195 {offsets = [0, 3], sizes = [2, 6], strides = [1, 1]} : vector<2x9xf32> to vector<2x6xf32>
    %202 = arith.addf %200, %201 : vector<2x6xf32>
    %c0_53 = arith.constant 0 : index
    %c0_54 = arith.constant 0 : index
    %203 = vector.load %arg11[%c0_53, %c0_54] : memref<1x1xf32, #tpu.memory_space<vmem>>, vector<1x1xf32>
    %204 = vector.broadcast %203 : vector<1x1xf32> to vector<2x6xf32>
    %205 = arith.addf %202, %204 : vector<2x6xf32>
    %c0_55 = arith.constant 0 : index
    %c0_56 = arith.constant 0 : index
    %206 = vector.load %arg12[%c0_55, %c0_56] : memref<2x6xf32, #tpu.memory_space<vmem>>, vector<2x6xf32>
    tpu.vector_store %arg12[%c0_55, %c0_56], %205 {strides = array<i32>} : memref<2x6xf32, #tpu.memory_space<vmem>>, vector<2x6xf32>,
    return
  }
  func.func @transform_0(%arg0: i32) -> (i32, i32, i32) {
    %c0_i32 = arith.constant 0 : i32
    %c0_i32_0 = arith.constant 0 : i32
    %c0_i32_1 = arith.constant 0 : i32
    return %arg0, %c0_i32, %c0_i32_0 : i32, i32, i32
  }
  func.func @transform_1(%arg0: i32) -> (i32, i32) {
    %c0_i32 = arith.constant 0 : i32
    %c0_i32_0 = arith.constant 0 : i32
    %c0_i32_1 = arith.constant 0 : i32
    return %c0_i32, %c0_i32_0 : i32, i32
  }
  func.func @transform_2(%arg0: i32) -> (i32, i32) {
    %c0_i32 = arith.constant 0 : i32
    %c0_i32_0 = arith.constant 0 : i32
    %c0_i32_1 = arith.constant 0 : i32
    return %c0_i32, %c0_i32_0 : i32, i32
  }
  func.func @transform_3(%arg0: i32) -> (i32, i32) {
    %c0_i32 = arith.constant 0 : i32
    %c0_i32_0 = arith.constant 0 : i32
    %c0_i32_1 = arith.constant 0 : i32
    return %c0_i32, %c0_i32_0 : i32, i32
  }
  func.func @transform_4(%arg0: i32) -> (i32, i32) {
    %c0_i32 = arith.constant 0 : i32
    %c0_i32_0 = arith.constant 0 : i32
    %c0_i32_1 = arith.constant 0 : i32
    return %c0_i32, %c0_i32_0 : i32, i32
  }
  func.func @transform_5(%arg0: i32) -> (i32, i32) {
    %c0_i32 = arith.constant 0 : i32
    %c0_i32_0 = arith.constant 0 : i32
    %c0_i32_1 = arith.constant 0 : i32
    return %c0_i32, %c0_i32_0 : i32, i32
  }
  func.func @transform_6(%arg0: i32) -> (i32, i32) {
    %c0_i32 = arith.constant 0 : i32
    %c0_i32_0 = arith.constant 0 : i32
    %c0_i32_1 = arith.constant 0 : i32
    return %c0_i32, %c0_i32_0 : i32, i32
  }
  func.func @transform_7(%arg0: i32) -> (i32, i32) {
    %c0_i32 = arith.constant 0 : i32
    %c0_i32_0 = arith.constant 0 : i32
    %c0_i32_1 = arith.constant 0 : i32
    return %c0_i32, %c0_i32_0 : i32, i32
  }
  func.func @transform_8(%arg0: i32) -> (i32, i32) {
    %c0_i32 = arith.constant 0 : i32
    %c0_i32_0 = arith.constant 0 : i32
    %c0_i32_1 = arith.constant 0 : i32
    return %c0_i32, %c0_i32_0 : i32, i32
  }
  func.func @transform_9(%arg0: i32) -> (i32, i32) {
    %c0_i32 = arith.constant 0 : i32
    %c0_i32_0 = arith.constant 0 : i32
    %c0_i32_1 = arith.constant 0 : i32
    return %c0_i32, %c0_i32_0 : i32, i32
  }
  func.func @transform_10(%arg0: i32) -> (i32, i32) {
    %c0_i32 = arith.constant 0 : i32
    %c0_i32_0 = arith.constant 0 : i32
    %c0_i32_1 = arith.constant 0 : i32
    return %c0_i32, %c0_i32_0 : i32, i32
  }
  func.func @transform_11(%arg0: i32) -> (i32, i32) {
    %c0_i32 = arith.constant 0 : i32
    %c0_i32_0 = arith.constant 0 : i32
    return %arg0, %c0_i32 : i32, i32
  }
}

</mosaic_0001>

<bundles_post_ra>
// kernel: discriminator_forward.1
= control target key start
LH: loop header
LB: loop body
LE: loop exit
PB: predicated region body
PF: predicated region fallthrough
CT: control target
= control target key end

     0   :  { %s9428_s0 = inlined_call_operand.vmem [shape: f32[2,32,4], index: 0, kind: input, shape index: {}]   ;;  %s9429_s1 = inlined_call_operand.vmem [shape: f32[4,64], index: 1, kind: input, shape index: {}]   ;;  %s9430_s2 = inlined_call_operand.vmem [shape: f32[1,64], index: 2, kind: input, shape index: {}]   ;;  %s9431_s3 = inlined_call_operand.vmem [shape: bf16[256,128], index: 3, kind: input, shape index: {}]   ;;  %s9432_s4 = inlined_call_operand.vmem [shape: f32[1,128], index: 4, kind: input, shape index: {}]   ;;  %s9433_s5 = inlined_call_operand.vmem [shape: bf16[512,256], index: 5, kind: input, shape index: {}]   ;;  %s9434_s6 = inlined_call_operand.vmem [shape: f32[1,256], index: 6, kind: input, shape index: {}]   ;;  %s9435_s7 = inlined_call_operand.vmem [shape: bf16[1024,512], index: 7, kind: input, shape index: {}]   ;;  %s9436_s8 = inlined_call_operand.vmem [shape: f32[1,512], index: 8, kind: input, shape index: {}]   ;;  %s9437_s9 = inlined_call_operand.vmem [shape: f32[4,512], index: 9, kind: input, shape index: {}]   ;;  %s9438_s10 = inlined_call_operand.<no memory space> [shape: f32[1,1], index: 10, kind: input, shape index: {}]   ;;  %s9439_s11 = inlined_call_operand.hbm [shape: f32[2,6], index: 11, kind: output, shape index: {}]  }
   0x1   :  { %v16_v0 = vstv %s9438_s10 }
   0x2   :  { %17 = vst [vmem:[#allocation2] sm:$0x1] %v16_v0 }
   0x3   :  { %v44_v1 = vld [vmem:[%s9428_s0 + $0x10] sm:$0xff]  ;;  %v7111_v2 = vmov 3   ;;  %v7112_v3 = vmov 0   ;;  %v43_v4 = vld [vmem:[%s9428_s0 + $0x8] sm:$0xff]  ;;  %v42_v5 = vld [vmem:[%s9428_s0] sm:$0xff]  ;;  %v7113_v6 = vmov 1  }
   0x4   :  { %6530 = vset.pattern.permute.xlu0 %v7111_v2  ;;  %6525 = vset.pattern.permute.xlu1 %v7112_v3  ;;  %v45_v7 = vld [vmem:[%s9428_s0 + $0x18] sm:$0xff]  ;;  %v47_v8 = vld [vmem:[%s9428_s0 + $0x28] sm:$0xff]  ;;  %v7114_v9 = vmov 2   ;;  %v46_v10 = vld [vmem:[%s9428_s0 + $0x20] sm:$0xff] }
   0x5   :  { %216 = vperm.xlu0 %6530, %v44_v1   ;;  %63 = vperm.xlu1 %6525, %v44_v1   ;;  %v49_v11 = vld [vmem:[%s9428_s0 + $0x38] sm:$0xff]  ;;  %v48_v12 = vld [vmem:[%s9428_s0 + $0x30] sm:$0xff]  ;;  %v6569_v17 = vld [vmem:[%s9431_s3 + $0x68] sm:$0xff]  }
   0x6   :  { %v6565_v13 = vld [vmem:[%s9431_s3 + $0x78] sm:$0xff]   ;;  %v6567_v15 = vld [vmem:[%s9431_s3 + $0x70] sm:$0xff]   ;;  %v6570_v18 = vld [vmem:[%s9431_s3 + $0x28] sm:$0xff]  }
   0x7   :  { %v6566_v14 = vld [vmem:[%s9431_s3 + $0x38] sm:$0xff]   ;;  %6489 = vmatprep.subr.bf16.mxu0 %v6565_v13  ;;  %v6568_v16 = vld [vmem:[%s9431_s3 + $0x30] sm:$0xff]   ;;  %v6571_v19 = vld [vmem:[%s9431_s3 + $0x60] sm:$0xff]  }
   0x8   :  { %6490 = vmatpush3.bf16.msra.mxu0 %v6566_v14 }
   0x9   :  { %6531 = vset.pattern.permute.xlu0 %v7113_v6  ;;  %6526 = vset.pattern.permute.xlu1 %v7113_v6 }
   0xa   :  { %108 = vperm.xlu0 %6531, %v43_v4   ;;  %104 = vperm.xlu1 %6526, %v42_v5  }
   0xb   :  { %6491 = vmatprep.subr.bf16.mxu0 %v6567_v15 }
   0xc   :  { %6492 = vmatpush3.bf16.msra.mxu0 %v6568_v16 }
   0xd   :  { %6493 = vmatprep.subr.bf16.mxu0 %v6569_v17 }
   0xe   :  { %116 = vperm.xlu0 %6531, %v45_v7   ;;  %112 = vperm.xlu1 %6526, %v44_v1  }
  0x12   :  { %124 = vperm.xlu0 %6531, %v47_v8   ;;  %6527 = vset.pattern.permute.xlu1 %v7114_v9 }
  0x13   :  { %156 = vperm.xlu1 %6527, %v42_v5  }
  0x16   :  { %6535 = vset.pattern.permute.xlu0 %v7114_v9 }
  0x17   :  { %160 = vperm.xlu0 %6535, %v43_v4   ;;  %164 = vperm.xlu1 %6527, %v44_v1  }
  0x1b   :  { %172 = vperm.xlu0 %6535, %v46_v10   ;;  %6528 = vset.pattern.permute.xlu1 %v7112_v3 }
  0x1c   :  { %68 = vperm.xlu1 %6528, %v45_v7  }
  0x1f   :  { %6537 = vset.pattern.permute.xlu0 %v7112_v3 }
  0x20   :  { %53 = vperm.xlu0 %6537, %v42_v5   ;;  %6529 = vset.pattern.permute.xlu1 %v7111_v2 }
  0x21   :  { %208 = vperm.xlu1 %6529, %v42_v5  }
  0x24   :  { %58 = vperm.xlu0 %6537, %v43_v4  }
  0x25   :  { %212 = vperm.xlu1 %6529, %v43_v4  }
  0x28   :  { %78 = vperm.xlu0 %6537, %v47_v8  }
  0x29   :  { %6532 = vset.pattern.permute.xlu1 %v7114_v9 }
  0x2a   :  { %168 = vperm.xlu1 %6532, %v45_v7  }
  0x2c   :  { %88 = vperm.xlu0 %6537, %v49_v11  }
  0x2e   :  { %6533 = vset.pattern.permute.xlu1 %v7112_v3 }
  0x2f   :  { %73 = vperm.xlu1 %6533, %v46_v10  }
  0x30   :  { %6541 = vset.pattern.permute.xlu0 %v7111_v2 }
  0x31   :  { %228 = vperm.xlu0 %6541, %v47_v8  }
  0x33   :  { %83 = vperm.xlu1 %6533, %v48_v12  }
  0x35   :  { %236 = vperm.xlu0 %6541, %v49_v11  }
  0x37   :  { %6534 = vset.pattern.permute.xlu1 %v7113_v6 }
  0x38   :  { %120 = vperm.xlu1 %6534, %v46_v10  }
  0x39   :  { %6564 = vset.pattern.permute.xlu0 %v7112_v3 }
  0x3c   :  { %128 = vperm.xlu1 %6534, %v48_v12  }
  0x40   :  { %6536 = vset.pattern.permute.xlu1 %v7111_v2 }
  0x41   :  { %220 = vperm.xlu1 %6536, %v45_v7  }
  0x45   :  { %6538 = vset.pattern.permute.xlu1 %v7114_v9 }
  0x46   :  { %176 = vperm.xlu1 %6538, %v47_v8  }
  0x4a   :  { %180 = vperm.xlu1 %6538, %v48_v12  }
  0x4e   :  { %6539 = vset.pattern.permute.xlu1 %v7113_v6 }
  0x4f   :  { %132 = vperm.xlu1 %6539, %v49_v11  }
  0x53   :  { %6540 = vset.pattern.permute.xlu1 %v7111_v2 }
  0x54   :  { %224 = vperm.xlu1 %6540, %v46_v10  }
  0x58   :  { %232 = vperm.xlu1 %6540, %v48_v12  }
  0x5c   :  { %6542 = vset.pattern.permute.xlu1 %v7114_v9 }
  0x5d   :  { %184 = vperm.xlu1 %6542, %v49_v11  }
  0x61   :  { %6563 = vset.pattern.permute.xlu1 %v7112_v3 }
  0x80   :  { %v64_v20 = vpop.permute.xlu1 %63  ;;  %v217_v21 = vpop.permute.xlu0 %216 }
  0x81   :  { %18 = vsyncpa [#allocation4], 0  ;;  %6494 = vmatpush3.bf16.msra.mxu0 %v6570_v18  ;;  %v6572_v22 = vld [vmem:[%s9431_s3 + $0x20] sm:$0xff]   ;;  %v6573_v23 = vld [vmem:[%s9431_s3 + $0x58] sm:$0xff]   ;;  %v91_v26 = vlaneseq  ;;  %v7115_v63 = vmov 1983009808  }
  0x82   :  { %6495 = vmatprep.subr.bf16.mxu0 %v6571_v19  ;;  %v6574_v27 = vld [vmem:[%s9431_s3 + $0x18] sm:$0xff]   ;;  %v6575_v28 = vld [vmem:[%s9431_s3 + $0x50] sm:$0xff]   ;;  %v6577_v33 = vld [vmem:[%s9431_s3 + $0x48] sm:$0xff]   ;;  %v368_v0 = vunpack.c.l.s4 %v7115_v63  ;;  %vm339_vm2 = vcmask 1040384   ;;  %vm644_vm4 = vcmask 1041409   ;;  %vm646_vm5 = vcmask 1042434  }
  0x83   :  { %v7242_v31 = vshrl.u32 %v91_v26, 7  ;;  %v6576_v32 = vld [vmem:[%s9431_s3 + $0x10] sm:$0xff]   ;;  %v50_v38 = vld [vmem:[%s9429_s1] sm:$0xf]  ;;  %vm648_vm6 = vcmask 1043459   ;;  %vm650_vm7 = vcmask 1044484  }
  0x84   :  { %v7292_v1 = vld [vmem:[%s9430_s2] ss:$0 sm:$0xff]  ;;  %v369_v11 = vunpack.c.0.s8 %v368_v0  ;;  %vm652_vm8 = vcmask 1045509   ;;  %vm654_vm9 = vcmask 1046534   ;;  %vm656_vm10 = vcmask 1047559  }
  0x85   :  { %v105_v24 = vpop.permute.xlu1 %104  ;;  %v109_v25 = vpop.permute.xlu0 %108  ;;  %6496 = vmatpush3.bf16.msra.mxu0 %v6572_v22  ;;  %v7253_v35 = vsub.s32 0, %v7242_v31  ;;  %v7256_v36 = vsub.s32 1, %v7242_v31  ;;  %v7262_v39 = vsub.s32 2, %v7242_v31  ;;  %v7268_v41 = vsub.s32 3, %v7242_v31 }
  0x86   :  { %6497 = vmatprep.subr.bf16.mxu0 %v6573_v23  ;;  %v7301_v19 = vsub.s32 %v369_v11, %v7242_v31 }
  0x87   :  { %v7265_v40 = vrot.slane %v50_v38, %v7253_v35  ;;  %v7271_v42 = vrot.slane %v50_v38, %v7256_v36  ;;  %v7275_v46 = vrot.slane %v50_v38, %v7262_v39  ;;  %v7279_v48 = vrot.slane %v50_v38, %v7268_v41 }
  0x89   :  { %v113_v29 = vpop.permute.xlu1 %112  ;;  %v7239_v30 = vpop.permute.xlu0 %116  ;;  %6498 = vmatpush3.bf16.msra.mxu0 %v6574_v27  ;;  %v97_v47 = vmul.f32 %v7265_v40, %v64_v20  ;;  %v245_v53 = vmul.f32 %v7279_v48, %v217_v21  ;;  %v139_v56 = vmul.f32 %v7271_v42, %v105_v24  ;;  %v140_v59 = vmul.f32 %v7271_v42, %v109_v25 }
  0x8a   :  { %6499 = vmatprep.subr.bf16.mxu0 %v6575_v28  ;;  %v141_v45 = vmul.f32 %v7271_v42, %v113_v29 }
  0x8c   :  { %v149_v52 = vadd.f32 %v141_v45, %v97_v47  ;;  %v142_v47 = vmul.f32 %v7271_v42, %v7239_v30 }
  0x8d   :  { %v7250_v34 = vpop.permute.xlu0 %124  ;;  %6500 = vmatpush3.bf16.msra.mxu0 %v6576_v32 }
  0x8e   :  { %v157_v37 = vpop.permute.xlu1 %156  ;;  %6501 = vmatprep.subr.bf16.mxu0 %v6577_v33 }
  0x8f   :  { %v191_v60 = vmul.f32 %v7275_v46, %v157_v37 }
  0x92   :  { %v165_v43 = vpop.permute.xlu1 %164  ;;  %v161_v44 = vpop.permute.xlu0 %160 }
  0x93   :  { %v193_v49 = vmul.f32 %v7275_v46, %v165_v43  ;;  %v192_v3 = vmul.f32 %v7275_v46, %v161_v44 }
  0x95   :  { %v201_v54 = vadd.f32 %v193_v49, %v149_v52  ;;  %v144_v49 = vmul.f32 %v7271_v42, %v7250_v34 }
  0x96   :  { %v7282_v50 = vpop.permute.xlu0 %172 }
  0x97   :  { %v69_v51 = vpop.permute.xlu1 %68  ;;  %v253_v61 = vadd.f32 %v245_v53, %v201_v54 }
  0x99   :  { %v268_v8 = vadd.f32 %v7292_v1, %v253_v61 }
  0x9b   :  { %v54_v55 = vpop.permute.xlu0 %53  ;;  %v284_v16 = vmul.f32 0.2, %v268_v8  ;;  %vm276_vm1 = vcmp.gt.f32.partialorder %v268_v8, 0.0 }
  0x9c   :  { %v95_v57 = vmul.f32 %v7265_v40, %v54_v55  ;;  %v209_v58 = vpop.permute.xlu1 %208  ;;  %v98_v55 = vmul.f32 %v7265_v40, %v69_v51 }
  0x9d   :  { %v243_v5 = vmul.f32 %v7279_v48, %v209_v58  ;;  %v7304_v23 = vsel %vm276_vm1, %v268_v8, %v284_v16 }
  0x9e   :  { %v147_v62 = vadd.f32 %v139_v56, %v95_v57  ;;  %v343_v37 = vrot.slane %v7304_v23, 7 }
  0x9f   :  { %v59_v2 = vpop.permute.xlu0 %58 }
  0xa0   :  { %v199_v4 = vadd.f32 %v191_v60, %v147_v62  ;;  %v96_v6 = vmul.f32 %v7265_v40, %v59_v2  ;;  %v213_v7 = vpop.permute.xlu1 %212 }
  0xa1   :  { %v244_v14 = vmul.f32 %v7279_v48, %v213_v7 }
  0xa2   :  { %v251_v9 = vadd.f32 %v243_v5, %v199_v4  ;;  %v148_v10 = vadd.f32 %v140_v59, %v96_v6  ;;  %v7340_v6 = vmul.f32 %v7275_v46, %v7282_v50 }
  0xa3   :  { %v79_v28 = vpop.permute.xlu0 %78 }
  0xa4   :  { %v266_v12 = vadd.f32 %v7292_v1, %v251_v9  ;;  %v200_v13 = vadd.f32 %v192_v3, %v148_v10  ;;  %v100_v60 = vmul.f32 %v7265_v40, %v79_v28  ;;  %v150_v3 = vadd.f32 %v142_v47, %v98_v55 }
  0xa5   :  { %v169_v15 = vpop.permute.xlu1 %168 }
  0xa6   :  { %vm274_vm0 = vcmp.gt.f32.partialorder %v266_v12, 0.0  ;;  %v282_v17 = vmul.f32 0.2, %v266_v12  ;;  %v252_v18 = vadd.f32 %v244_v14, %v200_v13  ;;  %v194_v59 = vmul.f32 %v7275_v46, %v169_v15 }
  0xa7   :  { %v7324_v54 = vpop.permute.xlu0 %88  ;;  %v7342_v7 = vadd.f32 %v144_v49, %v100_v60 }
  0xa8   :  { %v290_v20 = vsel %vm274_vm0, %v266_v12, %v282_v17  ;;  %v267_v21 = vadd.f32 %v7292_v1, %v252_v18  ;;  %v202_v11 = vadd.f32 %v194_v59, %v150_v3  ;;  %vm939_vm0 = vcmask 523264  }
  0xa9   :  { %v340_v22 = vrot.slane %v290_v20, 7 }
  0xaa   :  { %vm275_vm3 = vcmp.gt.f32.partialorder %v267_v21, 0.0  ;;  %v283_v24 = vmul.f32 0.2, %v267_v21  ;;  %v74_v25 = vpop.permute.xlu1 %73 }
  0xab   :  { %v358_v27 = vsel %vm339_vm2, 0.0, %v340_v22  ;;  %v99_v15 = vmul.f32 %v7265_v40, %v74_v25 }
  0xac   :  { %v366_v29 = vcombine.high %v358_v27, %v358_v27  ;;  %v7308_v32 = vrot.slane %v358_v27, %v7301_v19  ;;  %v291_v33 = vsel %vm275_vm3, %v267_v21, %v283_v24  ;;  %v229_v8 = vpop.permute.xlu0 %228 }
  0xad   :  { %v341_v38 = vrot.slane %v291_v33, 7  ;;  %v248_v21 = vmul.f32 %v7279_v48, %v229_v8 }
  0xae   :  { %v380_v43 = vrot.slane %v366_v29, %v7301_v19  ;;  %v381_v44 = vcombine.high %v7308_v32, %v7308_v32  ;;  %v7314_v45 = vpop.permute.xlu1 %83  ;;  %v686_v57 = vrot.slane %v7308_v32, %v7256_v36  ;;  %v519_v18 = vrot.slane %v7308_v32, %v7253_v35 }
  0xaf   :  { %v342_v52 = vsel %vm339_vm2, %v340_v22, %v341_v38  ;;  %v344_v53 = vsel %vm339_vm2, %v341_v38, %v343_v37 }
  0xb0   :  { %v382_v56 = vcombine.high %v380_v43, %v380_v43  ;;  %v690_v58 = vrot.slane %v381_v44, %v7256_v36  ;;  %v694_v30 = vrot.slane %v380_v43, %v7256_v36  ;;  %v390_v34 = vrot.slane %v342_v52, %v7301_v19 }
  0xb1   :  { %v383_v61 = vcombine.high %v342_v52, %v342_v52  ;;  %v400_v62 = vcombine.high %v344_v53, %v344_v53  ;;  %v407_v0 = vrot.slane %v344_v53, %v7301_v19  ;;  %v523_v20 = vrot.slane %v381_v44, %v7253_v35 }
  0xb2   :  { %v698_v63 = vrot.slane %v382_v56, %v7256_v36  ;;  %v811_v51 = vsel %vm644_vm4, %v690_v58, %v686_v57  ;;  %v398_v4 = vcombine.high %v390_v34, %v390_v34  ;;  %v702_v9 = vrot.slane %v390_v34, %v7256_v36 }
  0xb3   :  { %v121_v2 = vpop.permute.xlu1 %120  ;;  %v812_v5 = vsel %vm646_vm5, %v694_v30, %v811_v51  ;;  %v414_v10 = vrot.slane %v400_v62, %v7301_v19  ;;  %v397_v12 = vrot.slane %v383_v61, %v7301_v19  ;;  %v415_v14 = vcombine.high %v407_v0, %v407_v0 }
  0xb4   :  { %v813_v13 = vsel %vm648_vm6, %v698_v63, %v812_v5  ;;  %v143_v16 = vmul.f32 %v7271_v42, %v121_v2  ;;  %v899_v17 = vsel %vm644_vm4, %v694_v30, %v690_v58  ;;  %v706_v22 = vrot.slane %v398_v4, %v7256_v36 }
  0xb5   :  { %v527_v24 = vrot.slane %v380_v43, %v7253_v35  ;;  %v7360_v25 = vrot.slane %v407_v0, %v7256_v36  ;;  %v814_v27 = vsel %vm650_vm7, %v702_v9, %v813_v13  ;;  %v900_v28 = vsel %vm646_vm5, %v698_v63, %v899_v17 }
  0xb6   :  { %v399_v29 = vcombine.high %v397_v12, %v397_v12  ;;  %v416_v33 = vcombine.high %v414_v10, %v414_v10  ;;  %v710_v32 = vrot.slane %v397_v12, %v7256_v36  ;;  %v901_v38 = vsel %vm648_vm6, %v702_v9, %v900_v28 }
  0xb7   :  { %v7350_v50 = vpop.permute.xlu1 %128  ;;  %v722_v44 = vrot.slane %v415_v14, %v7256_v36  ;;  %v7367_v47 = vadd.f32 %v143_v16, %v99_v15  ;;  %v726_v43 = vrot.slane %v414_v10, %v7256_v36  ;;  %v531_v49 = vrot.slane %v382_v56, %v7253_v35 }
  0xb8   :  { %v815_v53 = vsel %vm652_vm8, %v706_v22, %v814_v27  ;;  %v902_v55 = vsel %vm650_vm7, %v706_v22, %v901_v38  ;;  %v535_v57 = vrot.slane %v390_v34, %v7253_v35  ;;  %v539_v58 = vrot.slane %v398_v4, %v7253_v35 }
  0xb9   :  { %v543_v59 = vrot.slane %v397_v12, %v7253_v35  ;;  %v551_v60 = vrot.slane %v407_v0, %v7253_v35  ;;  %v555_v61 = vrot.slane %v415_v14, %v7253_v35  ;;  %v547_v62 = vrot.slane %v399_v29, %v7253_v35 }
  0xba   :  { %v559_v56 = vrot.slane %v414_v10, %v7253_v35  ;;  %v563_v63 = vrot.slane %v416_v33, %v7253_v35  ;;  %v859_v51 = vsel %vm644_vm4, %v527_v24, %v523_v20  ;;  %v645_v4 = vsel %vm644_vm4, %v523_v20, %v519_v18 }
  0xbb   :  { %v658_v34 = vsel %vm644_vm4, %v555_v61, %v551_v60  ;;  %v860_v3 = vsel %vm646_vm5, %v531_v49, %v859_v51  ;;  %v647_v9 = vsel %vm646_vm5, %v527_v24, %v645_v4  ;;  %v818_v28 = vsel %vm644_vm4, %v722_v44, %v7360_v25 }
  0xbc   :  { %v221_v52 = vpop.permute.xlu1 %220  ;;  %v659_v5 = vsel %vm646_vm5, %v559_v56, %v658_v34  ;;  %v861_v0 = vsel %vm648_vm6, %v535_v57, %v860_v3  ;;  %v866_v8 = vsel %vm644_vm4, %v559_v56, %v555_v61  ;;  %v649_v14 = vsel %vm648_vm6, %v531_v49, %v647_v9 }
  0xbd   :  { %v246_v30 = vmul.f32 %v7279_v48, %v221_v52  ;;  %v862_v13 = vsel %vm650_vm7, %v539_v58, %v861_v0  ;;  %v651_v17 = vsel %vm650_vm7, %v535_v57, %v649_v14  ;;  %v7400_v18 = vsel %vm648_vm6, %v563_v63, %v659_v5 }
  0xbe   :  { %v863_v16 = vsel %vm652_vm8, %v543_v59, %v862_v13  ;;  %v653_v24 = vsel %vm652_vm8, %v539_v58, %v651_v17  ;;  %v730_v61 = vrot.slane %v416_v33, %v7256_v36  ;;  %v903_v51 = vsel %vm652_vm8, %v710_v32, %v902_v55  ;;  %v6578_v33 = vld [vmem:[%s9431_s3 + $0x8] sm:$0xff]  }
  0xbf   :  { %v254_v2 = vadd.f32 %v246_v30, %v202_v11  ;;  %v7393_v11 = vsel %vm646_vm5, %v563_v63, %v866_v8  ;;  %v864_v22 = vsel %vm654_vm9, %v547_v62, %v863_v16  ;;  %v655_v49 = vsel %vm654_vm9, %v543_v59, %v653_v24  ;;  %6502 = vmatpush3.bf16.msra.mxu0 %v6578_v33 }
  0xc0   :  { %v7408_v38 = vsel %vm656_vm10, %v551_v60, %v864_v22  ;;  %v714_v30 = vrot.slane %v399_v29, %v7256_v36  ;;  %v7414_v56 = vsel %vm656_vm10, %v547_v62, %v655_v49  ;;  %v101_v60 = vmul.f32 %v7265_v40, %v7314_v45 }
  0xc1   :  { %v269_v10 = vadd.f32 %v7292_v1, %v254_v2  ;;  %v177_v12 = vpop.permute.xlu1 %176  ;;  %v816_v59 = vsel %vm654_vm9, %v710_v32, %v815_v53  ;;  %v819_v2 = vsel %vm646_vm5, %v726_v43, %v818_v28  ;;  %v906_v29 = vsel %vm644_vm4, %v726_v43, %v722_v44  ;;  %v6579_v32 = vld [vmem:[%s9431_s3 + $0x40] sm:$0xff]  }
  0xc2   :  { %v196_v15 = vmul.f32 %v7275_v46, %v177_v12  ;;  %v904_v23 = vsel %vm654_vm9, %v714_v30, %v903_v51  ;;  %v203_v3 = vadd.f32 %v7340_v6, %v7367_v47  ;;  %v817_v4 = vsel %vm656_vm10, %v714_v30, %v816_v59  ;;  %6503 = vmatprep.subr.bf16.mxu0 %v6579_v32 }
  0xc3   :  { %vm277_vm11 = vcmp.gt.f32.partialorder %v269_v10, 0.0  ;;  %v285_v20 = vmul.f32 0.2, %v269_v10  ;;  %v820_v5 = vsel %vm648_vm6, %v730_v61, %v819_v2  ;;  %v905_v6 = vsel %vm656_vm10, %v7360_v25, %v904_v23 }
  0xc4   :  { %v204_v27 = vadd.f32 %v196_v15, %v7342_v7  ;;  %v145_v7 = vmul.f32 %v7271_v42, %v7350_v50 }
  0xc5   :  { %v293_v52 = vsel %vm277_vm11, %v269_v10, %v285_v20  ;;  %v181_v57 = vpop.permute.xlu1 %180  ;;  %v907_v10 = vsel %vm646_vm5, %v730_v61, %v906_v29 }
  0xc6   :  { %v345_v58 = vrot.slane %v293_v52, 7  ;;  %v256_v63 = vadd.f32 %v248_v21, %v204_v27  ;;  %v197_v45 = vmul.f32 %v7275_v46, %v181_v57  ;;  %v153_v62 = vadd.f32 %v145_v7, %v101_v60 }
  0xc8   :  { %v346_v50 = vsel %vm339_vm2, %v343_v37, %v345_v58  ;;  %v360_v21 = vsel %vm339_vm2, %v345_v58, 0.0  ;;  %v7432_v55 = vadd.f32 %v7292_v1, %v256_v63  ;;  %v6580_v37 = vld [vmem:[%s9431_s3] sm:$0xff]   ;;  %v205_v13 = vadd.f32 %v197_v45, %v153_v62  ;;  %s7116_s3 = smov 64  }
  0xc9   :  { %v417_v44 = vcombine.high %v346_v50, %v346_v50  ;;  %v424_v43 = vrot.slane %v346_v50, %v7301_v19  ;;  %v440_v53 = vrot.slane %v360_v21, %v7301_v19  ;;  %6504 = vmatpush3.bf16.msra.mxu0 %v6580_v37 }
  0xca   :  { %v133_v34 = vpop.permute.xlu1 %132  ;;  %vm279_vm12 = vcmp.gt.f32.partialorder %v7432_v55, 0.0  ;;  %v287_v12 = vmul.f32 0.2, %v7432_v55 }
  0xcb   :  { %v431_v0 = vrot.slane %v417_v44, %v7301_v19  ;;  %v432_v8 = vcombine.high %v424_v43, %v424_v43  ;;  %v734_v9 = vrot.slane %v424_v43, %v7256_v36  ;;  %v894_v15 = vrot.slane %v440_v53, %v7256_v36 }
  0xcc   :  { %v567_v16 = vrot.slane %v424_v43, %v7253_v35  ;;  %v854_v45 = vrot.slane %v440_v53, %v7253_v35  ;;  %v146_v37 = vmul.f32 %v7271_v42, %v133_v34  ;;  %v237_v34 = vpop.permute.xlu0 %236 }
  0xcd   :  { %v433_v47 = vcombine.high %v431_v0, %v431_v0  ;;  %v738_v14 = vrot.slane %v432_v8, %v7256_v36  ;;  %v742_v17 = vrot.slane %v431_v0, %v7256_v36  ;;  %v821_v20 = vsel %vm650_vm7, %v734_v9, %v820_v5 }
  0xce   :  { %v908_v22 = vsel %vm648_vm6, %v734_v9, %v907_v10  ;;  %v571_v24 = vrot.slane %v432_v8, %v7253_v35  ;;  %v575_v52 = vrot.slane %v431_v0, %v7253_v35  ;;  %v868_v51 = vsel %vm648_vm6, %v567_v16, %v7393_v11 }
  0xcf   :  { %v225_v27 = vpop.permute.xlu1 %224  ;;  %v746_v28 = vrot.slane %v433_v47, %v7256_v36  ;;  %v822_v25 = vsel %vm652_vm8, %v738_v14, %v821_v20  ;;  %v909_v49 = vsel %vm650_vm7, %v738_v14, %v908_v22  ;;  %v579_v7 = vrot.slane %v433_v47, %v7253_v35 }
  0xd0   :  { %v247_v57 = vmul.f32 %v7279_v48, %v225_v27  ;;  %v823_v30 = vsel %vm654_vm9, %v742_v17, %v822_v25  ;;  %v910_v61 = vsel %vm652_vm8, %v742_v17, %v909_v49  ;;  %v661_v60 = vsel %vm650_vm7, %v567_v16, %v7400_v18 }
  0xd1   :  { %v824_v58 = vsel %vm656_vm10, %v746_v28, %v823_v30  ;;  %v911_v63 = vsel %vm654_vm9, %v746_v28, %v910_v61  ;;  %v869_v33 = vsel %vm650_vm7, %v571_v24, %v868_v51  ;;  %v662_v44 = vsel %vm652_vm8, %v571_v24, %v661_v60 }
  0xd2   :  { %v255_v59 = vadd.f32 %v247_v57, %v203_v3  ;;  %v6548_v2 = vpack.i.bf16 %v824_v58, %v817_v4  ;;  %v912_v29 = vsel %vm656_vm10, %v894_v15, %v911_v63  ;;  %v870_v32 = vsel %vm652_vm8, %v575_v52, %v869_v33 }
  0xd3   :  { %v233_v50 = vpop.permute.xlu1 %232  ;;  %v6543_v21 = vpack.i.bf16 %v912_v29, %v905_v6  ;;  %v871_v18 = vsel %vm654_vm9, %v579_v7, %v870_v32  ;;  %v663_v23 = vsel %vm654_vm9, %v575_v52, %v662_v44  ;;  %v295_v3 = vsel %vm279_vm12, %v7432_v55, %v287_v12 }
  0xd4   :  { %v270_v43 = vadd.f32 %v7292_v1, %v255_v59  ;;  %v249_v11 = vmul.f32 %v7279_v48, %v233_v50  ;;  %6549 = vrot.lane.b32.xlu0 %v6548_v2, %s7116_s3  ;;  %v7489_v53 = vsel %vm656_vm10, %v854_v45, %v871_v18  ;;  %v7492_v62 = vsel %vm656_vm10, %v579_v7, %v663_v23 }
  0xd5   :  { %6544 = vrot.lane.b32.xlu1 %v6543_v21, %s7116_s3  ;;  %v102_v0 = vmul.f32 %v7265_v40, %v7324_v54  ;;  %v348_v10 = vrot.slane %v295_v3, 7 }
  0xd6   :  { %vm278_vm13 = vcmp.gt.f32.partialorder %v270_v43, 0.0  ;;  %v286_v4 = vmul.f32 0.2, %v270_v43  ;;  %v257_v5 = vadd.f32 %v249_v11, %v205_v13  ;;  %v250_v13 = vmul.f32 %v7279_v48, %v237_v34 }
  0xd7   :  { %v154_v6 = vadd.f32 %v146_v37, %v102_v0 }
  0xd8   :  { %v294_v8 = vsel %vm278_vm13, %v270_v43, %v286_v4  ;;  %v272_v42 = vadd.f32 %v7292_v1, %v257_v5  ;;  %v185_v9 = vpop.permute.xlu1 %184  ;;  %vm4963_vm13 = vcmask 1046528  }
  0xd9   :  { %v347_v47 = vrot.slane %v294_v8, 7  ;;  %v198_v14 = vmul.f32 %v7275_v46, %v185_v9 }
  0xda   :  { %vm280_vm14 = vcmp.gt.f32.partialorder %v272_v42, 0.0  ;;  %v288_v15 = vmul.f32 0.2, %v272_v42 }
  0xdb   :  { %v349_v55 = vsel %vm339_vm2, %v347_v47, %v348_v10  ;;  %v359_v12 = vsel %vm339_vm2, 0.0, %v347_v47  ;;  %v206_v16 = vadd.f32 %v198_v14, %v154_v6 }
  0xdc   :  { %v441_v40 = vcombine.high %v359_v12, %v359_v12  ;;  %v7505_v54 = vrot.slane %v359_v12, %v7301_v19  ;;  %v458_v17 = vcombine.high %v349_v55, %v349_v55  ;;  %v465_v20 = vrot.slane %v349_v55, %v7301_v19 }
  0xdd   :  { %v296_v22 = vsel %vm280_vm14, %v272_v42, %v288_v15  ;;  %v258_v24 = vadd.f32 %v250_v13, %v206_v16 }
  0xde   :  { %v455_v46 = vrot.slane %v441_v40, %v7301_v19  ;;  %v456_v27 = vcombine.high %v7505_v54, %v7505_v54  ;;  %v583_v28 = vrot.slane %v7505_v54, %v7253_v35  ;;  %v7514_v48 = vrot.slane %v465_v20, %v7253_v35 }
  0xdf   :  { %v750_v25 = vrot.slane %v7505_v54, %v7256_v36  ;;  %v350_v49 = vrot.slane %v296_v22, 7  ;;  %v273_v52 = vadd.f32 %v7292_v1, %v258_v24  ;;  %v7520_v57 = vrot.slane %v458_v17, %v7301_v19 }
  0xe0   :  { %v457_v30 = vcombine.high %v455_v46, %v455_v46  ;;  %v7523_v61 = vrot.slane %v456_v27, %v7253_v35  ;;  %v7526_v7 = vrot.slane %v455_v46, %v7253_v35  ;;  %v754_v58 = vrot.slane %v456_v27, %v7256_v36 }
  0xe1   :  { %v758_v63 = vrot.slane %v455_v46, %v7256_v36  ;;  %v351_v51 = vsel %vm339_vm2, %v348_v10, %v350_v49  ;;  %vm281_vm15 = vcmp.gt.f32.partialorder %v273_v52, 0.0  ;;  %v289_v60 = vmul.f32 0.2, %v273_v52 }
  0xe2   :  { %v7532_v1 = vrot.slane %v457_v30, %v7253_v35  ;;  %v475_v59 = vcombine.high %v351_v51, %v351_v51  ;;  %v482_v2 = vrot.slane %v351_v51, %v7301_v19  ;;  %v473_v29 = vcombine.high %v465_v20, %v465_v20 }
  0xe3   :  { %v297_v33 = vsel %vm281_vm15, %v273_v52, %v289_v60  ;;  %v474_v50 = vcombine.high %v7520_v57, %v7520_v57  ;;  %v762_v21 = vrot.slane %v457_v30, %v7256_v36  ;;  %v766_v45 = vrot.slane %v465_v20, %v7256_v36 }
  0xe4   :  { %v489_v32 = vrot.slane %v475_v59, %v7301_v19  ;;  %v490_v44 = vcombine.high %v482_v2, %v482_v2  ;;  %v782_v43 = vrot.slane %v482_v2, %v7256_v36  ;;  %v352_v11 = vrot.slane %v297_v33, 7 }
  0xe5   :  { %v7542_v18 = vrot.slane %v473_v29, %v7253_v35  ;;  %v7545_v23 = vrot.slane %v474_v50, %v7253_v35  ;;  %v770_v37 = vrot.slane %v473_v29, %v7256_v36  ;;  %v774_v3 = vrot.slane %v7520_v57, %v7256_v36 }
  0xe6   :  { %v7551_v4 = vrot.slane %v489_v32, %v7253_v35  ;;  %v786_v5 = vrot.slane %v490_v44, %v7256_v36  ;;  %v353_v0 = vsel %vm339_vm2, %v350_v49, %v352_v11  ;;  %v491_v8 = vcombine.high %v489_v32, %v489_v32 }
  0xe7   :  { %v492_v42 = vcombine.high %v353_v0, %v353_v0  ;;  %v499_v34 = vrot.slane %v353_v0, %v7301_v19  ;;  %v778_v9 = vrot.slane %v474_v50, %v7256_v36  ;;  %v790_v10 = vrot.slane %v489_v32, %v7256_v36 }
  0xe8   :  { %v7559_v6 = vrot.slane %v491_v8, %v7253_v35  ;;  %v794_v47 = vrot.slane %v491_v8, %v7256_v36  ;;  %v825_v14 = vsel %vm644_vm4, %v754_v58, %v750_v25  ;;  %v832_v15 = vsel %vm644_vm4, %v786_v5, %v782_v43 }
  0xe9   :  { %v506_v55 = vrot.slane %v492_v42, %v7301_v19  ;;  %v507_v12 = vcombine.high %v499_v34, %v499_v34  ;;  %v798_v13 = vrot.slane %v499_v34, %v7256_v36  ;;  %v826_v16 = vsel %vm646_vm5, %v758_v63, %v825_v14 }
  0xea   :  { %v827_v40 = vsel %vm648_vm6, %v762_v21, %v826_v16  ;;  %v833_v17 = vsel %vm646_vm5, %v790_v10, %v832_v15  ;;  %v361_v20 = vsel %vm339_vm2, %v352_v11, 0.0  ;;  %v913_v22 = vsel %vm644_vm4, %v758_v63, %v754_v58 }
  0xeb   :  { %v508_v24 = vcombine.high %v506_v55, %v506_v55  ;;  %v7572_v46 = vrot.slane %v507_v12, %v7253_v35  ;;  %v802_v27 = vrot.slane %v507_v12, %v7256_v36  ;;  %v806_v25 = vrot.slane %v506_v55, %v7256_v36 }
  0xec   :  { %v828_v49 = vsel %vm650_vm7, %v766_v45, %v827_v40  ;;  %v834_v52 = vsel %vm648_vm6, %v794_v47, %v833_v17  ;;  %v515_v30 = vrot.slane %v361_v20, %v7301_v19  ;;  %v914_v51 = vsel %vm646_vm5, %v762_v21, %v913_v22 }
  0xed   :  { %v810_v60 = vrot.slane %v508_v24, %v7256_v36  ;;  %v829_v58 = vsel %vm652_vm8, %v770_v37, %v828_v49  ;;  %v835_v63 = vsel %vm650_vm7, %v798_v13, %v834_v52  ;;  %v643_v59 = vrot.slane %v508_v24, %v7253_v35 }
  0xee   :  { %v830_v29 = vsel %vm654_vm9, %v774_v3, %v829_v58  ;;  %v836_v33 = vsel %vm652_vm8, %v802_v27, %v835_v63  ;;  %v898_v50 = vrot.slane %v515_v30, %v7256_v36  ;;  %v915_v32 = vsel %vm648_vm6, %v766_v45, %v914_v51 }
  0xef   :  { %v831_v11 = vsel %vm656_vm10, %v778_v9, %v830_v29  ;;  %v837_v21 = vsel %vm654_vm9, %v806_v25, %v836_v33  ;;  %v916_v0 = vsel %vm650_vm7, %v770_v37, %v915_v32  ;;  %v920_v8 = vsel %vm644_vm4, %v790_v10, %v786_v5 }
  0xf0   :  { %v838_v42 = vsel %vm656_vm10, %v810_v60, %v837_v21  ;;  %v917_v14 = vsel %vm652_vm8, %v774_v3, %v916_v0  ;;  %v921_v15 = vsel %vm646_vm5, %v794_v47, %v920_v8  ;;  %v607_v12 = vrot.slane %v7520_v57, %v7253_v35 }
  0xf1   :  { %v6558_v16 = vpack.i.bf16 %v838_v42, %v831_v11  ;;  %v918_v45 = vsel %vm654_vm9, %v778_v9, %v917_v14  ;;  %v922_v40 = vsel %vm648_vm6, %v798_v13, %v921_v15  ;;  %v615_v17 = vrot.slane %v482_v2, %v7253_v35 }
  0xf2   :  { %v919_v37 = vsel %vm656_vm10, %v782_v43, %v918_v45  ;;  %v923_v5 = vsel %vm650_vm7, %v802_v27, %v922_v40  ;;  %v619_v10 = vrot.slane %v490_v44, %v7253_v35  ;;  %v631_v3 = vrot.slane %v499_v34, %v7253_v35 }
  0xf3   :  { %6559 = vrot.lane.b32.xlu0 %v6558_v16, %s7116_s3  ;;  %v924_v47 = vsel %vm652_vm8, %v806_v25, %v923_v5  ;;  %v639_v57 = vrot.slane %v506_v55, %v7253_v35  ;;  %v858_v9 = vrot.slane %v515_v30, %v7253_v35  ;;  %v873_v2 = vsel %vm644_vm4, %v7526_v7, %v7523_v61 }
  0xf4   :  { %v925_v43 = vsel %vm654_vm9, %v810_v60, %v924_v47  ;;  %v672_v13 = vsel %vm644_vm4, %v619_v10, %v615_v17  ;;  %v874_v44 = vsel %vm646_vm5, %v7532_v1, %v873_v2  ;;  %v880_v34 = vsel %vm644_vm4, %v7551_v4, %v619_v10  ;;  %v6586_v2 = vld [vmem:[%s9433_s5 + $0x174] ss:$8 sps:$4 sm:$0xff]  }
  0xf5   :  { %v926_v20 = vsel %vm656_vm10, %v898_v50, %v925_v43  ;;  %v875_v55 = vsel %vm648_vm6, %v7514_v48, %v874_v44  ;;  %v881_v22 = vsel %vm646_vm5, %v7559_v6, %v880_v34  ;;  %v665_v24 = vsel %vm644_vm4, %v7523_v61, %v583_v28  ;;  %v6584_v43 = vld [vmem:[%s9433_s5 + $0x170] ss:$8 sps:$4 sm:$0xff]   ;;  %1912 = vmatprep.subr.bf16.mxu0 %v6586_v2  ;;  %v6589_v44 = vld [vmem:[%s9433_s5 + $0x60] ss:$8 sps:$4 sm:$0xff]   ;;  %v6592_v34 = vld [vmem:[%s9433_s5 + $0x164] ss:$8 sps:$4 sm:$0xff]  }
  0xf6   :  { %v6553_v27 = vpack.i.bf16 %v926_v20, %v919_v37  ;;  %v876_v25 = vsel %vm650_vm7, %v7542_v18, %v875_v55  ;;  %v882_v49 = vsel %vm648_vm6, %v631_v3, %v881_v22  ;;  %v666_v52 = vsel %vm646_vm5, %v7526_v7, %v665_v24  ;;  %v6590_v20 = vld [vmem:[%s9433_s5 + $0x160] ss:$8 sps:$4 sm:$0xff]   ;;  %v6593_v55 = vld [vmem:[%s9433_s5 + $0x54] ss:$8 sps:$4 sm:$0xff]   ;;  %v6595_v22 = vld [vmem:[%s9433_s5 + $0x50] ss:$8 sps:$4 sm:$0xff]  }
  0xf7   :  { %v877_v30 = vsel %vm652_vm8, %v607_v12, %v876_v25  ;;  %v883_v51 = vsel %vm650_vm7, %v7572_v46, %v882_v49  ;;  %v667_v54 = vsel %vm648_vm6, %v7532_v1, %v666_v52  ;;  %v673_v28 = vsel %vm646_vm5, %v7551_v4, %v672_v13  ;;  %v6587_v13 = vld [vmem:[%s9433_s5 + $0x64] ss:$8 sps:$4 sm:$0xff]   ;;  %v6598_v24 = vld [vmem:[%s9433_s5 + $0x154] ss:$8 sps:$4 sm:$0xff]   ;;  %v6601_v49 = vld [vmem:[%s9433_s5 + $0x40] ss:$8 sps:$4 sm:$0xff]  }
  0xf8   :  { %6554 = vrot.lane.b32.xlu1 %v6553_v27, %s7116_s3  ;;  %v878_v61 = vsel %vm654_vm9, %v7545_v23, %v877_v30  ;;  %v884_v60 = vsel %vm652_vm8, %v639_v57, %v883_v51  ;;  %v668_v7 = vsel %vm650_vm7, %v7514_v48, %v667_v54  ;;  %v674_v58 = vsel %vm648_vm6, %v7559_v6, %v673_v28  ;;  %v6596_v27 = vld [vmem:[%s9433_s5 + $0x150] ss:$8 sps:$4 sm:$0xff]   ;;  %v6599_v25 = vld [vmem:[%s9433_s5 + $0x44] ss:$8 sps:$4 sm:$0xff]   ;;  %v6602_v30 = vld [vmem:[%s9433_s5 + $0x140] ss:$8 sps:$4 sm:$0xff]  }
  0xf9   :  { %v879_v63 = vsel %vm656_vm10, %v615_v17, %v878_v61  ;;  %v885_v1 = vsel %vm654_vm9, %v643_v59, %v884_v60  ;;  %v669_v4 = vsel %vm652_vm8, %v7542_v18, %v668_v7  ;;  %v675_v29 = vsel %vm650_vm7, %v631_v3, %v674_v58  ;;  %v6604_v52 = vld [vmem:[%s9433_s5 + $0x144] ss:$8 sps:$4 sm:$0xff]   ;;  %v6605_v51 = vld [vmem:[%s9433_s5 + $0x34] ss:$8 sps:$4 sm:$0xff]   ;;  %v6607_v54 = vld [vmem:[%s9433_s5 + $0x30] ss:$8 sps:$4 sm:$0xff]  }
  0xfa   :  { %v886_v33 = vsel %vm656_vm10, %v858_v9, %v885_v1  ;;  %v670_v50 = vsel %vm654_vm9, %v607_v12, %v669_v4  ;;  %v676_v32 = vsel %vm652_vm8, %v7572_v46, %v675_v29  ;;  %v6583_v9 = vld [vmem:[%s9433_s5 + $0x70] ss:$8 sps:$4 sm:$0xff]   ;;  %v6610_v28 = vld [vmem:[%s9433_s5 + $0x134] ss:$8 sps:$4 sm:$0xff]   ;;  %v6611_v60 = vld [vmem:[%s9433_s5 + $0x24] ss:$8 sps:$4 sm:$0xff]  }
  0xfb   :  { %v671_v48 = vsel %vm656_vm10, %v7545_v23, %v670_v50  ;;  %v677_v6 = vsel %vm654_vm9, %v639_v57, %v676_v32  ;;  %v6581_v57 = vld [vmem:[%s9433_s5 + $0x74] ss:$8 sps:$4 sm:$0xff]   ;;  %v6608_v61 = vld [vmem:[%s9433_s5 + $0x130] ss:$8 sps:$4 sm:$0xff]   ;;  %v6613_v7 = vld [vmem:[%s9433_s5 + $0x20] ss:$8 sps:$4 sm:$0xff]  }
  0xfc   :  { %v678_v11 = vsel %vm656_vm10, %v643_v59, %v677_v6  ;;  %1869 = vmatprep.subr.bf16.mxu1 %v6581_v57  ;;  %v6616_v58 = vld [vmem:[%s9433_s5 + $0x124] ss:$8 sps:$4 sm:$0xff]   ;;  %v6617_v1 = vld [vmem:[%s9433_s5 + $0x14] ss:$8 sps:$4 sm:$0xff]   ;;  %v6619_v4 = vld [vmem:[%s9433_s5 + $0x10] ss:$8 sps:$4 sm:$0xff]  }
  0xfd   :  { %1870 = vmatpush1.bf16.msra.mxu1 %v6583_v9  ;;  %v6622_v29 = vld [vmem:[%s9433_s5 + $0x114] ss:$8 sps:$4 sm:$0xff]   ;;  %v6623_v50 = vld [vmem:[%s9433_s5 + $0x4] ss:$8 sps:$4 sm:$0xff]   ;;  %v6625_v32 = vld [vmem:[%s9433_s5] ss:$8 sps:$4 sm:$0xff]  }
  0xfe   :  { %1871 = vmatprep.subr.bf16.mxu1 %v6587_v13  ;;  %v6626_v6 = vld [vmem:[%s9433_s5 + $0x100] ss:$8 sps:$4 sm:$0xff]   ;;  %v6670_v57 = vld [vmem:[%s9433_s5 + $0x194] ss:$8 sps:$4 sm:$0xff]   ;;  %v6667_v9 = vld [vmem:[%s9433_s5 + $0x90] ss:$8 sps:$4 sm:$0xff]  }
  0xff   :  { %v6668_v2 = vld [vmem:[%s9433_s5 + $0x190] ss:$8 sps:$4 sm:$0xff]   ;;  %v6676_v13 = vld [vmem:[%s9433_s5 + $0x184] ss:$8 sps:$4 sm:$0xff]  }
 0x101   :  { %1872 = vmatpush1.bf16.msra.mxu1 %v6589_v44 }
 0x102   :  { %1873 = vmatprep.subr.bf16.mxu1 %v6593_v55  ;;  %v6674_v55 = vld [vmem:[%s9433_s5 + $0x180] ss:$8 sps:$4 sm:$0xff]  }
 0x105   :  { %1874 = vmatpush1.bf16.msra.mxu1 %v6595_v22 }
 0x106   :  { %1875 = vmatprep.subr.bf16.mxu1 %v6599_v25 }
 0x109   :  { %1876 = vmatpush1.bf16.msra.mxu1 %v6601_v49 }
 0x10a   :  { %1877 = vmatprep.subr.bf16.mxu1 %v6605_v51 }
 0x10d   :  { %1878 = vmatpush1.bf16.msra.mxu1 %v6607_v54 }
 0x10e   :  { %1879 = vmatprep.subr.bf16.mxu1 %v6611_v60 }
 0x111   :  { %1880 = vmatpush1.bf16.msra.mxu1 %v6613_v7 }
 0x112   :  { %1881 = vmatprep.subr.bf16.mxu1 %v6617_v1 }
 0x115   :  { %1882 = vmatpush1.bf16.msra.mxu1 %v6619_v4 }
 0x116   :  { %1883 = vmatprep.subr.bf16.mxu1 %v6623_v50 }
 0x119   :  { %1884 = vmatpush1.bf16.msra.mxu1 %v6625_v32 }
 0x146   :  { %v6550_v21 = vpop.permute.xlu0 %6549 }
 0x147   :  { %v6552_v0 = vunpack.i.h.bf16 %v6550_v21  ;;  %v6551_v18 = vunpack.i.l.bf16 %v6550_v21  ;;  %v6545_v8 = vpop.permute.xlu1 %6544  ;;  %v6631_v21 = vld [vmem:[%s9433_s5 + $0xf0] ss:$8 sps:$4 sm:$0xff]  }
 0x148   :  { %v6547_v42 = vunpack.i.h.bf16 %v6545_v8  ;;  %v6546_v14 = vunpack.i.l.bf16 %v6545_v8  ;;  %v6635_v8 = vld [vmem:[%s9433_s5 + $0xe4] ss:$8 sps:$4 sm:$0xff]  }
 0x149   :  { %v940_v15 = vsel %vm939_vm0, %v7414_v56, %v6551_v18  ;;  %v941_v46 = vsel %vm939_vm0, %v7492_v62, %v6552_v0  ;;  %v6634_v0 = vld [vmem:[%s9433_s5 + $0x1f4] ss:$8 sps:$4 sm:$0xff]   ;;  %v6632_v18 = vld [vmem:[%s9433_s5 + $0x1f0] ss:$8 sps:$4 sm:$0xff]  }
 0x14a   :  { %v944_v23 = vsel %vm939_vm0, %v7408_v38, %v6546_v14  ;;  %v945_v12 = vsel %vm939_vm0, %v7489_v53, %v6547_v42  ;;  %v948_v59 = vpack.c.bf16 %v941_v46, %v940_v15  ;;  %v6637_v42 = vld [vmem:[%s9433_s5 + $0xe0] ss:$8 sps:$4 sm:$0xff]   ;;  %v6640_v14 = vld [vmem:[%s9433_s5 + $0x1e4] ss:$8 sps:$4 sm:$0xff]   ;;  %v6641_v46 = vld [vmem:[%s9433_s5 + $0xd4] ss:$8 sps:$4 sm:$0xff]  }
 0x14b   :  { %v949_v16 = vpack.c.bf16 %v945_v12, %v944_v23  ;;  %v6638_v15 = vld [vmem:[%s9433_s5 + $0x1e0] ss:$8 sps:$4 sm:$0xff]   ;;  %v6643_v23 = vld [vmem:[%s9433_s5 + $0xd0] ss:$8 sps:$4 sm:$0xff]   ;;  %v6646_v12 = vld [vmem:[%s9433_s5 + $0x1d4] ss:$8 sps:$4 sm:$0xff]  }
 0x14d   :  { %1080 = vmatprep.mubr.bf16.mxu0 %v949_v16  ;;  %v6647_v16 = vld [vmem:[%s9433_s5 + $0xc4] ss:$8 sps:$4 sm:$0xff]  }
 0x14e   :  { %1081 = vmatmul.mubr.bf16.vlgmr.msra.gmra.mxu0 %v948_v59  ;;  %v6644_v59 = vld [vmem:[%s9433_s5 + $0x1d0] ss:$8 sps:$4 sm:$0xff]  }
 0x14f   :  { %1913 = vmatpush1.bf16.msra.mxu0 %v6584_v43  ;;  %v6671_v43 = vld [vmem:[%s9433_s5 + $0x84] ss:$8 sps:$4 sm:$0xff]  }
 0x150   :  { %1914 = vmatprep.subr.bf16.mxu0 %v6592_v34  ;;  %v6673_v34 = vld [vmem:[%s9433_s5 + $0x80] ss:$8 sps:$4 sm:$0xff]  }
 0x153   :  { %1915 = vmatpush1.bf16.msra.mxu0 %v6590_v20 }
 0x154   :  { %1916 = vmatprep.subr.bf16.mxu0 %v6598_v24 }
 0x157   :  { %1917 = vmatpush1.bf16.msra.mxu0 %v6596_v27  ;;  %v6153_v27 = vld [vmem:[%s9432_s4] ss:$0 sm:$0xff] }
 0x158   :  { %1918 = vmatprep.subr.bf16.mxu0 %v6604_v52 }
 0x15b   :  { %1919 = vmatpush1.bf16.msra.mxu0 %v6602_v30 }
 0x15c   :  { %1920 = vmatprep.subr.bf16.mxu0 %v6610_v28 }
 0x15f   :  { %1921 = vmatpush1.bf16.msra.mxu0 %v6608_v61 }
 0x160   :  { %1922 = vmatprep.subr.bf16.mxu0 %v6616_v58 }
 0x165   :  { %v6560_v45 = vpop.permute.xlu0 %6559 }
 0x166   :  { %v6562_v40 = vunpack.i.h.bf16 %v6560_v45  ;;  %v6561_v17 = vunpack.i.l.bf16 %v6560_v45  ;;  %v6652_v45 = vld [vmem:[%s9433_s5 + $0x1c4] ss:$8 sps:$4 sm:$0xff]  }
 0x168   :  { %v942_v37 = vsel %vm939_vm0, %v671_v48, %v6561_v17  ;;  %v943_v56 = vsel %vm939_vm0, %v678_v11, %v6562_v40  ;;  %v6628_v48 = vld [vmem:[%s9433_s5 + $0x104] ss:$8 sps:$4 sm:$0xff]   ;;  %v6629_v11 = vld [vmem:[%s9433_s5 + $0xf4] ss:$8 sps:$4 sm:$0xff]   ;;  %v6649_v40 = vld [vmem:[%s9433_s5 + $0xc0] ss:$8 sps:$4 sm:$0xff]  }
 0x169   :  { %v950_v5 = vpack.c.bf16 %v943_v56, %v942_v37  ;;  %1885 = vmatprep.subr.bf16.mxu1 %v6629_v11  ;;  %v6650_v17 = vld [vmem:[%s9433_s5 + $0x1c0] ss:$8 sps:$4 sm:$0xff]   ;;  %v6653_v37 = vld [vmem:[%s9433_s5 + $0xb4] ss:$8 sps:$4 sm:$0xff]  }
 0x16a   :  { %v6555_v10 = vpop.permute.xlu1 %6554  ;;  %1886 = vmatpush2.bf16.msra.mxu1 %v6631_v21  ;;  %v6658_v56 = vld [vmem:[%s9433_s5 + $0x1b4] ss:$8 sps:$4 sm:$0xff]  }
 0x16b   :  { %v6557_v62 = vunpack.i.h.bf16 %v6555_v10  ;;  %v6556_v3 = vunpack.i.l.bf16 %v6555_v10  ;;  %1887 = vmatprep.subr.bf16.mxu1 %v6635_v8  ;;  %v6656_v10 = vld [vmem:[%s9433_s5 + $0x1b0] ss:$8 sps:$4 sm:$0xff]  }
 0x16d   :  { %v946_v38 = vsel %vm939_vm0, %v879_v63, %v6556_v3  ;;  %v947_v47 = vsel %vm939_vm0, %v886_v33, %v6557_v62  ;;  %v6614_v63 = vld [vmem:[%s9433_s5 + $0x120] ss:$8 sps:$4 sm:$0xff]   ;;  %v6620_v33 = vld [vmem:[%s9433_s5 + $0x110] ss:$8 sps:$4 sm:$0xff]   ;;  %v6659_v62 = vld [vmem:[%s9433_s5 + $0xa4] ss:$8 sps:$4 sm:$0xff]  }
 0x16e   :  { %v951_v53 = vpack.c.bf16 %v947_v47, %v946_v38  ;;  %1923 = vmatpush1.bf16.msra.mxu0 %v6614_v63  ;;  %1888 = vmatpush2.bf16.msra.mxu1 %v6637_v42  ;;  %v6664_v3 = vld [vmem:[%s9433_s5 + $0x1a4] ss:$8 sps:$4 sm:$0xff]   ;;  %v6661_v38 = vld [vmem:[%s9433_s5 + $0xa0] ss:$8 sps:$4 sm:$0xff]  }
 0x16f   :  { %1924 = vmatprep.subr.bf16.mxu0 %v6622_v29  ;;  %1889 = vmatprep.subr.bf16.mxu1 %v6641_v46  ;;  %v6662_v47 = vld [vmem:[%s9433_s5 + $0x1a0] ss:$8 sps:$4 sm:$0xff]  }
 0x170   :  { %1088 = vmatprep.mubr.bf16.mxu0 %v951_v53  ;;  %v6665_v53 = vld [vmem:[%s9433_s5 + $0x94] ss:$8 sps:$4 sm:$0xff]  }
 0x171   :  { %1089 = vmatmul.mubr.bf16.gmra.mxu0 %v950_v5  ;;  %v6655_v5 = vld [vmem:[%s9433_s5 + $0xb0] ss:$8 sps:$4 sm:$0xff]  }
 0x172   :  { %1925 = vmatpush1.bf16.msra.mxu0 %v6620_v33  ;;  %1890 = vmatpush2.bf16.msra.mxu1 %v6643_v23 }
 0x173   :  { %1926 = vmatprep.subr.bf16.mxu0 %v6628_v48  ;;  %1891 = vmatprep.subr.bf16.mxu1 %v6647_v16 }
 0x176   :  { %1927 = vmatpush1.bf16.msra.mxu0 %v6626_v6  ;;  %1892 = vmatpush2.bf16.msra.mxu1 %v6649_v40 }
 0x177   :  { %1928 = vmatprep.subr.bf16.mxu0 %v6634_v0  ;;  %1893 = vmatprep.subr.bf16.mxu1 %v6653_v37 }
 0x17a   :  { %1929 = vmatpush2.bf16.msra.mxu0 %v6632_v18  ;;  %1894 = vmatpush2.bf16.msra.mxu1 %v6655_v5 }
 0x17b   :  { %1930 = vmatprep.subr.bf16.mxu0 %v6640_v14  ;;  %1895 = vmatprep.subr.bf16.mxu1 %v6659_v62 }
 0x17e   :  { %1931 = vmatpush2.bf16.msra.mxu0 %v6638_v15  ;;  %1896 = vmatpush2.bf16.msra.mxu1 %v6661_v38 }
 0x17f   :  { %1932 = vmatprep.subr.bf16.mxu0 %v6646_v12  ;;  %1897 = vmatprep.subr.bf16.mxu1 %v6665_v53 }
 0x182   :  { %1933 = vmatpush2.bf16.msra.mxu0 %v6644_v59  ;;  %1898 = vmatpush2.bf16.msra.mxu1 %v6667_v9 }
 0x183   :  { %1934 = vmatprep.subr.bf16.mxu0 %v6652_v45  ;;  %1899 = vmatprep.subr.bf16.mxu1 %v6671_v43 }
 0x186   :  { %1935 = vmatpush2.bf16.msra.mxu0 %v6650_v17  ;;  %1900 = vmatpush2.bf16.msra.mxu1 %v6673_v34 }
 0x187   :  { %1936 = vmatprep.subr.bf16.mxu0 %v6658_v56 }
 0x18a   :  { %1937 = vmatpush2.bf16.msra.mxu0 %v6656_v10 }
 0x18b   :  { %1938 = vmatprep.subr.bf16.mxu0 %v6664_v3 }
 0x18e   :  { %1939 = vmatpush2.bf16.msra.mxu0 %v6662_v47 }
 0x18f   :  { %1940 = vmatprep.subr.bf16.mxu0 %v6670_v57 }
 0x192   :  { %1941 = vmatpush2.bf16.msra.mxu0 %v6668_v2 }
 0x193   :  { %1942 = vmatprep.subr.bf16.mxu0 %v6676_v13 }
 0x196   :  { %1943 = vmatpush2.bf16.msra.mxu0 %v6674_v55 }
 0x20e   :  { %v6505_v44 = vpop.f32.mrf.mxu0 }
 0x210   :  { %v6506_v20 = vpop.f32.mrf.mxu0 }
 0x211   :  { %v6507_v24 = vadd.f32 %v6506_v20, %v6505_v44 }
 0x212   :  { %v6508_v22 = vpop.f32.mrf.mxu0 }
 0x213   :  { %v1103_v52 = vadd.f32 %v6507_v24, %v6153_v27 }
 0x214   :  { %v6509_v25 = vpop.f32.mrf.mxu0 }
 0x215   :  { %v6510_v49 = vadd.f32 %v6509_v25, %v6508_v22 }
 0x217   :  { %v1104_v30 = vadd.f32 %v6510_v49, %v6153_v27 }
 0x219   :  { %v1107_v51 = vadd.f32 %v1104_v30, %v1103_v52 }
 0x21b   :  { %v1108_v54 = vrot.slane %v1107_v51, 4 }
 0x21d   :  { %v1109_v28 = vadd.f32 %v1108_v54, %v1107_v51 }
 0x21f   :  { %v1110_v61 = vrot.slane %v1109_v28, 2 }
 0x221   :  { %v1111_v60 = vadd.f32 %v1110_v61, %v1109_v28 }
 0x223   :  { %v1112_v7 = vrot.slane %v1111_v60, 1 }
 0x225   :  { %v1113_v58 = vadd.f32 %v1112_v7, %v1111_v60 }
 0x227   :  { %v1122_v63 = vmul.f32 0.0625, %v1113_v58 }
 0x229   :  { %v1124_v1 = vsub.f32 %v1103_v52, %v1122_v63  ;;  %v1125_v4 = vsub.f32 %v1104_v30, %v1122_v63 }
 0x22b   :  { %v1128_v29 = vmul.f32 %v1124_v1, %v1124_v1  ;;  %v1129_v33 = vmul.f32 %v1125_v4, %v1125_v4 }
 0x22d   :  { %v1132_v50 = vadd.f32 %v1129_v33, %v1128_v29 }
 0x22f   :  { %v1133_v32 = vrot.slane %v1132_v50, 4 }
 0x231   :  { %v1134_v48 = vadd.f32 %v1133_v32, %v1132_v50  ;;  %v6511_v6 = vpop.f32.mrf.mxu0 }
 0x233   :  { %v1135_v11 = vrot.slane %v1134_v48, 2  ;;  %v6512_v21 = vpop.f32.mrf.mxu0 }
 0x234   :  { %v6513_v8 = vadd.f32 %v6512_v21, %v6511_v6 }
 0x235   :  { %v1136_v0 = vadd.f32 %v1135_v11, %v1134_v48  ;;  %v6514_v18 = vpop.f32.mrf.mxu0 }
 0x236   :  { %v1105_v23 = vadd.f32 %v6513_v8, %v6153_v27 }
 0x237   :  { %v1137_v42 = vrot.slane %v1136_v0, 1  ;;  %v6515_v14 = vpop.f32.mrf.mxu0 }
 0x238   :  { %v6516_v15 = vadd.f32 %v6515_v14, %v6514_v18 }
 0x239   :  { %v1138_v46 = vadd.f32 %v1137_v42, %v1136_v0 }
 0x23a   :  { %v1106_v12 = vadd.f32 %v6516_v15, %v6153_v27 }
 0x23b   :  { %v1146_v59 = vmul.f32 0.0625, %v1138_v46 }
 0x23c   :  { %v1114_v16 = vadd.f32 %v1106_v12, %v1105_v23 }
 0x23d   :  { %v1148_v45 = vadd.f32 1e-05, %v1146_v59 }
 0x23e   :  { %v1115_v40 = vrot.slane %v1114_v16, 4 }
 0x23f   :  { %7061 = vrsqrt.f32 %v1148_v45 }
 0x240   :  { %v1116_v17 = vadd.f32 %v1115_v40, %v1114_v16 }
 0x242   :  { %v1117_v37 = vrot.slane %v1116_v17, 2 }
 0x244   :  { %v1118_v56 = vadd.f32 %v1117_v37, %v1116_v17 }
 0x246   :  { %v1119_v5 = vrot.slane %v1118_v56, 1 }
 0x248   :  { %v1120_v10 = vadd.f32 %v1119_v5, %v1118_v56 }
 0x24a   :  { %v1123_v62 = vmul.f32 0.0625, %v1120_v10 }
 0x24c   :  { %v7062_v3 = vpop.eup %7061  ;;  %v1126_v38 = vsub.f32 %v1105_v23, %v1123_v62  ;;  %v1127_v47 = vsub.f32 %v1106_v12, %v1123_v62 }
 0x24d   :  { %v1152_v53 = vmul.f32 %v7062_v3, %v1124_v1  ;;  %v1153_v55 = vmul.f32 %v7062_v3, %v1125_v4 }
 0x24e   :  { %v1130_v57 = vmul.f32 %v1126_v38, %v1126_v38  ;;  %v1131_v9 = vmul.f32 %v1127_v47, %v1127_v47 }
 0x24f   :  { %vm1156_vm1 = vcmp.gt.f32.partialorder %v1152_v53, 0.0  ;;  %v1160_v2 = vmul.f32 0.2, %v1152_v53  ;;  %v1161_v25 = vmul.f32 0.2, %v1153_v55  ;;  %vm1157_vm3 = vcmp.gt.f32.partialorder %v1153_v55, 0.0 }
 0x250   :  { %v1139_v43 = vadd.f32 %v1131_v9, %v1130_v57 }
 0x251   :  { %v1164_v13 = vsel %vm1156_vm1, %v1152_v53, %v1160_v2  ;;  %v1165_v54 = vsel %vm1157_vm3, %v1153_v55, %v1161_v25 }
 0x252   :  { %v1237_v44 = vrot.slane %v1164_v13, 7  ;;  %v1140_v34 = vrot.slane %v1139_v43, 4  ;;  %v1238_v7 = vrot.slane %v1165_v54, 7 }
 0x254   :  { %v1141_v20 = vadd.f32 %v1140_v34, %v1139_v43  ;;  %v1247_v22 = vsel %vm339_vm2, 0.0, %v1237_v44  ;;  %v1239_v33 = vsel %vm339_vm2, %v1237_v44, %v1238_v7  ;;  %v1249_v45 = vsel %vm339_vm2, %v1238_v7, 0.0 }
 0x255   :  { %v1262_v49 = vrot.slane %v1247_v22, %v7301_v19  ;;  %v1255_v30 = vcombine.high %v1247_v22, %v1247_v22  ;;  %v1279_v11 = vrot.slane %v1239_v33, %v7301_v19  ;;  %v1272_v42 = vcombine.high %v1239_v33, %v1239_v33 }
 0x256   :  { %v1142_v24 = vrot.slane %v1141_v20, 2  ;;  %v7898_v53 = vrot.slane %v1249_v45, %v7301_v19 }
 0x257   :  { %v1270_v28 = vcombine.high %v1262_v49, %v1262_v49  ;;  %v1269_v60 = vrot.slane %v1255_v30, %v7301_v19  ;;  %v1420_v4 = vrot.slane %v1262_v49, %v7256_v36  ;;  %v1340_v32 = vrot.slane %v1262_v49, %v7253_v35 }
 0x258   :  { %v1143_v27 = vadd.f32 %v1142_v24, %v1141_v20  ;;  %v1287_v23 = vcombine.high %v1279_v11, %v1279_v11  ;;  %v1436_v59 = vrot.slane %v1279_v11, %v7256_v36  ;;  %v1286_v40 = vrot.slane %v1272_v42, %v7301_v19 }
 0x259   :  { %v1424_v63 = vrot.slane %v1270_v28, %v7256_v36  ;;  %v1271_v1 = vcombine.high %v1269_v60, %v1269_v60  ;;  %v1344_v29 = vrot.slane %v1270_v28, %v7253_v35  ;;  %v1428_v50 = vrot.slane %v1269_v60, %v7256_v36 }
 0x25a   :  { %v1144_v52 = vrot.slane %v1143_v27, 1  ;;  %v1348_v6 = vrot.slane %v1269_v60, %v7253_v35  ;;  %v1356_v17 = vrot.slane %v1279_v11, %v7253_v35  ;;  %v1440_v62 = vrot.slane %v1287_v23, %v7256_v36 }
 0x25b   :  { %v1481_v48 = vsel %vm644_vm4, %v1424_v63, %v1420_v4  ;;  %v1432_v21 = vrot.slane %v1271_v1, %v7256_v36  ;;  %v1401_v0 = vsel %vm644_vm4, %v1344_v29, %v1340_v32  ;;  %v1352_v8 = vrot.slane %v1271_v1, %v7253_v35 }
 0x25c   :  { %v1145_v51 = vadd.f32 %v1144_v52, %v1143_v27  ;;  %v1482_v18 = vsel %vm646_vm5, %v1428_v50, %v1481_v48  ;;  %v1505_v14 = vsel %vm644_vm4, %v1348_v6, %v1344_v29  ;;  %v1402_v15 = vsel %vm646_vm5, %v1348_v6, %v1401_v0 }
 0x25d   :  { %v1529_v46 = vsel %vm644_vm4, %v1428_v50, %v1424_v63  ;;  %v1483_v12 = vsel %vm648_vm6, %v1432_v21, %v1482_v18  ;;  %v1506_v16 = vsel %vm646_vm5, %v1352_v8, %v1505_v14  ;;  %v1403_v37 = vsel %vm648_vm6, %v1352_v8, %v1402_v15 }
 0x25e   :  { %v1147_v61 = vmul.f32 0.0625, %v1145_v51  ;;  %v1530_v56 = vsel %vm646_vm5, %v1432_v21, %v1529_v46  ;;  %v1484_v5 = vsel %vm650_vm7, %v1436_v59, %v1483_v12  ;;  %v1507_v3 = vsel %vm648_vm6, %v1356_v17, %v1506_v16 }
 0x25f   :  { %v1404_v2 = vsel %vm650_vm7, %v1356_v17, %v1403_v37  ;;  %v1531_v43 = vsel %vm648_vm6, %v1436_v59, %v1530_v56  ;;  %v1288_v13 = vcombine.high %v1286_v40, %v1286_v40  ;;  %v1444_v44 = vrot.slane %v1286_v40, %v7256_v36 }
 0x260   :  { %v1149_v58 = vadd.f32 1e-05, %v1147_v61  ;;  %v1485_v34 = vsel %vm652_vm8, %v1440_v62, %v1484_v5  ;;  %v1360_v20 = vrot.slane %v1287_v23, %v7253_v35  ;;  %v1364_v52 = vrot.slane %v1286_v40, %v7253_v35 }
 0x261   :  { %v1486_v49 = vsel %vm654_vm9, %v1444_v44, %v1485_v34  ;;  %v1448_v54 = vrot.slane %v1288_v13, %v7256_v36  ;;  %v1368_v28 = vrot.slane %v1288_v13, %v7253_v35  ;;  %v1500_v7 = vrot.slane %v7898_v53, %v7253_v35 }
 0x262   :  { %7063 = vrsqrt.f32 %v1149_v58  ;;  %v1405_v24 = vsel %vm652_vm8, %v1360_v20, %v1404_v2  ;;  %v1524_v21 = vrot.slane %v7898_v53, %v7256_v36  ;;  %v6677_v53 = vld [vmem:[%s9435_s7 + $0xe0] ss:$16 sps:$4 sm:$0xff]  }
 0x263   :  { %v1406_v61 = vsel %vm654_vm9, %v1364_v52, %v1405_v24  ;;  %v7920_v4 = vsel %vm656_vm10, %v1448_v54, %v1486_v49 }
 0x264   :  { %v7926_v6 = vsel %vm656_vm10, %v1368_v28, %v1406_v61 }
 0x26f   :  { %v7064_v10 = vpop.eup %7063 }
 0x270   :  { %v1154_v57 = vmul.f32 %v7064_v10, %v1126_v38  ;;  %v1155_v9 = vmul.f32 %v7064_v10, %v1127_v47  ;;  %v1508_v38 = vsel %vm650_vm7, %v1360_v20, %v1507_v3  ;;  %v1532_v47 = vsel %vm650_vm7, %v1440_v62, %v1531_v43 }
 0x271   :  { %v1509_v60 = vsel %vm652_vm8, %v1364_v52, %v1508_v38  ;;  %v1533_v58 = vsel %vm652_vm8, %v1444_v44, %v1532_v47 }
 0x272   :  { %vm1158_vm11 = vcmp.gt.f32.partialorder %v1154_v57, 0.0  ;;  %vm1159_vm12 = vcmp.gt.f32.partialorder %v1155_v9, 0.0  ;;  %v1162_v55 = vmul.f32 0.2, %v1154_v57  ;;  %v1163_v22 = vmul.f32 0.2, %v1155_v9 }
 0x273   :  { %v1510_v11 = vsel %vm654_vm9, %v1368_v28, %v1509_v60  ;;  %v1534_v0 = vsel %vm654_vm9, %v1448_v54, %v1533_v58 }
 0x274   :  { %v1166_v27 = vsel %vm1158_vm11, %v1154_v57, %v1162_v55  ;;  %v1167_v25 = vsel %vm1159_vm12, %v1155_v9, %v1163_v22 }
 0x275   :  { %v1240_v30 = vrot.slane %v1166_v27, 7  ;;  %v1241_v51 = vrot.slane %v1167_v25, 7 }
 0x277   :  { %v1248_v63 = vsel %vm339_vm2, 0.0, %v1240_v30  ;;  %v1242_v1 = vsel %vm339_vm2, %v1240_v30, %v1241_v51  ;;  %v1250_v29 = vsel %vm339_vm2, %v1241_v51, 0.0 }
 0x278   :  { %v1296_v33 = vcombine.high %v1248_v63, %v1248_v63  ;;  %v1303_v50 = vrot.slane %v1248_v63, %v7301_v19  ;;  %v1313_v32 = vcombine.high %v1242_v1, %v1242_v1  ;;  %v1320_v48 = vrot.slane %v1242_v1, %v7301_v19 }
 0x279   :  { %v1336_v14 = vrot.slane %v1250_v29, %v7301_v19 }
 0x27a   :  { %v1310_v18 = vrot.slane %v1296_v33, %v7301_v19  ;;  %v1311_v8 = vcombine.high %v1303_v50, %v1303_v50  ;;  %v1327_v42 = vrot.slane %v1313_v32, %v7301_v19  ;;  %v1372_v15 = vrot.slane %v1303_v50, %v7253_v35 }
 0x27b   :  { %v1328_v46 = vcombine.high %v1320_v48, %v1320_v48  ;;  %v1452_v23 = vrot.slane %v1303_v50, %v7256_v36  ;;  %v1468_v12 = vrot.slane %v1320_v48, %v7256_v36  ;;  %v1388_v19 = vrot.slane %v1320_v48, %v7253_v35 }
 0x27c   :  { %v1312_v59 = vcombine.high %v1310_v18, %v1310_v18  ;;  %v1329_v16 = vcombine.high %v1327_v42, %v1327_v42  ;;  %v1456_v45 = vrot.slane %v1311_v8, %v7256_v36  ;;  %v1460_v40 = vrot.slane %v1310_v18, %v7256_v36 }
 0x27d   :  { %v1472_v17 = vrot.slane %v1328_v46, %v7256_v36  ;;  %v1376_v37 = vrot.slane %v1311_v8, %v7253_v35  ;;  %v1380_v56 = vrot.slane %v1310_v18, %v7253_v35  ;;  %v1476_v10 = vrot.slane %v1327_v42, %v7256_v36 }
 0x27e   :  { %v1464_v5 = vrot.slane %v1312_v59, %v7256_v36  ;;  %v1488_v62 = vsel %vm644_vm4, %v1456_v45, %v1452_v23  ;;  %v1384_v3 = vrot.slane %v1312_v59, %v7253_v35  ;;  %v1480_v57 = vrot.slane %v1329_v16, %v7256_v36  ;;  %v6686_v59 = vld [vmem:[%s9435_s7 + $0x2c0] ss:$16 sps:$4 sm:$0xff]  }
 0x27f   :  { %v1489_v9 = vsel %vm646_vm5, %v1460_v40, %v1488_v62  ;;  %v1392_v2 = vrot.slane %v1328_v46, %v7253_v35  ;;  %v1396_v43 = vrot.slane %v1327_v42, %v7253_v35  ;;  %v1400_v44 = vrot.slane %v1329_v16, %v7253_v35  ;;  %v6691_v16 = vld [vmem:[%s9435_s7 + $0xa4] ss:$16 sps:$4 sm:$0xff]  }
 0x280   :  { %v1490_v13 = vsel %vm648_vm6, %v1464_v5, %v1489_v9  ;;  %v1408_v34 = vsel %vm644_vm4, %v1376_v37, %v1372_v15  ;;  %v1512_v20 = vsel %vm644_vm4, %v1380_v56, %v1376_v37  ;;  %v1504_v38 = vrot.slane %v1336_v14, %v7253_v35  ;;  %v6697_v37 = vld [vmem:[%s9435_s7 + $0x84] ss:$16 sps:$4 sm:$0xff]  }
 0x281   :  { %v1491_v55 = vsel %vm650_vm7, %v1468_v12, %v1490_v13  ;;  %v1409_v22 = vsel %vm646_vm5, %v1380_v56, %v1408_v34  ;;  %v1513_v24 = vsel %vm646_vm5, %v1384_v3, %v1512_v20  ;;  %v1536_v49 = vsel %vm644_vm4, %v1460_v40, %v1456_v45  ;;  %v6694_v45 = vld [vmem:[%s9435_s7 + $0x2a4] ss:$16 sps:$4 sm:$0xff]   ;;  %v6689_v40 = vld [vmem:[%s9435_s7 + $0xa0] ss:$16 sps:$4 sm:$0xff]  }
 0x282   :  { %v1492_v47 = vsel %vm652_vm8, %v1472_v17, %v1491_v55  ;;  %v1410_v27 = vsel %vm648_vm6, %v1384_v3, %v1409_v22  ;;  %v1514_v25 = vsel %vm648_vm6, %v1388_v19, %v1513_v24  ;;  %v1537_v54 = vsel %vm646_vm5, %v1464_v5, %v1536_v49  ;;  %v6700_v56 = vld [vmem:[%s9435_s7 + $0x284] ss:$16 sps:$4 sm:$0xff]   ;;  %v6698_v5 = vld [vmem:[%s9435_s7 + $0x280] ss:$16 sps:$4 sm:$0xff]  }
 0x283   :  { %v1493_v52 = vsel %vm654_vm9, %v1476_v10, %v1492_v47  ;;  %v1411_v30 = vsel %vm650_vm7, %v1388_v19, %v1410_v27  ;;  %v1515_v51 = vsel %vm650_vm7, %v1392_v2, %v1514_v25  ;;  %v1538_v58 = vsel %vm648_vm6, %v1468_v12, %v1537_v54  ;;  %v6682_v12 = vld [vmem:[%s9435_s7 + $0x2e4] ss:$16 sps:$4 sm:$0xff]   ;;  %v6695_v19 = vld [vmem:[%s9435_s7 + $0x80] ss:$16 sps:$4 sm:$0xff]  }
 0x284   :  { %v1494_v28 = vsel %vm656_vm10, %v1480_v57, %v1493_v52  ;;  %v1412_v61 = vsel %vm652_vm8, %v1392_v2, %v1411_v30  ;;  %v1516_v60 = vsel %vm652_vm8, %v1396_v43, %v1515_v51  ;;  %v1539_v33 = vsel %vm650_vm7, %v1472_v17, %v1538_v58  ;;  %4245 = vmatprep.subr.bf16.mxu0 %v6682_v12  ;;  %v6692_v17 = vld [vmem:[%s9435_s7 + $0x2a0] ss:$16 sps:$4 sm:$0xff]   ;;  %v6706_v62 = vld [vmem:[%s9435_s7 + $0x264] ss:$16 sps:$4 sm:$0xff]  }
 0x285   :  { %v1546_v63 = vpack.c.bf16 %v1494_v28, %v7920_v4  ;;  %v1413_v1 = vsel %vm654_vm9, %v1396_v43, %v1412_v61  ;;  %v1517_v29 = vsel %vm654_vm9, %v1400_v44, %v1516_v60  ;;  %v1528_v32 = vrot.slane %v1336_v14, %v7256_v36  ;;  %v6701_v3 = vld [vmem:[%s9435_s7 + $0x60] ss:$16 sps:$4 sm:$0xff]   ;;  %v6709_v9 = vld [vmem:[%s9435_s7 + $0x44] ss:$16 sps:$4 sm:$0xff]  }
 0x286   :  { %v1414_v50 = vsel %vm656_vm10, %v1400_v44, %v1413_v1  ;;  %v1540_v48 = vsel %vm652_vm8, %v1476_v10, %v1539_v33  ;;  %v1518_v18 = vsel %vm656_vm10, %v1504_v38, %v1517_v29  ;;  %v1511_v4 = vsel %vm656_vm10, %v1500_v7, %v1510_v11  ;;  %v6680_v7 = vld [vmem:[%s9435_s7 + $0x2e0] ss:$16 sps:$4 sm:$0xff]   ;;  %v6685_v11 = vld [vmem:[%s9435_s7 + $0xc4] ss:$16 sps:$4 sm:$0xff]  }
 0x287   :  { %1901 = vmatprep.mubr.bf16.mxu1 %v1546_v63  ;;  %v1545_v8 = vpack.c.bf16 %v1414_v50, %v7926_v6  ;;  %v1541_v42 = vsel %vm654_vm9, %v1480_v57, %v1540_v48  ;;  %v1535_v15 = vsel %vm656_vm10, %v1524_v21, %v1534_v0  ;;  %v1547_v23 = vpack.c.bf16 %v1518_v18, %v1511_v4  ;;  %v6679_v6 = vld [vmem:[%s9435_s7 + $0xe4] ss:$16 sps:$4 sm:$0xff]   ;;  %v6683_v0 = vld [vmem:[%s9435_s7 + $0xc0] ss:$16 sps:$4 sm:$0xff]  }
 0x288   :  { %v1542_v46 = vsel %vm656_vm10, %v1528_v32, %v1541_v42  ;;  %4202 = vmatprep.subr.bf16.mxu1 %v6679_v6  ;;  %v6688_v21 = vld [vmem:[%s9435_s7 + $0x2c4] ss:$16 sps:$4 sm:$0xff]   ;;  %v6704_v57 = vld [vmem:[%s9435_s7 + $0x260] ss:$16 sps:$4 sm:$0xff]   ;;  %vm2348_vm7 = vcmask 1045504   ;;  %vm2361_vm8 = vcmask 1044480  }
 0x289   :  { %1902 = vmatmul.mubr.bf16.vlgmr.msra.gmra.mxu1 %v1545_v8  ;;  %v1548_v14 = vpack.c.bf16 %v1542_v46, %v1535_v15  ;;  %v6703_v10 = vld [vmem:[%s9435_s7 + $0x64] ss:$16 sps:$4 sm:$0xff]   ;;  %v6707_v43 = vld [vmem:[%s9435_s7 + $0x40] ss:$16 sps:$4 sm:$0xff]  }
 0x28a   :  { %4203 = vmatpush1.bf16.msra.mxu1 %v6677_v53  ;;  %v6712_v2 = vld [vmem:[%s9435_s7 + $0x244] ss:$16 sps:$4 sm:$0xff]   ;;  %v6710_v13 = vld [vmem:[%s9435_s7 + $0x240] ss:$16 sps:$4 sm:$0xff]  }
 0x28b   :  { %1944 = vmatprep.mubr.bf16.mxu0 %v1548_v14  ;;  %4204 = vmatprep.subr.bf16.mxu1 %v6685_v11  ;;  %v6715_v44 = vld [vmem:[%s9435_s7 + $0x24] ss:$16 sps:$4 sm:$0xff]   ;;  %v6713_v20 = vld [vmem:[%s9435_s7 + $0x20] ss:$16 sps:$4 sm:$0xff]  }
 0x28c   :  { %1945 = vmatmul.mubr.bf16.vlgmr.msra.gmra.mxu0 %v1547_v23  ;;  %v6718_v34 = vld [vmem:[%s9435_s7 + $0x224] ss:$16 sps:$4 sm:$0xff]   ;;  %v6716_v55 = vld [vmem:[%s9435_s7 + $0x220] ss:$16 sps:$4 sm:$0xff]  }
 0x28d   :  { %4246 = vmatpush1.bf16.msra.mxu0 %v6680_v7  ;;  %v6721_v22 = vld [vmem:[%s9435_s7 + $0x4] ss:$16 sps:$4 sm:$0xff]   ;;  %v6719_v38 = vld [vmem:[%s9435_s7] ss:$16 sps:$4 sm:$0xff]  }
 0x28e   :  { %4247 = vmatprep.subr.bf16.mxu0 %v6688_v21  ;;  %4205 = vmatpush1.bf16.msra.mxu1 %v6683_v0  ;;  %v6724_v24 = vld [vmem:[%s9435_s7 + $0x204] ss:$16 sps:$4 sm:$0xff]   ;;  %v6722_v47 = vld [vmem:[%s9435_s7 + $0x200] ss:$16 sps:$4 sm:$0xff]  }
 0x28f   :  { %4206 = vmatprep.subr.bf16.mxu1 %v6691_v16  ;;  %v6727_v27 = vld [vmem:[%s9435_s7 + $0x1e4] ss:$16 sps:$4 sm:$0xff]   ;;  %v6725_v49 = vld [vmem:[%s9435_s7 + $0x1e0] ss:$16 sps:$4 sm:$0xff]  }
 0x290   :  { %v6730_v25 = vld [vmem:[%s9435_s7 + $0x3e4] ss:$16 sps:$4 sm:$0xff]   ;;  %v6728_v52 = vld [vmem:[%s9435_s7 + $0x3e0] ss:$16 sps:$4 sm:$0xff]  }
 0x291   :  { %4248 = vmatpush1.bf16.msra.mxu0 %v6686_v59  ;;  %v6733_v30 = vld [vmem:[%s9435_s7 + $0x1c4] ss:$16 sps:$4 sm:$0xff]   ;;  %v6731_v54 = vld [vmem:[%s9435_s7 + $0x1c0] ss:$16 sps:$4 sm:$0xff]  }
 0x292   :  { %4249 = vmatprep.subr.bf16.mxu0 %v6694_v45  ;;  %4207 = vmatpush1.bf16.msra.mxu1 %v6689_v40  ;;  %v6736_v51 = vld [vmem:[%s9435_s7 + $0x3c4] ss:$16 sps:$4 sm:$0xff]   ;;  %v6734_v28 = vld [vmem:[%s9435_s7 + $0x3c0] ss:$16 sps:$4 sm:$0xff]  }
 0x293   :  { %4208 = vmatprep.subr.bf16.mxu1 %v6697_v37  ;;  %v6739_v61 = vld [vmem:[%s9435_s7 + $0x1a4] ss:$16 sps:$4 sm:$0xff]   ;;  %v6737_v58 = vld [vmem:[%s9435_s7 + $0x1a0] ss:$16 sps:$4 sm:$0xff]  }
 0x294   :  { %v6742_v60 = vld [vmem:[%s9435_s7 + $0x3a4] ss:$16 sps:$4 sm:$0xff]   ;;  %v6740_v63 = vld [vmem:[%s9435_s7 + $0x3a0] ss:$16 sps:$4 sm:$0xff]  }
 0x295   :  { %4250 = vmatpush1.bf16.msra.mxu0 %v6692_v17  ;;  %v6745_v1 = vld [vmem:[%s9435_s7 + $0x184] ss:$16 sps:$4 sm:$0xff]   ;;  %v6743_v33 = vld [vmem:[%s9435_s7 + $0x180] ss:$16 sps:$4 sm:$0xff]  }
 0x296   :  { %4251 = vmatprep.subr.bf16.mxu0 %v6700_v56  ;;  %4209 = vmatpush1.bf16.msra.mxu1 %v6695_v19  ;;  %v6748_v29 = vld [vmem:[%s9435_s7 + $0x384] ss:$16 sps:$4 sm:$0xff]   ;;  %v6746_v50 = vld [vmem:[%s9435_s7 + $0x380] ss:$16 sps:$4 sm:$0xff]  }
 0x297   :  { %4210 = vmatprep.subr.bf16.mxu1 %v6703_v10  ;;  %v6751_v32 = vld [vmem:[%s9435_s7 + $0x164] ss:$16 sps:$4 sm:$0xff]   ;;  %v6749_v18 = vld [vmem:[%s9435_s7 + $0x160] ss:$16 sps:$4 sm:$0xff]  }
 0x298   :  { %v6754_v48 = vld [vmem:[%s9435_s7 + $0x364] ss:$16 sps:$4 sm:$0xff]   ;;  %v6752_v8 = vld [vmem:[%s9435_s7 + $0x360] ss:$16 sps:$4 sm:$0xff]  }
 0x299   :  { %4252 = vmatpush1.bf16.msra.mxu0 %v6698_v5  ;;  %v6757_v42 = vld [vmem:[%s9435_s7 + $0x144] ss:$16 sps:$4 sm:$0xff]   ;;  %v6755_v15 = vld [vmem:[%s9435_s7 + $0x140] ss:$16 sps:$4 sm:$0xff]  }
 0x29a   :  { %4253 = vmatprep.subr.bf16.mxu0 %v6706_v62  ;;  %4211 = vmatpush1.bf16.msra.mxu1 %v6701_v3  ;;  %v6760_v4 = vld [vmem:[%s9435_s7 + $0x344] ss:$16 sps:$4 sm:$0xff]   ;;  %v6758_v46 = vld [vmem:[%s9435_s7 + $0x340] ss:$16 sps:$4 sm:$0xff]  }
 0x29b   :  { %4212 = vmatprep.subr.bf16.mxu1 %v6709_v9  ;;  %v6763_v23 = vld [vmem:[%s9435_s7 + $0x124] ss:$16 sps:$4 sm:$0xff]   ;;  %v6761_v6 = vld [vmem:[%s9435_s7 + $0x120] ss:$16 sps:$4 sm:$0xff]  }
 0x29c   :  { %v6766_v14 = vld [vmem:[%s9435_s7 + $0x324] ss:$16 sps:$4 sm:$0xff]   ;;  %v6764_v12 = vld [vmem:[%s9435_s7 + $0x320] ss:$16 sps:$4 sm:$0xff]  }
 0x29d   :  { %4254 = vmatpush1.bf16.msra.mxu0 %v6704_v57  ;;  %v6769_v53 = vld [vmem:[%s9435_s7 + $0x104] ss:$16 sps:$4 sm:$0xff]   ;;  %v6767_v11 = vld [vmem:[%s9435_s7 + $0x100] ss:$16 sps:$4 sm:$0xff]  }
 0x29e   :  { %4255 = vmatprep.subr.bf16.mxu0 %v6712_v2  ;;  %4213 = vmatpush1.bf16.msra.mxu1 %v6707_v43  ;;  %v6772_v7 = vld [vmem:[%s9435_s7 + $0x304] ss:$16 sps:$4 sm:$0xff]   ;;  %v6770_v21 = vld [vmem:[%s9435_s7 + $0x300] ss:$16 sps:$4 sm:$0xff]  }
 0x29f   :  { %4214 = vmatprep.subr.bf16.mxu1 %v6715_v44  ;;  %v6775_v0 = vld [vmem:[%s9435_s7 + $0x4e4] ss:$16 sps:$4 sm:$0xff]   ;;  %v1232_v16 = vld [vmem:[%s9434_s6] sm:$0x3] }
 0x2a0   :  { %v6778_v59 = vld [vmem:[%s9435_s7 + $0x6e4] ss:$16 sps:$4 sm:$0xff]   ;;  %v1959_v40 = vrot.slane %v1232_v16, %v7253_v35  ;;  %v1963_v19 = vrot.slane %v1232_v16, %v7256_v36 }
 0x2a1   :  { %4256 = vmatpush1.bf16.msra.mxu0 %v6710_v13 }
 0x2a2   :  { %4257 = vmatprep.subr.bf16.mxu0 %v6718_v34  ;;  %4215 = vmatpush1.bf16.msra.mxu1 %v6713_v20 }
 0x2a3   :  { %4216 = vmatprep.subr.bf16.mxu1 %v6721_v22 }
 0x2a5   :  { %4258 = vmatpush1.bf16.msra.mxu0 %v6716_v55 }
 0x2a6   :  { %4259 = vmatprep.subr.bf16.mxu0 %v6724_v24  ;;  %4217 = vmatpush1.bf16.msra.mxu1 %v6719_v38 }
 0x2a7   :  { %4218 = vmatprep.subr.bf16.mxu1 %v6727_v27 }
 0x2a9   :  { %4260 = vmatpush1.bf16.msra.mxu0 %v6722_v47 }
 0x2aa   :  { %4261 = vmatprep.subr.bf16.mxu0 %v6730_v25  ;;  %4219 = vmatpush2.bf16.msra.mxu1 %v6725_v49 }
 0x2ab   :  { %4220 = vmatprep.subr.bf16.mxu1 %v6733_v30 }
 0x2ad   :  { %4262 = vmatpush2.bf16.msra.mxu0 %v6728_v52 }
 0x2ae   :  { %4263 = vmatprep.subr.bf16.mxu0 %v6736_v51  ;;  %4221 = vmatpush2.bf16.msra.mxu1 %v6731_v54 }
 0x2af   :  { %4222 = vmatprep.subr.bf16.mxu1 %v6739_v61 }
 0x2b1   :  { %4264 = vmatpush2.bf16.msra.mxu0 %v6734_v28 }
 0x2b2   :  { %4265 = vmatprep.subr.bf16.mxu0 %v6742_v60  ;;  %4223 = vmatpush2.bf16.msra.mxu1 %v6737_v58 }
 0x2b3   :  { %4224 = vmatprep.subr.bf16.mxu1 %v6745_v1 }
 0x2b5   :  { %4266 = vmatpush2.bf16.msra.mxu0 %v6740_v63 }
 0x2b6   :  { %4267 = vmatprep.subr.bf16.mxu0 %v6748_v29  ;;  %4225 = vmatpush2.bf16.msra.mxu1 %v6743_v33 }
 0x2b7   :  { %4226 = vmatprep.subr.bf16.mxu1 %v6751_v32 }
 0x2b9   :  { %4268 = vmatpush2.bf16.msra.mxu0 %v6746_v50 }
 0x2ba   :  { %4269 = vmatprep.subr.bf16.mxu0 %v6754_v48  ;;  %4227 = vmatpush2.bf16.msra.mxu1 %v6749_v18 }
 0x2bb   :  { %4228 = vmatprep.subr.bf16.mxu1 %v6757_v42 }
 0x2bd   :  { %4270 = vmatpush2.bf16.msra.mxu0 %v6752_v8 }
 0x2be   :  { %4271 = vmatprep.subr.bf16.mxu0 %v6760_v4  ;;  %4229 = vmatpush2.bf16.msra.mxu1 %v6755_v15 }
 0x2bf   :  { %4230 = vmatprep.subr.bf16.mxu1 %v6763_v23 }
 0x2c1   :  { %4272 = vmatpush2.bf16.msra.mxu0 %v6758_v46 }
 0x2c2   :  { %4273 = vmatprep.subr.bf16.mxu0 %v6766_v14  ;;  %4231 = vmatpush2.bf16.msra.mxu1 %v6761_v6 }
 0x2c3   :  { %4232 = vmatprep.subr.bf16.mxu1 %v6769_v53 }
 0x2c5   :  { %4274 = vmatpush2.bf16.msra.mxu0 %v6764_v12 }
 0x2c6   :  { %4275 = vmatprep.subr.bf16.mxu0 %v6772_v7  ;;  %4233 = vmatpush2.bf16.msra.mxu1 %v6767_v11 }
 0x2c7   :  { %4288 = vmatprep.subr.bf16.mxu1 %v6775_v0 }
 0x2c9   :  { %4276 = vmatpush2.bf16.msra.mxu0 %v6770_v21 }
 0x2ca   :  { %4331 = vmatprep.subr.bf16.mxu0 %v6778_v59 }
 0x349   :  { %v1903_v45 = vpop.f32.mrf.mxu1 }
 0x34b   :  { %v1905_v17 = vpop.f32.mrf.mxu1 }
 0x34c   :  { %v1946_v37 = vpop.f32.mrf.mxu0 }
 0x34d   :  { %v1947_v56 = vadd.f32 %v1946_v37, %v1903_v45  ;;  %v1907_v5 = vpop.f32.mrf.mxu1 }
 0x34e   :  { %v1948_v10 = vpop.f32.mrf.mxu0 }
 0x34f   :  { %v1966_v62 = vadd.f32 %v1959_v40, %v1947_v56  ;;  %v1949_v3 = vadd.f32 %v1948_v10, %v1905_v17  ;;  %v1909_v9 = vpop.f32.mrf.mxu1 }
 0x350   :  { %v1950_v57 = vpop.f32.mrf.mxu0 }
 0x351   :  { %v1970_v2 = vrot.slane %v1966_v62, 4  ;;  %v1967_v43 = vadd.f32 %v1963_v19, %v1949_v3  ;;  %v1951_v13 = vadd.f32 %v1950_v57, %v1907_v5 }
 0x352   :  { %v1952_v44 = vpop.f32.mrf.mxu0 }
 0x353   :  { %v1971_v34 = vadd.f32 %v1970_v2, %v1966_v62  ;;  %v1976_v20 = vrot.slane %v1967_v43, 4  ;;  %v1968_v55 = vadd.f32 %v1959_v40, %v1951_v13  ;;  %v1953_v22 = vadd.f32 %v1952_v44, %v1909_v9 }
 0x355   :  { %v1972_v24 = vrot.slane %v1971_v34, 2  ;;  %v1977_v38 = vadd.f32 %v1976_v20, %v1967_v43  ;;  %v1982_v47 = vrot.slane %v1968_v55, 4  ;;  %v1969_v27 = vadd.f32 %v1963_v19, %v1953_v22 }
 0x357   :  { %v1973_v25 = vadd.f32 %v1972_v24, %v1971_v34  ;;  %v1978_v49 = vrot.slane %v1977_v38, 2  ;;  %v1983_v52 = vadd.f32 %v1982_v47, %v1968_v55  ;;  %v1988_v30 = vrot.slane %v1969_v27, 4 }
 0x359   :  { %v1974_v51 = vrot.slane %v1973_v25, 1  ;;  %v1979_v54 = vadd.f32 %v1978_v49, %v1977_v38  ;;  %v1984_v28 = vrot.slane %v1983_v52, 2  ;;  %v1989_v61 = vadd.f32 %v1988_v30, %v1969_v27 }
 0x35b   :  { %v1975_v60 = vadd.f32 %v1974_v51, %v1973_v25  ;;  %v1980_v58 = vrot.slane %v1979_v54, 1  ;;  %v1985_v63 = vadd.f32 %v1984_v28, %v1983_v52  ;;  %v1990_v1 = vrot.slane %v1989_v61, 2 }
 0x35c   :  { %v7117_v51 = vmov 1966171168  }
 0x35d   :  { %v1995_v29 = vmul.f32 0.125, %v1975_v60  ;;  %v1981_v33 = vadd.f32 %v1980_v58, %v1979_v54  ;;  %v1986_v50 = vrot.slane %v1985_v63, 1  ;;  %v1991_v32 = vadd.f32 %v1990_v1, %v1989_v61 }
 0x35e   :  { %v2383_v54 = vunpack.c.l.s4 %v7117_v51 }
 0x35f   :  { %v1999_v48 = vsub.f32 %v1966_v62, %v1995_v29  ;;  %v1996_v18 = vmul.f32 0.125, %v1981_v33  ;;  %v1987_v8 = vadd.f32 %v1986_v50, %v1985_v63  ;;  %v1992_v42 = vrot.slane %v1991_v32, 1 }
 0x360   :  { %v2384_v58 = vunpack.c.0.s8 %v2383_v54 }
 0x361   :  { %v2003_v4 = vmul.f32 %v1999_v48, %v1999_v48  ;;  %v2000_v15 = vsub.f32 %v1967_v43, %v1996_v18  ;;  %v1997_v46 = vmul.f32 0.125, %v1987_v8  ;;  %v1993_v23 = vadd.f32 %v1992_v42, %v1991_v32 }
 0x362   :  { %v8192_v8 = vsub.s32 %v2384_v58, %v7242_v31 }
 0x363   :  { %v2007_v14 = vrot.slane %v2003_v4, 4  ;;  %v2004_v6 = vmul.f32 %v2000_v15, %v2000_v15  ;;  %v2001_v12 = vsub.f32 %v1968_v55, %v1997_v46  ;;  %v1998_v53 = vmul.f32 0.125, %v1993_v23 }
 0x365   :  { %v2008_v7 = vadd.f32 %v2007_v14, %v2003_v4  ;;  %v2013_v11 = vrot.slane %v2004_v6, 4  ;;  %v2005_v21 = vmul.f32 %v2001_v12, %v2001_v12  ;;  %v2002_v0 = vsub.f32 %v1969_v27, %v1998_v53 }
 0x367   :  { %v2009_v59 = vrot.slane %v2008_v7, 2  ;;  %v2014_v16 = vadd.f32 %v2013_v11, %v2004_v6  ;;  %v2019_v45 = vrot.slane %v2005_v21, 4  ;;  %v2006_v40 = vmul.f32 %v2002_v0, %v2002_v0 }
 0x369   :  { %v2010_v17 = vadd.f32 %v2009_v59, %v2008_v7  ;;  %v2015_v37 = vrot.slane %v2014_v16, 2  ;;  %v2020_v56 = vadd.f32 %v2019_v45, %v2005_v21  ;;  %v2025_v19 = vrot.slane %v2006_v40, 4 }
 0x36b   :  { %v2011_v5 = vrot.slane %v2010_v17, 1  ;;  %v2016_v10 = vadd.f32 %v2015_v37, %v2014_v16  ;;  %v2021_v62 = vrot.slane %v2020_v56, 2  ;;  %v2026_v3 = vadd.f32 %v2025_v19, %v2006_v40 }
 0x36d   :  { %v2012_v57 = vadd.f32 %v2011_v5, %v2010_v17  ;;  %v2017_v9 = vrot.slane %v2016_v10, 1  ;;  %v2022_v2 = vadd.f32 %v2021_v62, %v2020_v56  ;;  %v2027_v43 = vrot.slane %v2026_v3, 2 }
 0x36f   :  { %v2031_v13 = vmul.f32 0.125, %v2012_v57  ;;  %v2018_v44 = vadd.f32 %v2017_v9, %v2016_v10  ;;  %v2023_v34 = vrot.slane %v2022_v2, 1  ;;  %v2028_v20 = vadd.f32 %v2027_v43, %v2026_v3 }
 0x371   :  { %v2035_v55 = vadd.f32 1e-05, %v2031_v13  ;;  %v2032_v22 = vmul.f32 0.125, %v2018_v44  ;;  %v2024_v24 = vadd.f32 %v2023_v34, %v2022_v2  ;;  %v2029_v38 = vrot.slane %v2028_v20, 1 }
 0x373   :  { %7065 = vrsqrt.f32 %v2035_v55  ;;  %v2036_v47 = vadd.f32 1e-05, %v2032_v22  ;;  %v2033_v27 = vmul.f32 0.125, %v2024_v24  ;;  %v2030_v25 = vadd.f32 %v2029_v38, %v2028_v20 }
 0x375   :  { %7067 = vrsqrt.f32 %v2036_v47  ;;  %v2037_v49 = vadd.f32 1e-05, %v2033_v27  ;;  %v2034_v52 = vmul.f32 0.125, %v2030_v25 }
 0x377   :  { %7069 = vrsqrt.f32 %v2037_v49  ;;  %v2038_v30 = vadd.f32 1e-05, %v2034_v52 }
 0x379   :  { %7071 = vrsqrt.f32 %v2038_v30 }
 0x380   :  { %v7066_v28 = vpop.eup %7065 }
 0x381   :  { %v2043_v61 = vmul.f32 %v7066_v28, %v1999_v48 }
 0x382   :  { %v7068_v60 = vpop.eup %7067 }
 0x383   :  { %vm2047_vm5 = vcmp.gt.f32.partialorder %v2043_v61, 0.0  ;;  %v2051_v63 = vmul.f32 0.2, %v2043_v61  ;;  %v2044_v1 = vmul.f32 %v7068_v60, %v2000_v15 }
 0x384   :  { %v7070_v29 = vpop.eup %7069 }
 0x385   :  { %v2055_v33 = vsel %vm2047_vm5, %v2043_v61, %v2051_v63  ;;  %vm2048_vm6 = vcmp.gt.f32.partialorder %v2044_v1, 0.0  ;;  %v2052_v50 = vmul.f32 0.2, %v2044_v1  ;;  %v2045_v32 = vmul.f32 %v7070_v29, %v2001_v12 }
 0x386   :  { %v7072_v18 = vpop.eup %7071  ;;  %v2320_v42 = vrot.slane %v2055_v33, 7 }
 0x387   :  { %v2056_v4 = vsel %vm2048_vm6, %v2044_v1, %v2052_v50  ;;  %vm2049_vm9 = vcmp.gt.f32.partialorder %v2045_v32, 0.0  ;;  %v2053_v48 = vmul.f32 0.2, %v2045_v32  ;;  %v2046_v14 = vmul.f32 %v7072_v18, %v2002_v0 }
 0x388   :  { %v2328_v46 = vsel %vm339_vm2, 0.0, %v2320_v42  ;;  %v2332_v23 = vsel %vm339_vm2, %v2320_v42, 0.0  ;;  %v2321_v15 = vrot.slane %v2056_v4, 7 }
 0x389   :  { %v2340_v6 = vrot.slane %v2328_v46, 1  ;;  %v2349_v53 = vrot.slane %v2328_v46, 2  ;;  %v2350_v7 = vrot.slane %v2332_v23, 2  ;;  %v2362_v12 = vrot.slane %v2328_v46, 3 }
 0x38a   :  { %v2363_v11 = vrot.slane %v2332_v23, 3  ;;  %v2329_v21 = vsel %vm339_vm2, 0.0, %v2321_v15  ;;  %v2333_v59 = vsel %vm339_vm2, %v2321_v15, 0.0  ;;  %v2057_v16 = vsel %vm2049_vm9, %v2045_v32, %v2053_v48 }
 0x38b   :  { %v8199_v45 = vsel %vm2348_vm7, %v2349_v53, %v2350_v7  ;;  %v2341_v40 = vrot.slane %v2329_v21, 1  ;;  %v2352_v17 = vrot.slane %v2329_v21, 2  ;;  %v2353_v37 = vrot.slane %v2333_v59, 2 }
 0x38c   :  { %v8202_v56 = vsel %vm2361_vm8, %v2362_v12, %v2363_v11  ;;  %v2365_v0 = vrot.slane %v2329_v21, 3  ;;  %v2366_v19 = vrot.slane %v2333_v59, 3  ;;  %v2322_v5 = vrot.slane %v2057_v16, 7 }
 0x38d   :  { %v8205_v10 = vsel %vm2348_vm7, %v2352_v17, %v2353_v37  ;;  %vm2050_vm10 = vcmp.gt.f32.partialorder %v2046_v14, 0.0  ;;  %v2054_v62 = vmul.f32 0.2, %v2046_v14  ;;  %v2374_v3 = vcombine.low %v2328_v46, %v2329_v21 }
 0x38e   :  { %v8208_v57 = vsel %vm2361_vm8, %v2365_v0, %v2366_v19  ;;  %v2379_v9 = vcombine.high %v8199_v45, %v8205_v10  ;;  %v2330_v2 = vsel %vm339_vm2, 0.0, %v2322_v5  ;;  %v2334_v43 = vsel %vm339_vm2, %v2322_v5, 0.0 }
 0x38f   :  { %v2381_v13 = vcombine.high %v8202_v56, %v8208_v57  ;;  %v2342_v44 = vrot.slane %v2330_v2, 1  ;;  %v2355_v34 = vrot.slane %v2330_v2, 2  ;;  %v2356_v20 = vrot.slane %v2334_v43, 2 }
 0x390   :  { %v8217_v55 = vrot.slane %v2379_v9, %v8192_v8  ;;  %v2368_v22 = vrot.slane %v2330_v2, 3  ;;  %v2369_v24 = vrot.slane %v2334_v43, 3  ;;  %v2058_v38 = vsel %vm2050_vm10, %v2046_v14, %v2054_v62 }
 0x391   :  { %v8220_v47 = vrot.slane %v2381_v13, %v8192_v8  ;;  %v2357_v27 = vsel %vm2348_vm7, %v2355_v34, %v2356_v20  ;;  %v2323_v25 = vrot.slane %v2058_v38, 7  ;;  %v2375_v49 = vcombine.high %v2328_v46, %v2329_v21 }
 0x392   :  { %v2370_v52 = vsel %vm2361_vm8, %v2368_v22, %v2369_v24  ;;  %v2376_v30 = vcombine.low %v2340_v6, %v2341_v40  ;;  %v2377_v51 = vcombine.high %v2340_v6, %v2341_v40  ;;  %v2388_v54 = vrot.slane %v2374_v3, %v8192_v8 }
 0x393   :  { %v2331_v28 = vsel %vm339_vm2, 0.0, %v2323_v25  ;;  %v2335_v61 = vsel %vm339_vm2, %v2323_v25, 0.0  ;;  %v2395_v60 = vrot.slane %v2375_v49, %v8192_v8  ;;  %v2444_v58 = vcombine.low %v8217_v55, %v8220_v47 }
 0x394   :  { %v2343_v63 = vrot.slane %v2331_v28, 1  ;;  %v2358_v1 = vrot.slane %v2331_v28, 2  ;;  %v2359_v29 = vrot.slane %v2335_v61, 2  ;;  %v2371_v33 = vrot.slane %v2331_v28, 3 }
 0x395   :  { %v2372_v50 = vrot.slane %v2335_v61, 3  ;;  %v2509_v32 = vcombine.low %v2330_v2, %v2331_v28  ;;  %v2402_v18 = vrot.slane %v2376_v30, %v8192_v8  ;;  %v2409_v42 = vrot.slane %v2377_v51, %v8192_v8 }
 0x396   :  { %v2360_v4 = vsel %vm2348_vm7, %v2358_v1, %v2359_v29  ;;  %v2511_v48 = vcombine.low %v2342_v44, %v2343_v63  ;;  %v8234_v46 = vrot.slane %v2444_v58, %v8192_v8  ;;  %v2510_v23 = vcombine.high %v2330_v2, %v2331_v28 }
 0x397   :  { %v2373_v15 = vsel %vm2361_vm8, %v2371_v33, %v2372_v50  ;;  %v2513_v14 = vcombine.low %v2357_v27, %v2360_v4  ;;  %v2514_v6 = vcombine.high %v2357_v27, %v2360_v4  ;;  %v2438_v53 = vcombine.low %v2388_v54, %v2402_v18 }
 0x398   :  { %v2515_v7 = vcombine.low %v2370_v52, %v2373_v15  ;;  %v2516_v12 = vcombine.high %v2370_v52, %v2373_v15  ;;  %v2439_v11 = vcombine.high %v2388_v54, %v2402_v18  ;;  %v2440_v21 = vcombine.low %v2395_v60, %v2409_v42 }
 0x399   :  { %v2551_v59 = vrot.slane %v2513_v14, %v8192_v8  ;;  %v8239_v16 = vrot.slane %v2514_v6, %v8192_v8  ;;  %v2441_v40 = vcombine.high %v2395_v60, %v2409_v42  ;;  %v2452_v17 = vrot.slane %v2438_v53, %v8192_v8 }
 0x39a   :  { %v2565_v37 = vrot.slane %v2515_v7, %v8192_v8  ;;  %v8244_v0 = vrot.slane %v2516_v12, %v8192_v8  ;;  %v2459_v19 = vrot.slane %v2440_v21, %v8192_v8  ;;  %v2466_v5 = vrot.slane %v2439_v11, %v8192_v8 }
 0x39b   :  { %v2473_v62 = vrot.slane %v2441_v40, %v8192_v8  ;;  %v2512_v3 = vcombine.high %v2342_v44, %v2343_v63  ;;  %v2523_v9 = vrot.slane %v2509_v32, %v8192_v8  ;;  %v2530_v2 = vrot.slane %v2510_v23, %v8192_v8 }
 0x39c   :  { %v2505_v43 = vcombine.high %v2459_v19, %v8234_v46  ;;  %v2537_v13 = vrot.slane %v2511_v48, %v8192_v8  ;;  %v2577_v34 = vcombine.low %v2551_v59, %v2565_v37  ;;  %v2578_v20 = vcombine.high %v2551_v59, %v2565_v37 }
 0x39d   :  { %v2544_v22 = vrot.slane %v2512_v3, %v8192_v8  ;;  %v2579_v24 = vcombine.low %v8239_v16, %v8244_v0  ;;  %v6218_v38 = vcombine.low %v2452_v17, %v2466_v5  ;;  %v6220_v27 = vcombine.high %v2452_v17, %v2466_v5 }
 0x39e   :  { %v2573_v25 = vcombine.low %v2523_v9, %v2537_v13  ;;  %v2574_v49 = vcombine.high %v2523_v9, %v2537_v13  ;;  %v8257_v44 = vrot.slane %v2577_v34, %v8192_v8  ;;  %v8260_v52 = vrot.slane %v2578_v20, %v8192_v8 }
 0x39f   :  { %v2575_v30 = vcombine.low %v2530_v2, %v2544_v22  ;;  %v2576_v51 = vcombine.high %v2530_v2, %v2544_v22  ;;  %v8263_v54 = vrot.slane %v2579_v24, %v8192_v8  ;;  %v6222_v28 = vcombine.low %v2459_v19, %v2473_v62 }
 0x3a0   :  { %v2587_v61 = vrot.slane %v2573_v25, %v8192_v8  ;;  %v8267_v60 = vrot.slane %v2574_v49, %v8192_v8  ;;  %v2658_v58 = vrot.slane %v6218_v38, %v8192_v8  ;;  %v2672_v63 = vrot.slane %v6220_v27, %v8192_v8 }
 0x3a1   :  { %v8272_v1 = vrot.slane %v2575_v30, %v8192_v8  ;;  %v8275_v29 = vrot.slane %v2576_v51, %v8192_v8  ;;  %v2686_v33 = vrot.slane %v6222_v28, %v8192_v8  ;;  %v2378_v50 = vcombine.low %v8199_v45, %v8205_v10 }
 0x3a2   :  { %v2638_v32 = vcombine.high %v2587_v61, %v8257_v44  ;;  %v2642_v18 = vcombine.high %v8267_v60, %v8260_v52  ;;  %v6224_v42 = vcombine.low %v2505_v43, %v2587_v61  ;;  %v2709_v4 = vcombine.high %v2658_v58, %v2672_v63 }
 0x3a3   :  { %v2640_v48 = vcombine.high %v8272_v1, %v8263_v54  ;;  %v2708_v23 = vcombine.low %v2658_v58, %v2672_v63  ;;  %v2380_v15 = vcombine.low %v8202_v56, %v8208_v57  ;;  %v2416_v14 = vrot.slane %v2378_v50, %v8192_v8 }
 0x3a4   :  { %v2700_v6 = vrot.slane %v6224_v42, %v8192_v8  ;;  %v2736_v45 = vrot.slane %v2709_v4, %v8192_v8  ;;  %v6226_v10 = vcombine.low %v8267_v60, %v2638_v32  ;;  %v6228_v53 = vcombine.low %v2642_v18, %v8272_v1 }
 0x3a5   :  { %v6230_v7 = vcombine.low %v8275_v29, %v2640_v48  ;;  %v2722_v12 = vrot.slane %v2708_v23, %v8192_v8  ;;  %v2430_v11 = vrot.slane %v2380_v15, %v8192_v8  ;;  %v2445_v21 = vcombine.high %v8217_v55, %v8220_v47 }
 0x3a6   :  { %v2713_v56 = vcombine.high %v2686_v33, %v2700_v6  ;;  %v2792_v57 = vrot.slane %v6226_v10, %v8192_v8  ;;  %v2806_v59 = vrot.slane %v6228_v53, %v8192_v8  ;;  %v2712_v40 = vcombine.low %v2686_v33, %v2700_v6  ;;  %v6784_v10 = vld [vmem:[%s9435_s7 + $0x6c4] ss:$16 sps:$4 sm:$0xff]  }
 0x3a7   :  { %v2820_v17 = vrot.slane %v6230_v7, %v8192_v8  ;;  %v2442_v37 = vcombine.low %v2416_v14, %v2430_v11  ;;  %v2443_v19 = vcombine.high %v2416_v14, %v2430_v11  ;;  %v2501_v5 = vrot.slane %v2445_v21, %v8192_v8 }
 0x3a8   :  { %v2764_v62 = vrot.slane %v2713_v56, %v8192_v8  ;;  %v2829_v3 = vcombine.high %v2792_v57, %v2806_v59  ;;  %v2750_v9 = vrot.slane %v2712_v40, %v8192_v8  ;;  %v2828_v2 = vcombine.low %v2792_v57, %v2806_v59  ;;  %v6782_v57 = vld [vmem:[%s9435_s7 + $0x6c0] ss:$16 sps:$4 sm:$0xff]   ;;  %v6787_v59 = vld [vmem:[%s9435_s7 + $0x4a4] ss:$16 sps:$4 sm:$0xff]  }
 0x3a9   :  { %v2832_v43 = vcombine.high %v2820_v17, %v2820_v17  ;;  %v2868_v55 = vrot.slane %v2820_v17, %v8192_v8  ;;  %v2480_v47 = vrot.slane %v2442_v37, %v8192_v8  ;;  %v2494_v13 = vrot.slane %v2443_v19, %v8192_v8  ;;  %v6790_v40 = vld [vmem:[%s9435_s7 + $0x6a4] ss:$16 sps:$4 sm:$0xff]  }
 0x3aa   :  { %v2776_v34 = vcombine.low %v2736_v45, %v2764_v62  ;;  %v2854_v20 = vrot.slane %v2829_v3, %v8192_v8  ;;  %v2777_v22 = vcombine.high %v2736_v45, %v2764_v62  ;;  %v2772_v24 = vcombine.low %v2722_v12, %v2750_v9  ;;  %v6781_v45 = vld [vmem:[%s9435_s7 + $0x4c4] ss:$16 sps:$4 sm:$0xff]   ;;  %v6785_v3 = vld [vmem:[%s9435_s7 + $0x4a0] ss:$16 sps:$4 sm:$0xff]  }
 0x3ab   :  { %v2882_v38 = vrot.slane %v2832_v43, %v8192_v8  ;;  %v2840_v27 = vrot.slane %v2828_v2, %v8192_v8  ;;  %v2773_v25 = vcombine.high %v2722_v12, %v2750_v9  ;;  %v2580_v49 = vcombine.high %v8239_v16, %v8244_v0  ;;  %v6788_v9 = vld [vmem:[%s9435_s7 + $0x6a0] ss:$16 sps:$4 sm:$0xff]  }
 0x3ac   :  { %v2637_v30 = vcombine.low %v2587_v61, %v8257_v44  ;;  %v2639_v51 = vcombine.low %v8272_v1, %v8263_v54  ;;  %v2641_v28 = vcombine.low %v8267_v60, %v8260_v52  ;;  %v6219_v58 = vcombine.low %v2480_v47, %v2494_v13  ;;  %v6773_v60 = vld [vmem:[%s9435_s7 + $0x4e0] ss:$16 sps:$4 sm:$0xff]  }
 0x3ad   :  { %v2894_v63 = vcombine.low %v2854_v20, %v2882_v38  ;;  %v2895_v33 = vcombine.high %v2854_v20, %v2882_v38  ;;  %v2890_v50 = vcombine.low %v2840_v27, %v2868_v55  ;;  %v2891_v32 = vcombine.high %v2840_v27, %v2868_v55  ;;  %v6776_v1 = vld [vmem:[%s9435_s7 + $0x6e0] ss:$16 sps:$4 sm:$0xff]  }
 0x3ae   :  { %v2636_v18 = vrot.slane %v2580_v49, %v8192_v8  ;;  %v6221_v42 = vcombine.high %v2480_v47, %v2494_v13  ;;  %v6223_v4 = vcombine.low %v8234_v46, %v2501_v5  ;;  %v6225_v16 = vcombine.high %v8234_v46, %v2637_v30  ;;  %v6793_v47 = vld [vmem:[%s9435_s7 + $0x484] ss:$16 sps:$4 sm:$0xff]   ;;  %v6797_v30 = vld [vmem:[%s9435_s7 + $0x460] ss:$16 sps:$4 sm:$0xff]  }
 0x3af   :  { %v8319_v0 = vpack.c.bf16 %v2894_v63, %v2776_v34  ;;  %v8321_v61 = vpack.c.bf16 %v2895_v33, %v2777_v22  ;;  %v8329_v48 = vpack.c.bf16 %v2890_v50, %v2772_v24  ;;  %v8331_v23 = vpack.c.bf16 %v2891_v32, %v2773_v25  ;;  %v6796_v13 = vld [vmem:[%s9435_s7 + $0x684] ss:$16 sps:$4 sm:$0xff]   ;;  %v6791_v22 = vld [vmem:[%s9435_s7 + $0x480] ss:$16 sps:$4 sm:$0xff]  }
 0x3b0   :  { %v2643_v15 = vcombine.low %v8275_v29, %v2636_v18  ;;  %v8335_v46 = vrot.slane %v6219_v58, %v8192_v8  ;;  %v8338_v14 = vrot.slane %v6221_v42, %v8192_v8  ;;  %v8341_v6 = vrot.slane %v6223_v4, %v8192_v8  ;;  %v6794_v24 = vld [vmem:[%s9435_s7 + $0x680] ss:$16 sps:$4 sm:$0xff]   ;;  %v6799_v25 = vld [vmem:[%s9435_s7 + $0x464] ss:$16 sps:$4 sm:$0xff]  }
 0x3b1   :  { %4234 = vmatprep.mubr.bf16.mxu1 %v8319_v0  ;;  %4277 = vmatprep.mubr.bf16.mxu0 %v8321_v61  ;;  %v8352_v29 = vrot.slane %v6225_v16, %v8192_v8  ;;  %v6227_v53 = vcombine.high %v2641_v28, %v8257_v44  ;;  %v6229_v7 = vcombine.high %v8260_v52, %v2639_v51  ;;  %v6779_v52 = vld [vmem:[%s9435_s7 + $0x4c0] ss:$16 sps:$4 sm:$0xff]   ;;  %v6802_v49 = vld [vmem:[%s9435_s7 + $0x664] ss:$16 sps:$4 sm:$0xff]  }
 0x3b2   :  { %4235 = vmatmul.mubr.bf16.vlgmr.msra.gmra.mxu1 %v8329_v48  ;;  %4278 = vmatmul.mubr.bf16.vlgmr.msra.gmra.mxu0 %v8331_v23  ;;  %v2711_v12 = vcombine.high %v8335_v46, %v8338_v14  ;;  %v6231_v11 = vcombine.high %v2643_v15, %v8263_v54  ;;  %v6800_v51 = vld [vmem:[%s9435_s7 + $0x660] ss:$16 sps:$4 sm:$0xff]   ;;  %v6805_v28 = vld [vmem:[%s9435_s7 + $0x444] ss:$16 sps:$4 sm:$0xff]  }
 0x3b3   :  { %4289 = vmatpush1.bf16.msra.mxu1 %v6773_v60  ;;  %4332 = vmatpush1.bf16.msra.mxu0 %v6776_v1  ;;  %v2715_v21 = vcombine.high %v8341_v6, %v8352_v29  ;;  %v8364_v56 = vrot.slane %v6227_v53, %v8192_v8  ;;  %v8367_v44 = vrot.slane %v6229_v7, %v8192_v8  ;;  %v6808_v58 = vld [vmem:[%s9435_s7 + $0x644] ss:$16 sps:$4 sm:$0xff]   ;;  %v6803_v63 = vld [vmem:[%s9435_s7 + $0x440] ss:$16 sps:$4 sm:$0xff]  }
 0x3b4   :  { %v8376_v54 = vrot.slane %v6231_v11, %v8192_v8  ;;  %4290 = vmatprep.subr.bf16.mxu1 %v6781_v45  ;;  %4333 = vmatprep.subr.bf16.mxu0 %v6784_v10  ;;  %v2743_v19 = vrot.slane %v2711_v12, %v8192_v8  ;;  %v6806_v33 = vld [vmem:[%s9435_s7 + $0x640] ss:$16 sps:$4 sm:$0xff]   ;;  %v6811_v50 = vld [vmem:[%s9435_s7 + $0x424] ss:$16 sps:$4 sm:$0xff]  }
 0x3b5   :  { %v2771_v17 = vrot.slane %v2715_v21, %v8192_v8  ;;  %v2831_v37 = vcombine.high %v8364_v56, %v8367_v44  ;;  %v6814_v32 = vld [vmem:[%s9435_s7 + $0x624] ss:$16 sps:$4 sm:$0xff]   ;;  %v6809_v18 = vld [vmem:[%s9435_s7 + $0x420] ss:$16 sps:$4 sm:$0xff]  }
 0x3b6   :  { %v2833_v5 = vcombine.high %v8376_v54, %v8376_v54  ;;  %v6812_v42 = vld [vmem:[%s9435_s7 + $0x620] ss:$16 sps:$4 sm:$0xff]   ;;  %v6817_v4 = vld [vmem:[%s9435_s7 + $0x404] ss:$16 sps:$4 sm:$0xff]  }
 0x3b7   :  { %v2861_v62 = vrot.slane %v2831_v37, %v8192_v8  ;;  %4291 = vmatpush1.bf16.msra.mxu1 %v6779_v52  ;;  %4334 = vmatpush1.bf16.msra.mxu0 %v6782_v57  ;;  %v2778_v2 = vcombine.low %v2743_v19, %v2771_v17  ;;  %v2779_v55 = vcombine.high %v2743_v19, %v2771_v17  ;;  %v6820_v16 = vld [vmem:[%s9435_s7 + $0x604] ss:$16 sps:$4 sm:$0xff]   ;;  %v6815_v60 = vld [vmem:[%s9435_s7 + $0x400] ss:$16 sps:$4 sm:$0xff]  }
 0x3b8   :  { %v2889_v43 = vrot.slane %v2833_v5, %v8192_v8  ;;  %4292 = vmatprep.subr.bf16.mxu1 %v6787_v59  ;;  %4335 = vmatprep.subr.bf16.mxu0 %v6790_v40  ;;  %v6818_v1 = vld [vmem:[%s9435_s7 + $0x600] ss:$16 sps:$4 sm:$0xff]   ;;  %v6823_v15 = vld [vmem:[%s9435_s7 + $0x5e4] ss:$16 sps:$4 sm:$0xff]  }
 0x3b9   :  { %v6826_v45 = vld [vmem:[%s9435_s7 + $0x7e4] ss:$16 sps:$4 sm:$0xff]   ;;  %v6821_v10 = vld [vmem:[%s9435_s7 + $0x5e0] ss:$16 sps:$4 sm:$0xff]  }
 0x3ba   :  { %v2896_v34 = vcombine.low %v2861_v62, %v2889_v43  ;;  %v2897_v20 = vcombine.high %v2861_v62, %v2889_v43  ;;  %v6824_v53 = vld [vmem:[%s9435_s7 + $0x7e0] ss:$16 sps:$4 sm:$0xff]   ;;  %v6829_v7 = vld [vmem:[%s9435_s7 + $0x5c4] ss:$16 sps:$4 sm:$0xff]  }
 0x3bb   :  { %4293 = vmatpush1.bf16.msra.mxu1 %v6785_v3  ;;  %4336 = vmatpush1.bf16.msra.mxu0 %v6788_v9  ;;  %v6832_v12 = vld [vmem:[%s9435_s7 + $0x7c4] ss:$16 sps:$4 sm:$0xff]   ;;  %v6827_v11 = vld [vmem:[%s9435_s7 + $0x5c0] ss:$16 sps:$4 sm:$0xff]  }
 0x3bc   :  { %v8410_v38 = vpack.c.bf16 %v2896_v34, %v2778_v2  ;;  %v8412_v27 = vpack.c.bf16 %v2897_v20, %v2779_v55  ;;  %4294 = vmatprep.subr.bf16.mxu1 %v6793_v47  ;;  %4337 = vmatprep.subr.bf16.mxu0 %v6796_v13  ;;  %v6830_v21 = vld [vmem:[%s9435_s7 + $0x7c0] ss:$16 sps:$4 sm:$0xff]   ;;  %v6835_v52 = vld [vmem:[%s9435_s7 + $0x5a4] ss:$16 sps:$4 sm:$0xff]   ;;  %v2714_v34 = vcombine.low %v8341_v6, %v8352_v29 }
 0x3bd   :  { %v6838_v57 = vld [vmem:[%s9435_s7 + $0x7a4] ss:$16 sps:$4 sm:$0xff]   ;;  %v6833_v59 = vld [vmem:[%s9435_s7 + $0x5a0] ss:$16 sps:$4 sm:$0xff]  }
 0x3be   :  { %4320 = vmatprep.mubr.bf16.mxu1 %v8410_v38  ;;  %4363 = vmatprep.mubr.bf16.mxu0 %v8412_v27  ;;  %v6836_v40 = vld [vmem:[%s9435_s7 + $0x7a0] ss:$16 sps:$4 sm:$0xff]   ;;  %v6841_v17 = vld [vmem:[%s9435_s7 + $0x584] ss:$16 sps:$4 sm:$0xff]  }
 0x3bf   :  { %4295 = vmatpush1.bf16.msra.mxu1 %v6791_v22  ;;  %4338 = vmatpush1.bf16.msra.mxu0 %v6794_v24  ;;  %v6844_v37 = vld [vmem:[%s9435_s7 + $0x784] ss:$16 sps:$4 sm:$0xff]   ;;  %v6839_v19 = vld [vmem:[%s9435_s7 + $0x580] ss:$16 sps:$4 sm:$0xff]   ;;  %v2830_v24 = vcombine.low %v8364_v56, %v8367_v44 }
 0x3c0   :  { %4296 = vmatprep.subr.bf16.mxu1 %v6799_v25  ;;  %4339 = vmatprep.subr.bf16.mxu0 %v6802_v49  ;;  %v6842_v5 = vld [vmem:[%s9435_s7 + $0x780] ss:$16 sps:$4 sm:$0xff]   ;;  %v6847_v62 = vld [vmem:[%s9435_s7 + $0x564] ss:$16 sps:$4 sm:$0xff]   ;;  %v2710_v25 = vcombine.low %v8335_v46, %v8338_v14  ;;  %v2757_v49 = vrot.slane %v2714_v34, %v8192_v8  ;;  %v6919_v34 = vld [vmem:[%s9435_s7 + $0x1ec] ss:$16 sps:$4 sm:$0xff]  }
 0x3c1   :  { %v6850_v3 = vld [vmem:[%s9435_s7 + $0x764] ss:$16 sps:$4 sm:$0xff]   ;;  %v6845_v9 = vld [vmem:[%s9435_s7 + $0x560] ss:$16 sps:$4 sm:$0xff]   ;;  %v2847_v14 = vrot.slane %v2830_v24, %v8192_v8  ;;  %v6920_v24 = vld [vmem:[%s9435_s7 + $0x3e8] ss:$16 sps:$4 sm:$0xff]  }
 0x3c2   :  { %v6848_v2 = vld [vmem:[%s9435_s7 + $0x760] ss:$16 sps:$4 sm:$0xff]   ;;  %v6853_v43 = vld [vmem:[%s9435_s7 + $0x544] ss:$16 sps:$4 sm:$0xff]   ;;  %v2729_v44 = vrot.slane %v2710_v25, %v8192_v8  ;;  %v6925_v25 = vld [vmem:[%s9435_s7 + $0x1cc] ss:$16 sps:$4 sm:$0xff]  }
 0x3c3   :  { %4297 = vmatpush1.bf16.msra.mxu1 %v6797_v30  ;;  %4340 = vmatpush1.bf16.msra.mxu0 %v6800_v51  ;;  %v6856_v55 = vld [vmem:[%s9435_s7 + $0x744] ss:$16 sps:$4 sm:$0xff]   ;;  %v6851_v47 = vld [vmem:[%s9435_s7 + $0x540] ss:$16 sps:$4 sm:$0xff]   ;;  %v2875_v30 = vrot.slane %v8376_v54, %v8192_v8  ;;  %v6871_v54 = vld [vmem:[%s9435_s7 + $0xec] ss:$16 sps:$4 sm:$0xff]  }
 0x3c4   :  { %4298 = vmatprep.subr.bf16.mxu1 %v6805_v28  ;;  %4341 = vmatprep.subr.bf16.mxu0 %v6808_v58  ;;  %v6854_v13 = vld [vmem:[%s9435_s7 + $0x740] ss:$16 sps:$4 sm:$0xff]   ;;  %v6859_v20 = vld [vmem:[%s9435_s7 + $0x524] ss:$16 sps:$4 sm:$0xff]   ;;  %v2774_v58 = vcombine.low %v2729_v44, %v2757_v49 }
 0x3c5   :  { %v6862_v22 = vld [vmem:[%s9435_s7 + $0x724] ss:$16 sps:$4 sm:$0xff]   ;;  %v6857_v6 = vld [vmem:[%s9435_s7 + $0x520] ss:$16 sps:$4 sm:$0xff]  }
 0x3c6   :  { %v6860_v29 = vld [vmem:[%s9435_s7 + $0x720] ss:$16 sps:$4 sm:$0xff]   ;;  %v6865_v56 = vld [vmem:[%s9435_s7 + $0x504] ss:$16 sps:$4 sm:$0xff]  }
 0x3c7   :  { %4299 = vmatpush1.bf16.msra.mxu1 %v6803_v63  ;;  %4342 = vmatpush1.bf16.msra.mxu0 %v6806_v33  ;;  %v6868_v46 = vld [vmem:[%s9435_s7 + $0x704] ss:$16 sps:$4 sm:$0xff]   ;;  %v6863_v51 = vld [vmem:[%s9435_s7 + $0x500] ss:$16 sps:$4 sm:$0xff]   ;;  %v2892_v63 = vcombine.low %v2847_v14, %v2875_v30  ;;  %v2775_v33 = vcombine.high %v2729_v44, %v2757_v49  ;;  %v6926_v49 = vld [vmem:[%s9435_s7 + $0x3c8] ss:$16 sps:$4 sm:$0xff]  }
 0x3c8   :  { %4300 = vmatprep.subr.bf16.mxu1 %v6811_v50  ;;  %4343 = vmatprep.subr.bf16.mxu0 %v6814_v32  ;;  %v6866_v28 = vld [vmem:[%s9435_s7 + $0x700] ss:$16 sps:$4 sm:$0xff]   ;;  %v2893_v50 = vcombine.high %v2847_v14, %v2875_v30  ;;  %v6874_v32 = vld [vmem:[%s9435_s7 + $0x2ec] ss:$16 sps:$4 sm:$0xff]   ;;  %v6929_v14 = vld [vmem:[%s9435_s7 + $0x1a8] ss:$16 sps:$4 sm:$0xff]  }
 0x3c9   :  { %v6932_v44 = vld [vmem:[%s9435_s7 + $0x3a8] ss:$16 sps:$4 sm:$0xff]   ;;  %v6937_v30 = vld [vmem:[%s9435_s7 + $0x18c] ss:$16 sps:$4 sm:$0xff]  }
 0x3cb   :  { %4301 = vmatpush1.bf16.msra.mxu1 %v6809_v18  ;;  %4344 = vmatpush1.bf16.msra.mxu0 %v6812_v42  ;;  %v6869_v18 = vld [vmem:[%s9435_s7 + $0xe8] ss:$16 sps:$4 sm:$0xff]   ;;  %v8580_v42 = vpack.c.bf16 %v2892_v63, %v2774_v58  ;;  %v6943_v63 = vld [vmem:[%s9435_s7 + $0x16c] ss:$16 sps:$4 sm:$0xff]  }
 0x3cc   :  { %4302 = vmatprep.subr.bf16.mxu1 %v6817_v4  ;;  %4345 = vmatprep.subr.bf16.mxu0 %v6820_v16  ;;  %v8582_v4 = vpack.c.bf16 %v2893_v50, %v2775_v33  ;;  %v6872_v16 = vld [vmem:[%s9435_s7 + $0x2e8] ss:$16 sps:$4 sm:$0xff]   ;;  %v6946_v33 = vld [vmem:[%s9435_s7 + $0x36c] ss:$16 sps:$4 sm:$0xff]  }
 0x3cd   :  { %v6938_v58 = vld [vmem:[%s9435_s7 + $0x388] ss:$16 sps:$4 sm:$0xff]  }
 0x3ce   :  { %v6941_v50 = vld [vmem:[%s9435_s7 + $0x168] ss:$16 sps:$4 sm:$0xff]  }
 0x3cf   :  { %4303 = vmatpush1.bf16.msra.mxu1 %v6815_v60  ;;  %4346 = vmatpush1.bf16.msra.mxu0 %v6818_v1  ;;  %v6877_v60 = vld [vmem:[%s9435_s7 + $0xcc] ss:$16 sps:$4 sm:$0xff]  }
 0x3d0   :  { %4304 = vmatprep.subr.bf16.mxu1 %v6823_v15  ;;  %4347 = vmatprep.subr.bf16.mxu0 %v6826_v45  ;;  %v6880_v1 = vld [vmem:[%s9435_s7 + $0x2cc] ss:$16 sps:$4 sm:$0xff]   ;;  %v6875_v15 = vld [vmem:[%s9435_s7 + $0xc8] ss:$16 sps:$4 sm:$0xff]  }
 0x3d1   :  { %v6878_v45 = vld [vmem:[%s9435_s7 + $0x2c8] ss:$16 sps:$4 sm:$0xff]  }
 0x3d3   :  { %4305 = vmatpush2.bf16.msra.mxu1 %v6821_v10  ;;  %4348 = vmatpush2.bf16.msra.mxu0 %v6824_v53  ;;  %v6883_v10 = vld [vmem:[%s9435_s7 + $0xac] ss:$16 sps:$4 sm:$0xff]   ;;  %v6881_v53 = vld [vmem:[%s9435_s7 + $0xa8] ss:$16 sps:$4 sm:$0xff]  }
 0x3d4   :  { %4306 = vmatprep.subr.bf16.mxu1 %v6829_v7  ;;  %4349 = vmatprep.subr.bf16.mxu0 %v6832_v12  ;;  %v6889_v7 = vld [vmem:[%s9435_s7 + $0x8c] ss:$16 sps:$4 sm:$0xff]  }
 0x3d5   :  { %v6892_v12 = vld [vmem:[%s9435_s7 + $0x28c] ss:$16 sps:$4 sm:$0xff]  }
 0x3d7   :  { %4307 = vmatpush2.bf16.msra.mxu1 %v6827_v11  ;;  %4350 = vmatpush2.bf16.msra.mxu0 %v6830_v21  ;;  %v6887_v11 = vld [vmem:[%s9435_s7 + $0x88] ss:$16 sps:$4 sm:$0xff]  }
 0x3d8   :  { %4308 = vmatprep.subr.bf16.mxu1 %v6835_v52  ;;  %4351 = vmatprep.subr.bf16.mxu0 %v6838_v57  ;;  %v6890_v21 = vld [vmem:[%s9435_s7 + $0x288] ss:$16 sps:$4 sm:$0xff]   ;;  %v6895_v52 = vld [vmem:[%s9435_s7 + $0x6c] ss:$16 sps:$4 sm:$0xff]  }
 0x3d9   :  { %v6898_v57 = vld [vmem:[%s9435_s7 + $0x26c] ss:$16 sps:$4 sm:$0xff]  }
 0x3db   :  { %4309 = vmatpush2.bf16.msra.mxu1 %v6833_v59  ;;  %4352 = vmatpush2.bf16.msra.mxu0 %v6836_v40  ;;  %v6893_v59 = vld [vmem:[%s9435_s7 + $0x68] ss:$16 sps:$4 sm:$0xff]  }
 0x3dc   :  { %4310 = vmatprep.subr.bf16.mxu1 %v6841_v17  ;;  %4353 = vmatprep.subr.bf16.mxu0 %v6844_v37  ;;  %v6896_v40 = vld [vmem:[%s9435_s7 + $0x268] ss:$16 sps:$4 sm:$0xff]   ;;  %v6901_v17 = vld [vmem:[%s9435_s7 + $0x4c] ss:$16 sps:$4 sm:$0xff]  }
 0x3dd   :  { %v6904_v37 = vld [vmem:[%s9435_s7 + $0x24c] ss:$16 sps:$4 sm:$0xff]  }
 0x3df   :  { %4311 = vmatpush2.bf16.msra.mxu1 %v6839_v19  ;;  %4354 = vmatpush2.bf16.msra.mxu0 %v6842_v5  ;;  %v6899_v19 = vld [vmem:[%s9435_s7 + $0x48] ss:$16 sps:$4 sm:$0xff]  }
 0x3e0   :  { %4312 = vmatprep.subr.bf16.mxu1 %v6847_v62  ;;  %4355 = vmatprep.subr.bf16.mxu0 %v6850_v3  ;;  %v6902_v5 = vld [vmem:[%s9435_s7 + $0x248] ss:$16 sps:$4 sm:$0xff]   ;;  %v6907_v62 = vld [vmem:[%s9435_s7 + $0x2c] ss:$16 sps:$4 sm:$0xff]  }
 0x3e1   :  { %v6910_v3 = vld [vmem:[%s9435_s7 + $0x22c] ss:$16 sps:$4 sm:$0xff]  }
 0x3e3   :  { %4313 = vmatpush2.bf16.msra.mxu1 %v6845_v9  ;;  %4356 = vmatpush2.bf16.msra.mxu0 %v6848_v2  ;;  %v6905_v9 = vld [vmem:[%s9435_s7 + $0x28] ss:$16 sps:$4 sm:$0xff]  }
 0x3e4   :  { %4314 = vmatprep.subr.bf16.mxu1 %v6853_v43  ;;  %4357 = vmatprep.subr.bf16.mxu0 %v6856_v55  ;;  %v6908_v2 = vld [vmem:[%s9435_s7 + $0x228] ss:$16 sps:$4 sm:$0xff]   ;;  %v6913_v43 = vld [vmem:[%s9435_s7 + $0xc] ss:$16 sps:$4 sm:$0xff]  }
 0x3e5   :  { %v6916_v55 = vld [vmem:[%s9435_s7 + $0x20c] ss:$16 sps:$4 sm:$0xff]  }
 0x3e7   :  { %4315 = vmatpush2.bf16.msra.mxu1 %v6851_v47  ;;  %4358 = vmatpush2.bf16.msra.mxu0 %v6854_v13  ;;  %v6911_v47 = vld [vmem:[%s9435_s7 + $0x8] ss:$16 sps:$4 sm:$0xff]  }
 0x3e8   :  { %4316 = vmatprep.subr.bf16.mxu1 %v6859_v20  ;;  %4359 = vmatprep.subr.bf16.mxu0 %v6862_v22  ;;  %v6914_v13 = vld [vmem:[%s9435_s7 + $0x208] ss:$16 sps:$4 sm:$0xff]   ;;  %v6922_v20 = vld [vmem:[%s9435_s7 + $0x3ec] ss:$16 sps:$4 sm:$0xff]  }
 0x3e9   :  { %v6917_v22 = vld [vmem:[%s9435_s7 + $0x1e8] ss:$16 sps:$4 sm:$0xff]  }
 0x3eb   :  { %4317 = vmatpush2.bf16.msra.mxu1 %v6857_v6  ;;  %4360 = vmatpush2.bf16.msra.mxu0 %v6860_v29  ;;  %v6928_v6 = vld [vmem:[%s9435_s7 + $0x3cc] ss:$16 sps:$4 sm:$0xff]   ;;  %v6923_v29 = vld [vmem:[%s9435_s7 + $0x1c8] ss:$16 sps:$4 sm:$0xff]  }
 0x3ec   :  { %4318 = vmatprep.subr.bf16.mxu1 %v6865_v56  ;;  %4361 = vmatprep.subr.bf16.mxu0 %v6868_v46  ;;  %v6931_v56 = vld [vmem:[%s9435_s7 + $0x1ac] ss:$16 sps:$4 sm:$0xff]  }
 0x3ed   :  { %v6934_v46 = vld [vmem:[%s9435_s7 + $0x3ac] ss:$16 sps:$4 sm:$0xff]  }
 0x3ef   :  { %4319 = vmatpush2.bf16.msra.mxu1 %v6863_v51  ;;  %4362 = vmatpush2.bf16.msra.mxu0 %v6866_v28  ;;  %v6940_v51 = vld [vmem:[%s9435_s7 + $0x38c] ss:$16 sps:$4 sm:$0xff]   ;;  %v6935_v28 = vld [vmem:[%s9435_s7 + $0x188] ss:$16 sps:$4 sm:$0xff]  }
 0x3f0   :  { %4374 = vmatprep.subr.bf16.mxu1 %v6871_v54  ;;  %4417 = vmatprep.subr.bf16.mxu0 %v6874_v32  ;;  %v6944_v54 = vld [vmem:[%s9435_s7 + $0x368] ss:$16 sps:$4 sm:$0xff]   ;;  %v6949_v32 = vld [vmem:[%s9435_s7 + $0x14c] ss:$16 sps:$4 sm:$0xff]  }
 0x3f2   :  { %4321 = vmatmul.mubr.bf16.vlgmr.msra.gmra.mxu1 %v8580_v42  ;;  %4364 = vmatmul.mubr.bf16.vlgmr.msra.gmra.mxu0 %v8582_v4 }
 0x3f3   :  { %4375 = vmatpush1.bf16.msra.mxu1 %v6869_v18  ;;  %4406 = vmatprep.mubr.bf16.mxu1 %v8319_v0  ;;  %v6886_v0 = vld [vmem:[%s9435_s7 + $0x2ac] ss:$16 sps:$4 sm:$0xff]  }
 0x3f4   :  { %4418 = vmatpush1.bf16.msra.mxu0 %v6872_v16  ;;  %4449 = vmatprep.mubr.bf16.mxu0 %v8321_v61  ;;  %v6884_v61 = vld [vmem:[%s9435_s7 + $0x2a8] ss:$16 sps:$4 sm:$0xff]   ;;  %v6952_v18 = vld [vmem:[%s9435_s7 + $0x34c] ss:$16 sps:$4 sm:$0xff]  }
 0x3f5   :  { %4376 = vmatprep.subr.bf16.mxu1 %v6877_v60  ;;  %4419 = vmatprep.subr.bf16.mxu0 %v6880_v1  ;;  %v6947_v16 = vld [vmem:[%s9435_s7 + $0x148] ss:$16 sps:$4 sm:$0xff]   ;;  %v6955_v1 = vld [vmem:[%s9435_s7 + $0x12c] ss:$16 sps:$4 sm:$0xff]  }
 0x3f6   :  { %v6950_v60 = vld [vmem:[%s9435_s7 + $0x348] ss:$16 sps:$4 sm:$0xff]  }
 0x3f7   :  { %4377 = vmatpush1.bf16.msra.mxu1 %v6875_v15  ;;  %v6958_v15 = vld [vmem:[%s9435_s7 + $0x32c] ss:$16 sps:$4 sm:$0xff]  }
 0x3f8   :  { %4420 = vmatpush1.bf16.msra.mxu0 %v6878_v45  ;;  %4378 = vmatprep.subr.bf16.mxu1 %v6883_v10  ;;  %v6953_v45 = vld [vmem:[%s9435_s7 + $0x128] ss:$16 sps:$4 sm:$0xff]  }
 0x3f9   :  { %4421 = vmatprep.subr.bf16.mxu0 %v6886_v0  ;;  %v6956_v10 = vld [vmem:[%s9435_s7 + $0x328] ss:$16 sps:$4 sm:$0xff]   ;;  %v6961_v0 = vld [vmem:[%s9435_s7 + $0x10c] ss:$16 sps:$4 sm:$0xff]  }
 0x3fb   :  { %4379 = vmatpush1.bf16.msra.mxu1 %v6881_v53  ;;  %v6964_v53 = vld [vmem:[%s9435_s7 + $0x30c] ss:$16 sps:$4 sm:$0xff]  }
 0x3fc   :  { %4422 = vmatpush1.bf16.msra.mxu0 %v6884_v61  ;;  %4380 = vmatprep.subr.bf16.mxu1 %v6889_v7  ;;  %v6959_v61 = vld [vmem:[%s9435_s7 + $0x108] ss:$16 sps:$4 sm:$0xff]  }
 0x3fd   :  { %4423 = vmatprep.subr.bf16.mxu0 %v6892_v12  ;;  %v6962_v7 = vld [vmem:[%s9435_s7 + $0x308] ss:$16 sps:$4 sm:$0xff]   ;;  %v6967_v12 = vld [vmem:[%s9435_s7 + $0x4ec] ss:$16 sps:$4 sm:$0xff]  }
 0x3ff   :  { %4381 = vmatpush1.bf16.msra.mxu1 %v6887_v11  ;;  %v6970_v11 = vld [vmem:[%s9435_s7 + $0x6ec] ss:$16 sps:$4 sm:$0xff]  }
 0x400   :  { %4424 = vmatpush1.bf16.msra.mxu0 %v6890_v21  ;;  %4382 = vmatprep.subr.bf16.mxu1 %v6895_v52  ;;  %v6965_v21 = vld [vmem:[%s9435_s7 + $0x4e8] ss:$16 sps:$4 sm:$0xff]  }
 0x401   :  { %4425 = vmatprep.subr.bf16.mxu0 %v6898_v57  ;;  %v6968_v52 = vld [vmem:[%s9435_s7 + $0x6e8] ss:$16 sps:$4 sm:$0xff]   ;;  %v6973_v57 = vld [vmem:[%s9435_s7 + $0x4cc] ss:$16 sps:$4 sm:$0xff]  }
 0x403   :  { %4383 = vmatpush1.bf16.msra.mxu1 %v6893_v59  ;;  %v6976_v59 = vld [vmem:[%s9435_s7 + $0x6cc] ss:$16 sps:$4 sm:$0xff]  }
 0x404   :  { %4426 = vmatpush1.bf16.msra.mxu0 %v6896_v40  ;;  %4384 = vmatprep.subr.bf16.mxu1 %v6901_v17  ;;  %v6971_v40 = vld [vmem:[%s9435_s7 + $0x4c8] ss:$16 sps:$4 sm:$0xff]  }
 0x405   :  { %4427 = vmatprep.subr.bf16.mxu0 %v6904_v37  ;;  %v6974_v17 = vld [vmem:[%s9435_s7 + $0x6c8] ss:$16 sps:$4 sm:$0xff]  }
 0x406   :  { %v6980_v37 = vld [vmem:[%s9435_s7 + $0x6a8] ss:$16 sps:$4 sm:$0xff]  }
 0x407   :  { %4385 = vmatpush1.bf16.msra.mxu1 %v6899_v19  ;;  %v6988_v19 = vld [vmem:[%s9435_s7 + $0x68c] ss:$16 sps:$4 sm:$0xff]  }
 0x408   :  { %4428 = vmatpush1.bf16.msra.mxu0 %v6902_v5  ;;  %4386 = vmatprep.subr.bf16.mxu1 %v6907_v62  ;;  %v6983_v5 = vld [vmem:[%s9435_s7 + $0x488] ss:$16 sps:$4 sm:$0xff]  }
 0x409   :  { %4429 = vmatprep.subr.bf16.mxu0 %v6910_v3  ;;  %v6986_v62 = vld [vmem:[%s9435_s7 + $0x688] ss:$16 sps:$4 sm:$0xff]   ;;  %v6991_v3 = vld [vmem:[%s9435_s7 + $0x46c] ss:$16 sps:$4 sm:$0xff]  }
 0x40b   :  { %4387 = vmatpush1.bf16.msra.mxu1 %v6905_v9  ;;  %v6994_v9 = vld [vmem:[%s9435_s7 + $0x66c] ss:$16 sps:$4 sm:$0xff]  }
 0x40c   :  { %4430 = vmatpush1.bf16.msra.mxu0 %v6908_v2  ;;  %4388 = vmatprep.subr.bf16.mxu1 %v6913_v43  ;;  %v6989_v2 = vld [vmem:[%s9435_s7 + $0x468] ss:$16 sps:$4 sm:$0xff]  }
 0x40d   :  { %4431 = vmatprep.subr.bf16.mxu0 %v6916_v55  ;;  %v6992_v43 = vld [vmem:[%s9435_s7 + $0x668] ss:$16 sps:$4 sm:$0xff]   ;;  %v6997_v55 = vld [vmem:[%s9435_s7 + $0x44c] ss:$16 sps:$4 sm:$0xff]  }
 0x40f   :  { %4389 = vmatpush1.bf16.msra.mxu1 %v6911_v47  ;;  %v7000_v47 = vld [vmem:[%s9435_s7 + $0x64c] ss:$16 sps:$4 sm:$0xff]  }
 0x410   :  { %4432 = vmatpush1.bf16.msra.mxu0 %v6914_v13  ;;  %4390 = vmatprep.subr.bf16.mxu1 %v6919_v34  ;;  %v6995_v13 = vld [vmem:[%s9435_s7 + $0x448] ss:$16 sps:$4 sm:$0xff]  }
 0x411   :  { %4433 = vmatprep.subr.bf16.mxu0 %v6922_v20  ;;  %v6998_v34 = vld [vmem:[%s9435_s7 + $0x648] ss:$16 sps:$4 sm:$0xff]   ;;  %v7003_v20 = vld [vmem:[%s9435_s7 + $0x42c] ss:$16 sps:$4 sm:$0xff]  }
 0x413   :  { %4391 = vmatpush2.bf16.msra.mxu1 %v6917_v22  ;;  %v7006_v22 = vld [vmem:[%s9435_s7 + $0x62c] ss:$16 sps:$4 sm:$0xff]  }
 0x414   :  { %4434 = vmatpush2.bf16.msra.mxu0 %v6920_v24  ;;  %4392 = vmatprep.subr.bf16.mxu1 %v6925_v25  ;;  %v7001_v24 = vld [vmem:[%s9435_s7 + $0x428] ss:$16 sps:$4 sm:$0xff]  }
 0x415   :  { %4435 = vmatprep.subr.bf16.mxu0 %v6928_v6  ;;  %v7004_v25 = vld [vmem:[%s9435_s7 + $0x628] ss:$16 sps:$4 sm:$0xff]   ;;  %v7009_v6 = vld [vmem:[%s9435_s7 + $0x40c] ss:$16 sps:$4 sm:$0xff]  }
 0x417   :  { %4393 = vmatpush2.bf16.msra.mxu1 %v6923_v29  ;;  %v7012_v29 = vld [vmem:[%s9435_s7 + $0x60c] ss:$16 sps:$4 sm:$0xff]  }
 0x418   :  { %4436 = vmatpush2.bf16.msra.mxu0 %v6926_v49  ;;  %4394 = vmatprep.subr.bf16.mxu1 %v6931_v56  ;;  %v7007_v49 = vld [vmem:[%s9435_s7 + $0x408] ss:$16 sps:$4 sm:$0xff]  }
 0x419   :  { %4437 = vmatprep.subr.bf16.mxu0 %v6934_v46  ;;  %v7010_v56 = vld [vmem:[%s9435_s7 + $0x608] ss:$16 sps:$4 sm:$0xff]   ;;  %v7015_v46 = vld [vmem:[%s9435_s7 + $0x5ec] ss:$16 sps:$4 sm:$0xff]  }
 0x41b   :  { %4395 = vmatpush2.bf16.msra.mxu1 %v6929_v14  ;;  %v7018_v14 = vld [vmem:[%s9435_s7 + $0x7ec] ss:$16 sps:$4 sm:$0xff]  }
 0x41c   :  { %4438 = vmatpush2.bf16.msra.mxu0 %v6932_v44  ;;  %4396 = vmatprep.subr.bf16.mxu1 %v6937_v30  ;;  %v7013_v44 = vld [vmem:[%s9435_s7 + $0x5e8] ss:$16 sps:$4 sm:$0xff]  }
 0x41d   :  { %4439 = vmatprep.subr.bf16.mxu0 %v6940_v51  ;;  %v7016_v30 = vld [vmem:[%s9435_s7 + $0x7e8] ss:$16 sps:$4 sm:$0xff]   ;;  %v7021_v51 = vld [vmem:[%s9435_s7 + $0x5cc] ss:$16 sps:$4 sm:$0xff]  }
 0x41f   :  { %4397 = vmatpush2.bf16.msra.mxu1 %v6935_v28  ;;  %v7024_v28 = vld [vmem:[%s9435_s7 + $0x7cc] ss:$16 sps:$4 sm:$0xff]  }
 0x420   :  { %4440 = vmatpush2.bf16.msra.mxu0 %v6938_v58  ;;  %4398 = vmatprep.subr.bf16.mxu1 %v6943_v63  ;;  %v7019_v58 = vld [vmem:[%s9435_s7 + $0x5c8] ss:$16 sps:$4 sm:$0xff]  }
 0x421   :  { %4441 = vmatprep.subr.bf16.mxu0 %v6946_v33  ;;  %v7022_v63 = vld [vmem:[%s9435_s7 + $0x7c8] ss:$16 sps:$4 sm:$0xff]   ;;  %v7027_v33 = vld [vmem:[%s9435_s7 + $0x5ac] ss:$16 sps:$4 sm:$0xff]  }
 0x423   :  { %4399 = vmatpush2.bf16.msra.mxu1 %v6941_v50  ;;  %v7030_v50 = vld [vmem:[%s9435_s7 + $0x7ac] ss:$16 sps:$4 sm:$0xff]  }
 0x424   :  { %4442 = vmatpush2.bf16.msra.mxu0 %v6944_v54  ;;  %4400 = vmatprep.subr.bf16.mxu1 %v6949_v32  ;;  %v7025_v54 = vld [vmem:[%s9435_s7 + $0x5a8] ss:$16 sps:$4 sm:$0xff]  }
 0x425   :  { %4443 = vmatprep.subr.bf16.mxu0 %v6952_v18  ;;  %v7028_v32 = vld [vmem:[%s9435_s7 + $0x7a8] ss:$16 sps:$4 sm:$0xff]   ;;  %v7033_v18 = vld [vmem:[%s9435_s7 + $0x58c] ss:$16 sps:$4 sm:$0xff]  }
 0x427   :  { %4401 = vmatpush2.bf16.msra.mxu1 %v6947_v16  ;;  %v7036_v16 = vld [vmem:[%s9435_s7 + $0x78c] ss:$16 sps:$4 sm:$0xff]  }
 0x428   :  { %4444 = vmatpush2.bf16.msra.mxu0 %v6950_v60  ;;  %4402 = vmatprep.subr.bf16.mxu1 %v6955_v1  ;;  %v7031_v60 = vld [vmem:[%s9435_s7 + $0x588] ss:$16 sps:$4 sm:$0xff]  }
 0x429   :  { %4445 = vmatprep.subr.bf16.mxu0 %v6958_v15  ;;  %v7034_v1 = vld [vmem:[%s9435_s7 + $0x788] ss:$16 sps:$4 sm:$0xff]   ;;  %v7039_v15 = vld [vmem:[%s9435_s7 + $0x56c] ss:$16 sps:$4 sm:$0xff]  }
 0x42b   :  { %4403 = vmatpush2.bf16.msra.mxu1 %v6953_v45  ;;  %v7042_v45 = vld [vmem:[%s9435_s7 + $0x76c] ss:$16 sps:$4 sm:$0xff]  }
 0x42c   :  { %4446 = vmatpush2.bf16.msra.mxu0 %v6956_v10  ;;  %4404 = vmatprep.subr.bf16.mxu1 %v6961_v0  ;;  %v7037_v10 = vld [vmem:[%s9435_s7 + $0x568] ss:$16 sps:$4 sm:$0xff]  }
 0x42d   :  { %4447 = vmatprep.subr.bf16.mxu0 %v6964_v53  ;;  %v7040_v0 = vld [vmem:[%s9435_s7 + $0x768] ss:$16 sps:$4 sm:$0xff]   ;;  %v7045_v53 = vld [vmem:[%s9435_s7 + $0x54c] ss:$16 sps:$4 sm:$0xff]  }
 0x42f   :  { %4405 = vmatpush2.bf16.msra.mxu1 %v6959_v61  ;;  %v7048_v61 = vld [vmem:[%s9435_s7 + $0x74c] ss:$16 sps:$4 sm:$0xff]  }
 0x430   :  { %4448 = vmatpush2.bf16.msra.mxu0 %v6962_v7  ;;  %4460 = vmatprep.subr.bf16.mxu1 %v6967_v12  ;;  %v7043_v7 = vld [vmem:[%s9435_s7 + $0x548] ss:$16 sps:$4 sm:$0xff]  }
 0x431   :  { %4503 = vmatprep.subr.bf16.mxu0 %v6970_v11  ;;  %v7046_v12 = vld [vmem:[%s9435_s7 + $0x748] ss:$16 sps:$4 sm:$0xff]   ;;  %v7051_v11 = vld [vmem:[%s9435_s7 + $0x52c] ss:$16 sps:$4 sm:$0xff]  }
 0x432   :  { %4407 = vmatmul.mubr.bf16.vlgmr.msra.gmra.mxu1 %v8329_v48  ;;  %v6979_v48 = vld [vmem:[%s9435_s7 + $0x4ac] ss:$16 sps:$4 sm:$0xff]  }
 0x433   :  { %4450 = vmatmul.mubr.bf16.vlgmr.msra.gmra.mxu0 %v8331_v23  ;;  %4461 = vmatpush1.bf16.msra.mxu1 %v6965_v21  ;;  %v6982_v23 = vld [vmem:[%s9435_s7 + $0x6ac] ss:$16 sps:$4 sm:$0xff]  }
 0x434   :  { %4492 = vmatprep.mubr.bf16.mxu1 %v8410_v38  ;;  %4504 = vmatpush1.bf16.msra.mxu0 %v6968_v52  ;;  %v6977_v38 = vld [vmem:[%s9435_s7 + $0x4a8] ss:$16 sps:$4 sm:$0xff]   ;;  %v7054_v21 = vld [vmem:[%s9435_s7 + $0x72c] ss:$16 sps:$4 sm:$0xff]  }
 0x435   :  { %4535 = vmatprep.mubr.bf16.mxu0 %v8412_v27  ;;  %4462 = vmatprep.subr.bf16.mxu1 %v6973_v57  ;;  %v6985_v27 = vld [vmem:[%s9435_s7 + $0x48c] ss:$16 sps:$4 sm:$0xff]   ;;  %v7049_v52 = vld [vmem:[%s9435_s7 + $0x528] ss:$16 sps:$4 sm:$0xff]  }
 0x436   :  { %4505 = vmatprep.subr.bf16.mxu0 %v6976_v59  ;;  %v7052_v57 = vld [vmem:[%s9435_s7 + $0x728] ss:$16 sps:$4 sm:$0xff]   ;;  %v7057_v59 = vld [vmem:[%s9435_s7 + $0x50c] ss:$16 sps:$4 sm:$0xff]  }
 0x437   :  { %4463 = vmatpush1.bf16.msra.mxu1 %v6971_v40  ;;  %v7060_v40 = vld [vmem:[%s9435_s7 + $0x70c] ss:$16 sps:$4 sm:$0xff]  }
 0x438   :  { %4506 = vmatpush1.bf16.msra.mxu0 %v6974_v17  ;;  %4464 = vmatprep.subr.bf16.mxu1 %v6979_v48  ;;  %v7055_v17 = vld [vmem:[%s9435_s7 + $0x508] ss:$16 sps:$4 sm:$0xff]  }
 0x439   :  { %4507 = vmatprep.subr.bf16.mxu0 %v6982_v23  ;;  %v7058_v48 = vld [vmem:[%s9435_s7 + $0x708] ss:$16 sps:$4 sm:$0xff]  }
 0x43b   :  { %4465 = vmatpush1.bf16.msra.mxu1 %v6977_v38 }
 0x43c   :  { %4508 = vmatpush1.bf16.msra.mxu0 %v6980_v37  ;;  %4466 = vmatprep.subr.bf16.mxu1 %v6985_v27 }
 0x43d   :  { %4509 = vmatprep.subr.bf16.mxu0 %v6988_v19 }
 0x43f   :  { %4467 = vmatpush1.bf16.msra.mxu1 %v6983_v5 }
 0x440   :  { %4510 = vmatpush1.bf16.msra.mxu0 %v6986_v62  ;;  %4468 = vmatprep.subr.bf16.mxu1 %v6991_v3 }
 0x441   :  { %4511 = vmatprep.subr.bf16.mxu0 %v6994_v9 }
 0x443   :  { %4469 = vmatpush1.bf16.msra.mxu1 %v6989_v2 }
 0x444   :  { %4512 = vmatpush1.bf16.msra.mxu0 %v6992_v43  ;;  %4470 = vmatprep.subr.bf16.mxu1 %v6997_v55 }
 0x445   :  { %4513 = vmatprep.subr.bf16.mxu0 %v7000_v47 }
 0x447   :  { %4471 = vmatpush1.bf16.msra.mxu1 %v6995_v13 }
 0x448   :  { %4514 = vmatpush1.bf16.msra.mxu0 %v6998_v34  ;;  %4472 = vmatprep.subr.bf16.mxu1 %v7003_v20 }
 0x449   :  { %4515 = vmatprep.subr.bf16.mxu0 %v7006_v22 }
 0x44b   :  { %4473 = vmatpush1.bf16.msra.mxu1 %v7001_v24 }
 0x44c   :  { %4516 = vmatpush1.bf16.msra.mxu0 %v7004_v25  ;;  %4474 = vmatprep.subr.bf16.mxu1 %v7009_v6 }
 0x44d   :  { %4517 = vmatprep.subr.bf16.mxu0 %v7012_v29 }
 0x44f   :  { %4475 = vmatpush1.bf16.msra.mxu1 %v7007_v49 }
 0x450   :  { %4518 = vmatpush1.bf16.msra.mxu0 %v7010_v56  ;;  %4476 = vmatprep.subr.bf16.mxu1 %v7015_v46 }
 0x451   :  { %4519 = vmatprep.subr.bf16.mxu0 %v7018_v14 }
 0x453   :  { %4477 = vmatpush2.bf16.msra.mxu1 %v7013_v44 }
 0x454   :  { %4520 = vmatpush2.bf16.msra.mxu0 %v7016_v30  ;;  %4478 = vmatprep.subr.bf16.mxu1 %v7021_v51 }
 0x455   :  { %4521 = vmatprep.subr.bf16.mxu0 %v7024_v28 }
 0x457   :  { %4479 = vmatpush2.bf16.msra.mxu1 %v7019_v58 }
 0x458   :  { %4522 = vmatpush2.bf16.msra.mxu0 %v7022_v63  ;;  %4480 = vmatprep.subr.bf16.mxu1 %v7027_v33 }
 0x459   :  { %4523 = vmatprep.subr.bf16.mxu0 %v7030_v50 }
 0x45b   :  { %4481 = vmatpush2.bf16.msra.mxu1 %v7025_v54 }
 0x45c   :  { %4524 = vmatpush2.bf16.msra.mxu0 %v7028_v32  ;;  %4482 = vmatprep.subr.bf16.mxu1 %v7033_v18 }
 0x45d   :  { %4525 = vmatprep.subr.bf16.mxu0 %v7036_v16 }
 0x45f   :  { %4483 = vmatpush2.bf16.msra.mxu1 %v7031_v60 }
 0x460   :  { %4526 = vmatpush2.bf16.msra.mxu0 %v7034_v1  ;;  %4484 = vmatprep.subr.bf16.mxu1 %v7039_v15 }
 0x461   :  { %4527 = vmatprep.subr.bf16.mxu0 %v7042_v45 }
 0x463   :  { %4485 = vmatpush2.bf16.msra.mxu1 %v7037_v10 }
 0x464   :  { %4528 = vmatpush2.bf16.msra.mxu0 %v7040_v0  ;;  %4486 = vmatprep.subr.bf16.mxu1 %v7045_v53 }
 0x465   :  { %4529 = vmatprep.subr.bf16.mxu0 %v7048_v61 }
 0x467   :  { %4487 = vmatpush2.bf16.msra.mxu1 %v7043_v7 }
 0x468   :  { %4530 = vmatpush2.bf16.msra.mxu0 %v7046_v12  ;;  %4488 = vmatprep.subr.bf16.mxu1 %v7051_v11 }
 0x469   :  { %4531 = vmatprep.subr.bf16.mxu0 %v7054_v21 }
 0x46b   :  { %4489 = vmatpush2.bf16.msra.mxu1 %v7049_v52 }
 0x46c   :  { %4532 = vmatpush2.bf16.msra.mxu0 %v7052_v57  ;;  %4490 = vmatprep.subr.bf16.mxu1 %v7057_v59 }
 0x46d   :  { %4533 = vmatprep.subr.bf16.mxu0 %v7060_v40 }
 0x46f   :  { %4491 = vmatpush2.bf16.msra.mxu1 %v7055_v17 }
 0x470   :  { %4534 = vmatpush2.bf16.msra.mxu0 %v7058_v48 }
 0x472   :  { %4493 = vmatmul.mubr.bf16.vlgmr.msra.gmra.mxu1 %v8580_v42  ;;  %v4236_v23 = vpop.f32.mrf.mxu1  ;;  %v4279_v38 = vpop.f32.mrf.mxu0 }
 0x473   :  { %4536 = vmatmul.mubr.bf16.vlgmr.msra.gmra.mxu0 %v8582_v4  ;;  %v2315_v4 = vld [vmem:[%s9436_s8] sm:$0xf]  ;;  %v4280_v63 = vadd.f32 %v4279_v38, %v4236_v23 }
 0x474   :  { %v4238_v37 = vpop.f32.mrf.mxu1  ;;  %v4281_v27 = vpop.f32.mrf.mxu0  ;;  %v4706_v25 = vrot.slane %v2315_v4, %v7253_v35  ;;  %v4710_v6 = vrot.slane %v2315_v4, %v7256_v36  ;;  %v4714_v29 = vrot.slane %v2315_v4, %v7262_v39  ;;  %v4718_v49 = vrot.slane %v2315_v4, %v7268_v41 }
 0x475   :  { %v4282_v46 = vadd.f32 %v4281_v27, %v4238_v37 }
 0x476   :  { %v4240_v19 = vpop.f32.mrf.mxu1  ;;  %v4283_v5 = vpop.f32.mrf.mxu0  ;;  %v4719_v30 = vcombine.low %v4706_v25, %v4710_v6  ;;  %v4720_v51 = vcombine.high %v4706_v25, %v4710_v6  ;;  %v4721_v28 = vcombine.low %v4714_v29, %v4718_v49  ;;  %v4722_v58 = vcombine.high %v4714_v29, %v4718_v49 }
 0x477   :  { %v4284_v33 = vadd.f32 %v4283_v5, %v4240_v19 }
 0x478   :  { %v4242_v62 = vpop.f32.mrf.mxu1  ;;  %v4285_v3 = vpop.f32.mrf.mxu0  ;;  %v4729_v1 = vrot.slane %v4719_v30, %v8192_v8  ;;  %v4736_v15 = vrot.slane %v4720_v51, %v8192_v8  ;;  %v4743_v45 = vrot.slane %v4721_v28, %v8192_v8  ;;  %v4750_v10 = vrot.slane %v4722_v58, %v8192_v8 }
 0x479   :  { %v4286_v14 = vadd.f32 %v4285_v3, %v4242_v62 }
 0x47a   :  { %v4751_v17 = vcombine.low %v4729_v1, %v4743_v45  ;;  %v4753_v48 = vcombine.low %v4736_v15, %v4750_v10  ;;  %v4752_v62 = vcombine.high %v4729_v1, %v4743_v45  ;;  %v5999_v45 = vsub.s32 7, %v7242_v31 }
 0x4b2   :  { %v4322_v9 = vpop.f32.mrf.mxu1  ;;  %v4365_v2 = vpop.f32.mrf.mxu0 }
 0x4b3   :  { %v4323_v18 = vadd.f32 %v4322_v9, %v4280_v63 }
 0x4b4   :  { %v4324_v43 = vpop.f32.mrf.mxu1  ;;  %v4367_v55 = vpop.f32.mrf.mxu0 }
 0x4b5   :  { %v4325_v50 = vadd.f32 %v4324_v43, %v4282_v46  ;;  %v4366_v11 = vadd.f32 %v4365_v2, %v4323_v18 }
 0x4b6   :  { %v4326_v47 = vpop.f32.mrf.mxu1  ;;  %v4369_v13 = vpop.f32.mrf.mxu0 }
 0x4b7   :  { %v4327_v16 = vadd.f32 %v4326_v47, %v4284_v33  ;;  %v4368_v0 = vadd.f32 %v4367_v55, %v4325_v50 }
 0x4b8   :  { %v4328_v34 = vpop.f32.mrf.mxu1  ;;  %v4371_v20 = vpop.f32.mrf.mxu0 }
 0x4b9   :  { %v4329_v32 = vadd.f32 %v4328_v34, %v4286_v14  ;;  %v4370_v59 = vadd.f32 %v4369_v13, %v4327_v16  ;;  %v4554_v23 = vcombine.low %v4366_v11, %v4368_v0  ;;  %v4555_v27 = vcombine.high %v4366_v11, %v4368_v0  ;;  %v9003_v16 = vld [vmem:[%s9437_s9] sm:$0xff]  ;;  %v9017_v11 = vld [vmem:[%s9437_s9 + $0x8] sm:$0xff]  ;;  %s7118_s9 = smov [#allocation3]  }
 0x4ba   :  { %v4754_v34 = vcombine.high %v4736_v15, %v4750_v10  ;;  %v8982_v13 = vrot.slane %v4753_v48, %v8192_v8  ;;  %s6128_s2 = sshll.u32 %s7118_s9, 4  ;;  %s6129_s2 = int_to_ptr.vmem [resolvable:$true] %s6128_s2 }
 0x4bb   :  { %v4372_v7 = vadd.f32 %v4371_v20, %v4329_v32  ;;  %v4761_v20 = vrot.slane %v4751_v17, %v8192_v8  ;;  %v4564_v6 = vrot.slane %v4554_v23, %v8192_v8  ;;  %v4571_v29 = vrot.slane %v4555_v27, %v8192_v8  ;;  %s7089_s22 = scalar_lea.vmem %s6129_s2, 32  ;;  %p7094_p1 = scmp.lt.s32.totalorder %s6129_s2, %s6129_s2 }
 0x4bc   :  { %v8994_v28 = vrot.slane %v4754_v34, %v8192_v8  ;;  %v8998_v63 = vcombine.high %v8982_v13, %v8982_v13  ;;  %p7090_p0 = scmp.ne.s32.totalorder %s6129_s2, %s7089_s22  ;;  %p7095_p2 = scmp.lt.s32.totalorder %s7089_s22, %s7089_s22 }
 0x4bd   :  { %v4622_v19 = vcombine.low %v4370_v59, %v4372_v7  ;;  %v4623_v9 = vcombine.high %v4370_v59, %v4372_v7  ;;  %v4783_v58 = vcombine.high %v4761_v20, %v4761_v20 }
 0x4be   :  { %p7096_p3 = por %p7095_p2, %p7094_p1 }
 0x4bf   :  { %v4632_v49 = vrot.slane %v4622_v19, %v8192_v8  ;;  %v4639_v14 = vrot.slane %v4623_v9, %v8192_v8 }
 0x4c0   :  { %p7097_p4 = pnand %p7096_p3, %p7090_p0 }
 0x4f2   :  { %v4408_v22 = vpop.f32.mrf.mxu1 }
 0x4f3   :  { %v4451_v42 = vpop.f32.mrf.mxu0 }
 0x4f4   :  { %v4410_v24 = vpop.f32.mrf.mxu1  ;;  %v4452_v53 = vadd.f32 %v4451_v42, %v4408_v22 }
 0x4f5   :  { %v4453_v56 = vpop.f32.mrf.mxu0 }
 0x4f6   :  { %v4412_v44 = vpop.f32.mrf.mxu1  ;;  %v4454_v21 = vadd.f32 %v4453_v56, %v4410_v24  ;;  %v8988_v56 = vrot.slane %v4752_v62, %v8192_v8  ;;  %v6004_v62 = vrot.slane %v9017_v11, %v7268_v41 }
 0x4f7   :  { %v4455_v54 = vpop.f32.mrf.mxu0 }
 0x4f8   :  { %v4414_v60 = vpop.f32.mrf.mxu1  ;;  %v4456_v5 = vadd.f32 %v4455_v54, %v4412_v44 }
 0x4f9   :  { %v4457_v61 = vpop.f32.mrf.mxu0 }
 0x4fa   :  { %v4458_v43 = vadd.f32 %v4457_v61, %v4414_v60  ;;  %v4785_v60 = vcombine.high %v8988_v56, %v8988_v56 }
 0x532   :  { %v4494_v12 = vpop.f32.mrf.mxu1 }
 0x533   :  { %v4495_v52 = vadd.f32 %v4494_v12, %v4452_v53  ;;  %v4537_v57 = vpop.f32.mrf.mxu0 }
 0x534   :  { %v4496_v40 = vpop.f32.mrf.mxu1 }
 0x535   :  { %v4497_v38 = vadd.f32 %v4496_v40, %v4454_v21  ;;  %v4539_v37 = vpop.f32.mrf.mxu0  ;;  %v4538_v55 = vadd.f32 %v4537_v57, %v4495_v52  ;;  %v5996_v21 = vrot.slane %v9003_v16, %v7268_v41  ;;  %v6000_v52 = vrot.slane %v9003_v16, %v5999_v45 }
 0x536   :  { %v4498_v3 = vpop.f32.mrf.mxu1 }
 0x537   :  { %v4540_v47 = vadd.f32 %v4539_v37, %v4497_v38  ;;  %v4541_v2 = vpop.f32.mrf.mxu0  ;;  %v4499_v22 = vadd.f32 %v4498_v3, %v4456_v5 }
 0x538   :  { %v4500_v42 = vpop.f32.mrf.mxu1 }
 0x539   :  { %v4556_v4 = vcombine.low %v4538_v55, %v4540_v47  ;;  %v4557_v24 = vcombine.high %v4538_v55, %v4540_v47  ;;  %v4501_v25 = vadd.f32 %v4500_v42, %v4458_v43  ;;  %v4543_v46 = vpop.f32.mrf.mxu0  ;;  %v4542_v33 = vadd.f32 %v4541_v2, %v4499_v22 }
 0x53b   :  { %v4578_v44 = vrot.slane %v4556_v4, %v8192_v8  ;;  %v4585_v30 = vrot.slane %v4557_v24, %v8192_v8  ;;  %v4544_v51 = vadd.f32 %v4543_v46, %v4501_v25 }
 0x53d   :  { %v4586_v50 = vcombine.low %v4564_v6, %v4578_v44  ;;  %v4587_v54 = vcombine.high %v4564_v6, %v4578_v44  ;;  %v4588_v32 = vcombine.low %v4571_v29, %v4585_v30  ;;  %v4589_v18 = vcombine.high %v4571_v29, %v4585_v30 }
 0x53e   :  { %v4624_v1 = vcombine.low %v4542_v33, %v4544_v51  ;;  %v4625_v15 = vcombine.high %v4542_v33, %v4544_v51 }
 0x53f   :  { %v4596_v10 = vrot.slane %v4586_v50, %v8192_v8  ;;  %v4603_v0 = vrot.slane %v4588_v32, %v8192_v8  ;;  %v4610_v53 = vrot.slane %v4587_v54, %v8192_v8  ;;  %v4617_v61 = vrot.slane %v4589_v18, %v8192_v8 }
 0x540   :  { %v4646_v7 = vrot.slane %v4624_v1, %v8192_v8  ;;  %v4653_v12 = vrot.slane %v4625_v15, %v8192_v8  ;;  %v9063_v54 = vrot.slane %v9017_v11, %v5999_v45 }
 0x541   :  { %v4618_v57 = vcombine.high %v4596_v10, %v4596_v10  ;;  %v4619_v59 = vcombine.high %v4603_v0, %v4603_v0  ;;  %v4620_v40 = vcombine.high %v4610_v53, %v4610_v53  ;;  %v4621_v17 = vcombine.high %v4617_v61, %v4617_v61 }
 0x542   :  { %v9022_v48 = vadd.f32 %v4761_v20, %v4596_v10  ;;  %v9025_v23 = vadd.f32 %v8988_v56, %v4610_v53  ;;  %v9028_v38 = vadd.f32 %v8982_v13, %v4603_v0  ;;  %v9031_v37 = vadd.f32 %v8994_v28, %v4617_v61 }
 0x543   :  { %v9033_v27 = vadd.f32 %v4783_v58, %v4618_v57  ;;  %v9035_v19 = vadd.f32 %v4785_v60, %v4620_v40  ;;  %v9038_v5 = vadd.f32 %v8998_v63, %v4619_v59  ;;  %v4654_v43 = vcombine.low %v4632_v49, %v4646_v7 }
 0x544   :  { %v4821_v3 = vcombine.low %v9022_v48, %v9025_v23  ;;  %v4823_v9 = vcombine.low %v9028_v38, %v9031_v37  ;;  %v4655_v55 = vcombine.high %v4632_v49, %v4646_v7  ;;  %v4656_v34 = vcombine.low %v4639_v14, %v4653_v12 }
 0x545   :  { %v4822_v47 = vcombine.low %v9033_v27, %v9035_v19  ;;  %v4851_v2 = vrot.slane %v9038_v5, %v8192_v8  ;;  %v4657_v22 = vcombine.high %v4639_v14, %v4653_v12  ;;  %v9050_v42 = vadd.f32 %v4761_v20, %v4621_v17 }
 0x546   :  { %v4844_v4 = vrot.slane %v4823_v9, %v8192_v8  ;;  %v4664_v24 = vrot.slane %v4654_v43, %v8192_v8  ;;  %v4678_v25 = vrot.slane %v4655_v55, %v8192_v8  ;;  %v4830_v6 = vrot.slane %v4821_v3, %v8192_v8 }
 0x547   :  { %v4837_v29 = vrot.slane %v4822_v47, %v8192_v8  ;;  %v4671_v49 = vrot.slane %v4656_v34, %v8192_v8  ;;  %v4685_v46 = vrot.slane %v4657_v22, %v8192_v8  ;;  %v9094_v40 = vrot.slane %v6000_v52, %v7268_v41 }
 0x548   :  { %v4854_v44 = vcombine.low %v4844_v4, %v4851_v2  ;;  %v4855_v30 = vcombine.high %v4844_v4, %v4851_v2  ;;  %v4686_v51 = vcombine.high %v4664_v24, %v4664_v24  ;;  %v4687_v14 = vcombine.high %v4678_v25, %v4678_v25 }
 0x549   :  { %v4852_v20 = vcombine.low %v4830_v6, %v4837_v29  ;;  %v4853_v33 = vcombine.high %v4830_v6, %v4837_v29  ;;  %v9060_v50 = vadd.f32 %v8988_v56, %v4664_v24  ;;  %v9066_v18 = vadd.f32 %v4783_v58, %v4678_v25 }
 0x54a   :  { %v4876_v32 = vrot.slane %v4854_v44, %v8192_v8  ;;  %v9068_v1 = vadd.f32 %v4785_v60, %v4686_v51  ;;  %v9071_v15 = vadd.f32 %v8982_v13, %v4687_v14  ;;  %v4883_v53 = vrot.slane %v4855_v30, %v8192_v8 }
 0x54b   :  { %v4862_v10 = vrot.slane %v4852_v20, %v8192_v8  ;;  %v4869_v0 = vrot.slane %v4853_v33, %v8192_v8  ;;  %v9077_v56 = vadd.f32 %v8994_v28, %v4671_v49  ;;  %v9080_v45 = vadd.f32 %v8998_v63, %v4685_v46 }
 0x54c   :  { %v4888_v58 = vcombine.low %v9050_v42, %v9060_v50  ;;  %v4889_v60 = vcombine.low %v9066_v18, %v9068_v1  ;;  %v9087_v13 = vrot.slane %v5996_v21, %v7268_v41 }
 0x54d   :  { %v4884_v61 = vcombine.low %v4862_v10, %v4876_v32  ;;  %v4885_v7 = vcombine.high %v4862_v10, %v4876_v32  ;;  %v4886_v12 = vcombine.low %v4869_v0, %v4883_v53  ;;  %v4887_v57 = vcombine.high %v4869_v0, %v4883_v53 }
 0x54e   :  { %v4890_v28 = vcombine.low %v9071_v15, %v9077_v56  ;;  %v4897_v59 = vrot.slane %v4888_v58, %v8192_v8  ;;  %v4904_v63 = vrot.slane %v4889_v60, %v8192_v8  ;;  %v4918_v22 = vrot.slane %v9080_v45, %v8192_v8 }
 0x54f   :  { %v4964_v17 = vsel %vm4963_vm13, %v4884_v61, 0.0  ;;  %v4971_v3 = vsel %vm4963_vm13, %v4886_v12, 0.0  ;;  %v4978_v21 = vsel %vm4963_vm13, %v4885_v7, 0.0  ;;  %v4985_v9 = vsel %vm4963_vm13, %v4887_v57, 0.0 }
 0x550   :  { %v4965_v43 = vrot.slane %v4964_v17, 4  ;;  %v4972_v55 = vrot.slane %v4971_v3, 4  ;;  %v4979_v47 = vrot.slane %v4978_v21, 4  ;;  %v4986_v2 = vrot.slane %v4985_v9, 4 }
 0x551   :  { %v4911_v34 = vrot.slane %v4890_v28, %v8192_v8  ;;  %v4919_v4 = vcombine.low %v4897_v59, %v4904_v63  ;;  %v4920_v52 = vcombine.high %v4897_v59, %v4904_v63  ;;  %v9111_v0 = vrot.slane %v6004_v62, %v7268_v41 }
 0x552   :  { %v4966_v24 = vadd.f32 %v4965_v43, %v4964_v17  ;;  %v4973_v25 = vadd.f32 %v4972_v55, %v4971_v3  ;;  %v4980_v6 = vadd.f32 %v4979_v47, %v4978_v21  ;;  %v4987_v29 = vadd.f32 %v4986_v2, %v4985_v9 }
 0x553   :  { %v4921_v49 = vcombine.low %v4911_v34, %v4918_v22  ;;  %v4922_v46 = vcombine.high %v4911_v34, %v4918_v22  ;;  %v4929_v44 = vrot.slane %v4919_v4, %v8192_v8  ;;  %v4936_v30 = vrot.slane %v4920_v52, %v8192_v8 }
 0x554   :  { %v4967_v51 = vrot.slane %v4966_v24, 2  ;;  %v4974_v14 = vrot.slane %v4973_v25, 2  ;;  %v4981_v20 = vrot.slane %v4980_v6, 2  ;;  %v4988_v33 = vrot.slane %v4987_v29, 2 }
 0x555   :  { %v4943_v32 = vrot.slane %v4921_v49, %v8192_v8  ;;  %v4950_v10 = vrot.slane %v4922_v46, %v8192_v8  ;;  %v9114_v53 = vmul.f32 0.0, %v9087_v13  ;;  %v9122_v46 = vrot.slane %v9063_v54, %v7268_v41 }
 0x556   :  { %v4968_v58 = vadd.f32 %v4967_v51, %v4966_v24  ;;  %v4975_v60 = vadd.f32 %v4974_v14, %v4973_v25  ;;  %v4982_v61 = vadd.f32 %v4981_v20, %v4980_v6  ;;  %v4989_v7 = vadd.f32 %v4988_v33, %v4987_v29 }
 0x557   :  { %v4951_v12 = vcombine.low %v4929_v44, %v4943_v32  ;;  %v4952_v57 = vcombine.high %v4929_v44, %v4943_v32  ;;  %v4953_v28 = vcombine.low %v4936_v30, %v4950_v10  ;;  %v4954_v59 = vcombine.high %v4936_v30, %v4950_v10 }
 0x558   :  { %v4969_v63 = vrot.slane %v4968_v58, 1  ;;  %v4976_v17 = vrot.slane %v4975_v60, 1  ;;  %v4983_v3 = vrot.slane %v4982_v61, 1  ;;  %v4990_v21 = vrot.slane %v4989_v7, 1 }
 0x559   :  { %v4992_v9 = vsel %vm4963_vm13, %v4951_v12, 0.0  ;;  %v4999_v62 = vsel %vm4963_vm13, %v4953_v28, 0.0  ;;  %v5006_v43 = vsel %vm4963_vm13, %v4952_v57, 0.0  ;;  %v5013_v55 = vsel %vm4963_vm13, %v4954_v59, 0.0 }
 0x55a   :  { %v4970_v47 = vadd.f32 %v4969_v63, %v4968_v58  ;;  %v4977_v2 = vadd.f32 %v4976_v17, %v4975_v60  ;;  %v4984_v34 = vadd.f32 %v4983_v3, %v4982_v61  ;;  %v4991_v22 = vadd.f32 %v4990_v21, %v4989_v7 }
 0x55b   :  { %v4993_v4 = vrot.slane %v4992_v9, 4  ;;  %v5000_v52 = vrot.slane %v4999_v62, 4  ;;  %v5007_v24 = vrot.slane %v5006_v43, 4  ;;  %v5014_v25 = vrot.slane %v5013_v55, 4 }
 0x55c   :  { %v5021_v6 = vmul.f32 0.14285715, %v4970_v47  ;;  %v5022_v29 = vmul.f32 0.14285715, %v4977_v2  ;;  %v5023_v49 = vmul.f32 0.14285715, %v4984_v34 }
 0x55d   :  { %v5024_v44 = vmul.f32 0.14285715, %v4991_v22  ;;  %v4994_v30 = vadd.f32 %v4993_v4, %v4992_v9  ;;  %v5001_v51 = vadd.f32 %v5000_v52, %v4999_v62  ;;  %v5008_v14 = vadd.f32 %v5007_v24, %v5006_v43 }
 0x55e   :  { %v5037_v20 = vcombine.low %v5021_v6, %v5022_v29  ;;  %v5038_v33 = vcombine.high %v5021_v6, %v5022_v29  ;;  %v5015_v32 = vadd.f32 %v5014_v25, %v5013_v55  ;;  %v9125_v10 = vmul.f32 0.0, %v9094_v40 }
 0x55f   :  { %v5039_v58 = vcombine.low %v5023_v49, %v5024_v44  ;;  %v5040_v60 = vcombine.high %v5023_v49, %v5024_v44  ;;  %v4995_v61 = vrot.slane %v4994_v30, 2  ;;  %v5002_v7 = vrot.slane %v5001_v51, 2 }
 0x560   :  { %v5047_v12 = vrot.slane %v5037_v20, %v8192_v8  ;;  %v5054_v57 = vrot.slane %v5038_v33, %v8192_v8  ;;  %v5009_v41 = vrot.slane %v5008_v14, 2  ;;  %v5016_v54 = vrot.slane %v5015_v32, 2 }
 0x561   :  { %v5061_v28 = vrot.slane %v5039_v58, %v8192_v8  ;;  %v5068_v59 = vrot.slane %v5040_v60, %v8192_v8  ;;  %v4996_v63 = vadd.f32 %v4995_v61, %v4994_v30  ;;  %v5003_v17 = vadd.f32 %v5002_v7, %v5001_v51 }
 0x562   :  { %v5010_v3 = vadd.f32 %v5009_v41, %v5008_v14  ;;  %v5017_v21 = vadd.f32 %v5016_v54, %v5015_v32  ;;  %v6035_v9 = vmul.f32 0.0, %v9111_v0  ;;  %v9133_v62 = vmul.f32 0.0, %v9122_v46 }
 0x563   :  { %v5069_v43 = vcombine.low %v5047_v12, %v5061_v28  ;;  %v5070_v55 = vcombine.high %v5047_v12, %v5061_v28  ;;  %v5071_v47 = vcombine.low %v5054_v57, %v5068_v59  ;;  %v5072_v2 = vcombine.high %v5054_v57, %v5068_v59 }
 0x564   :  { %v4997_v34 = vrot.slane %v4996_v63, 1  ;;  %v5004_v22 = vrot.slane %v5003_v17, 1  ;;  %v5011_v4 = vrot.slane %v5010_v3, 1  ;;  %v5018_v52 = vrot.slane %v5017_v21, 1 }
 0x565   :  { %v5079_v24 = vrot.slane %v5069_v43, %v8192_v8  ;;  %v5086_v25 = vrot.slane %v5071_v47, %v8192_v8  ;;  %v5093_v6 = vrot.slane %v5070_v55, %v8192_v8  ;;  %v5100_v29 = vrot.slane %v5072_v2, %v8192_v8 }
 0x566   :  { %v4998_v49 = vadd.f32 %v4997_v34, %v4996_v63  ;;  %v5005_v44 = vadd.f32 %v5004_v22, %v5003_v17  ;;  %v5012_v30 = vadd.f32 %v5011_v4, %v5010_v3  ;;  %v5019_v51 = vadd.f32 %v5018_v52, %v5017_v21 }
 0x567   :  { %v5101_v14 = vcombine.high %v5079_v24, %v5079_v24  ;;  %v5102_v20 = vcombine.high %v5086_v25, %v5086_v25  ;;  %v5103_v33 = vcombine.high %v5093_v6, %v5093_v6  ;;  %v9140_v32 = vsub.f32 %v9022_v48, %v5079_v24 }
 0x568   :  { %v9143_v58 = vsub.f32 %v9025_v23, %v5093_v6  ;;  %v9146_v60 = vsub.f32 %v9028_v38, %v5086_v25  ;;  %v9149_v61 = vsub.f32 %v9031_v37, %v5100_v29  ;;  %v5025_v7 = vmul.f32 0.14285715, %v4998_v49 }
 0x569   :  { %v9152_v12 = vsub.f32 %v9033_v27, %v5101_v14  ;;  %v9155_v57 = vsub.f32 %v9035_v19, %v5103_v33  ;;  %v9158_v41 = vsub.f32 %v9038_v5, %v5102_v20  ;;  %v5199_v48 = vmul.f32 %v9140_v32, %v9140_v32 }
 0x56a   :  { %v5200_v23 = vmul.f32 %v9143_v58, %v9143_v58  ;;  %v5203_v38 = vmul.f32 %v9146_v60, %v9146_v60  ;;  %v5204_v37 = vmul.f32 %v9149_v61, %v9149_v61  ;;  %v5026_v27 = vmul.f32 0.14285715, %v5005_v44 }
 0x56b   :  { %v5201_v19 = vmul.f32 %v9152_v12, %v9152_v12  ;;  %v5202_v5 = vmul.f32 %v9155_v57, %v9155_v57  ;;  %v5205_v54 = vmul.f32 %v9158_v41, %v9158_v41  ;;  %v5027_v28 = vmul.f32 0.14285715, %v5012_v30 }
 0x56c   :  { %v5227_v59 = vcombine.low %v5199_v48, %v5200_v23  ;;  %v5229_v63 = vcombine.low %v5203_v38, %v5204_v37  ;;  %v5028_v17 = vmul.f32 0.14285715, %v5019_v51  ;;  %v5104_v3 = vcombine.low %v5025_v7, %v5026_v27 }
 0x56d   :  { %v5228_v21 = vcombine.low %v5201_v19, %v5202_v5  ;;  %v5257_v43 = vrot.slane %v5205_v54, %v8192_v8  ;;  %v5105_v55 = vcombine.high %v5025_v7, %v5026_v27  ;;  %v6046_v47 = vsel %vm339_vm2, %v9114_v53, 0.0 }
 0x56e   :  { %v5236_v2 = vrot.slane %v5227_v59, %v8192_v8  ;;  %v5250_v34 = vrot.slane %v5229_v63, %v8192_v8  ;;  %v5106_v22 = vcombine.low %v5027_v28, %v5028_v17  ;;  %v5107_v4 = vcombine.high %v5027_v28, %v5028_v17 }
 0x56f   :  { %v5243_v52 = vrot.slane %v5228_v21, %v8192_v8  ;;  %v5114_v24 = vrot.slane %v5104_v3, %v8192_v8  ;;  %v5121_v25 = vrot.slane %v5105_v55, %v8192_v8  ;;  %v6047_v6 = vsel %vm339_vm2, %v9125_v10, 0.0 }
 0x570   :  { %v5260_v29 = vcombine.low %v5250_v34, %v5257_v43  ;;  %v5261_v49 = vcombine.high %v5250_v34, %v5257_v43  ;;  %v5128_v44 = vrot.slane %v5106_v22, %v8192_v8  ;;  %v5135_v53 = vrot.slane %v5107_v4, %v8192_v8 }
 0x571   :  { %v5258_v30 = vcombine.low %v5236_v2, %v5243_v52  ;;  %v5259_v51 = vcombine.high %v5236_v2, %v5243_v52  ;;  %v6048_v14 = vadd.f32 %v6047_v6, %v6046_v47  ;;  %v6049_v20 = vsel %vm339_vm2, %v6035_v9, 0.0 }
 0x572   :  { %v5282_v33 = vrot.slane %v5260_v29, %v8192_v8  ;;  %v5289_v7 = vrot.slane %v5261_v49, %v8192_v8  ;;  %v5136_v48 = vcombine.low %v5114_v24, %v5128_v44  ;;  %v5137_v23 = vcombine.high %v5114_v24, %v5128_v44 }
 0x573   :  { %v5268_v38 = vrot.slane %v5258_v30, %v8192_v8  ;;  %v5275_v10 = vrot.slane %v5259_v51, %v8192_v8  ;;  %v5138_v37 = vcombine.low %v5121_v25, %v5135_v53  ;;  %v5139_v27 = vcombine.high %v5121_v25, %v5135_v53 }
 0x574   :  { %v5146_v19 = vrot.slane %v5136_v48, %v8192_v8  ;;  %v5160_v5 = vrot.slane %v5137_v23, %v8192_v8  ;;  %v6050_v54 = vadd.f32 %v6049_v20, %v6048_v14  ;;  %v6051_v9 = vsel %vm339_vm2, %v9133_v62, 0.0 }
 0x575   :  { %v5290_v28 = vcombine.low %v5268_v38, %v5282_v33  ;;  %v5291_v59 = vcombine.high %v5268_v38, %v5282_v33  ;;  %v5292_v63 = vcombine.low %v5275_v10, %v5289_v7  ;;  %v5293_v17 = vcombine.high %v5275_v10, %v5289_v7 }
 0x576   :  { %v5153_v3 = vrot.slane %v5138_v37, %v8192_v8  ;;  %v5167_v21 = vrot.slane %v5139_v27, %v8192_v8  ;;  %v5168_v43 = vcombine.high %v5146_v19, %v5146_v19  ;;  %v5170_v55 = vcombine.high %v5160_v5, %v5160_v5 }
 0x577   :  { %v5369_v47 = vsel %vm4963_vm13, %v5290_v28, 0.0  ;;  %v5376_v2 = vsel %vm4963_vm13, %v5292_v63, 0.0  ;;  %v5383_v34 = vsel %vm4963_vm13, %v5291_v59, 0.0  ;;  %v5390_v22 = vsel %vm4963_vm13, %v5293_v17, 0.0 }
 0x578   :  { %v5370_v4 = vrot.slane %v5369_v47, 4  ;;  %v5377_v62 = vrot.slane %v5376_v2, 4  ;;  %v5384_v52 = vrot.slane %v5383_v34, 4  ;;  %v5391_v24 = vrot.slane %v5390_v22, 4 }
 0x579   :  { %v5169_v25 = vcombine.high %v5153_v3, %v5153_v3  ;;  %v9202_v6 = vsub.f32 %v9050_v42, %v5146_v19  ;;  %v9205_v29 = vsub.f32 %v9060_v50, %v5160_v5  ;;  %v9208_v49 = vsub.f32 %v9066_v18, %v5168_v43 }
 0x57a   :  { %v5371_v44 = vadd.f32 %v5370_v4, %v5369_v47  ;;  %v5378_v53 = vadd.f32 %v5377_v62, %v5376_v2  ;;  %v5385_v30 = vadd.f32 %v5384_v52, %v5383_v34  ;;  %v5392_v51 = vadd.f32 %v5391_v24, %v5390_v22 }
 0x57b   :  { %v9211_v14 = vsub.f32 %v9068_v1, %v5170_v55  ;;  %v9214_v20 = vsub.f32 %v9071_v15, %v5153_v3  ;;  %v9217_v33 = vsub.f32 %v9077_v56, %v5167_v21  ;;  %v9220_v42 = vsub.f32 %v9080_v45, %v5169_v25 }
 0x57c   :  { %v5372_v50 = vrot.slane %v5371_v44, 2  ;;  %v5379_v7 = vrot.slane %v5378_v53, 2  ;;  %v5386_v18 = vrot.slane %v5385_v30, 2  ;;  %v5393_v48 = vrot.slane %v5392_v51, 2 }
 0x57d   :  { %v5206_v23 = vmul.f32 %v9202_v6, %v9202_v6  ;;  %v5207_v1 = vmul.f32 %v9205_v29, %v9205_v29  ;;  %v5208_v15 = vmul.f32 %v9208_v49, %v9208_v49  ;;  %v5209_v56 = vmul.f32 %v9211_v14, %v9211_v14 }
 0x57e   :  { %v5373_v38 = vadd.f32 %v5372_v50, %v5371_v44  ;;  %v5380_v10 = vadd.f32 %v5379_v7, %v5378_v53  ;;  %v5387_v45 = vadd.f32 %v5386_v18, %v5385_v30  ;;  %v5394_v37 = vadd.f32 %v5393_v48, %v5392_v51 }
 0x57f   :  { %v5210_v27 = vmul.f32 %v9214_v20, %v9214_v20  ;;  %v5211_v19 = vmul.f32 %v9217_v33, %v9217_v33  ;;  %v5212_v5 = vmul.f32 %v9220_v42, %v9220_v42  ;;  %v5294_v28 = vcombine.low %v5206_v23, %v5207_v1 }
 0x580   :  { %v5374_v59 = vrot.slane %v5373_v38, 1  ;;  %v5381_v63 = vrot.slane %v5380_v10, 1  ;;  %v5388_v17 = vrot.slane %v5387_v45, 1  ;;  %v5395_v3 = vrot.slane %v5394_v37, 1 }
 0x581   :  { %v5295_v21 = vcombine.low %v5208_v15, %v5209_v56  ;;  %v5296_v43 = vcombine.low %v5210_v27, %v5211_v19  ;;  %v5324_v55 = vrot.slane %v5212_v5, %v8192_v8  ;;  %v5303_v4 = vrot.slane %v5294_v28, %v8192_v8 }
 0x582   :  { %v5375_v47 = vadd.f32 %v5374_v59, %v5373_v38  ;;  %v5382_v2 = vadd.f32 %v5381_v63, %v5380_v10  ;;  %v5389_v34 = vadd.f32 %v5388_v17, %v5387_v45  ;;  %v5396_v22 = vadd.f32 %v5395_v3, %v5394_v37 }
 0x583   :  { %v5310_v62 = vrot.slane %v5295_v21, %v8192_v8  ;;  %v5317_v52 = vrot.slane %v5296_v43, %v8192_v8  ;;  %v6052_v24 = vadd.f32 %v6051_v9, %v6050_v54 }
 0x584   :  { %v5425_v25 = vmul.f32 0.14285715, %v5375_v47  ;;  %v5426_v44 = vmul.f32 0.14285715, %v5382_v2  ;;  %v5427_v53 = vmul.f32 0.14285715, %v5389_v34 }
 0x585   :  { %v5428_v30 = vmul.f32 0.14285715, %v5396_v22  ;;  %v5325_v51 = vcombine.low %v5303_v4, %v5310_v62  ;;  %v5326_v50 = vcombine.high %v5303_v4, %v5310_v62  ;;  %v5327_v7 = vcombine.low %v5317_v52, %v5324_v55  ;;  %6053 = vadd.xlane.f32.xlu1 %v6052_v24 }
 0x586   :  { %v5433_v18 = vadd.f32 1e-05, %v5425_v25  ;;  %v5434_v48 = vadd.f32 1e-05, %v5426_v44  ;;  %v5435_v23 = vadd.f32 1e-05, %v5427_v53  ;;  %v5328_v1 = vcombine.high %v5317_v52, %v5324_v55 }
 0x587   :  { %v5436_v15 = vadd.f32 1e-05, %v5428_v30  ;;  %v5335_v56 = vrot.slane %v5325_v51, %v8192_v8  ;;  %v5342_v38 = vrot.slane %v5326_v50, %v8192_v8  ;;  %v5349_v10 = vrot.slane %v5327_v7, %v8192_v8 }
 0x588   :  { %7073 = vrsqrt.f32 %v5433_v18  ;;  %v5356_v54 = vrot.slane %v5328_v1, %v8192_v8  ;;  %v5891_v1 = vsub.s32 5, %v7242_v31 }
 0x589   :  { %7075 = vrsqrt.f32 %v5434_v48  ;;  %v5357_v9 = vcombine.low %v5335_v56, %v5349_v10  ;;  %v5358_v45 = vcombine.high %v5335_v56, %v5349_v10 }
 0x58a   :  { %7077 = vrsqrt.f32 %v5435_v23  ;;  %v5359_v37 = vcombine.low %v5342_v38, %v5356_v54  ;;  %v5360_v27 = vcombine.high %v5342_v38, %v5356_v54 }
 0x58b   :  { %7079 = vrsqrt.f32 %v5436_v15  ;;  %v5397_v19 = vsel %vm4963_vm13, %v5357_v9, 0.0  ;;  %v5411_v5 = vsel %vm4963_vm13, %v5358_v45, 0.0 }
 0x58c   :  { %v5398_v28 = vrot.slane %v5397_v19, 4  ;;  %v5404_v59 = vsel %vm4963_vm13, %v5359_v37, 0.0  ;;  %v5412_v63 = vrot.slane %v5411_v5, 4  ;;  %v5418_v17 = vsel %vm4963_vm13, %v5360_v27, 0.0 }
 0x58d   :  { %v5405_v3 = vrot.slane %v5404_v59, 4  ;;  %v5419_v21 = vrot.slane %v5418_v17, 4  ;;  %v5888_v27 = vrot.slane %v9003_v16, %v7256_v36 }
 0x58e   :  { %v5399_v43 = vadd.f32 %v5398_v28, %v5397_v19  ;;  %v5413_v55 = vadd.f32 %v5412_v63, %v5411_v5 }
 0x58f   :  { %v5406_v47 = vadd.f32 %v5405_v3, %v5404_v59  ;;  %v5420_v2 = vadd.f32 %v5419_v21, %v5418_v17  ;;  %v5892_v21 = vrot.slane %v9003_v16, %v5891_v1 }
 0x590   :  { %v5400_v34 = vrot.slane %v5399_v43, 2  ;;  %v5414_v22 = vrot.slane %v5413_v55, 2 }
 0x591   :  { %v5407_v4 = vrot.slane %v5406_v47, 2  ;;  %v5421_v62 = vrot.slane %v5420_v2, 2 }
 0x592   :  { %v5401_v52 = vadd.f32 %v5400_v34, %v5399_v43  ;;  %v5415_v24 = vadd.f32 %v5414_v22, %v5413_v55  ;;  %v5900_v22 = vrot.slane %v9017_v11, %v5891_v1 }
 0x593   :  { %v5408_v25 = vadd.f32 %v5407_v4, %v5406_v47  ;;  %v5422_v44 = vadd.f32 %v5421_v62, %v5420_v2  ;;  %v5896_v47 = vrot.slane %v9017_v11, %v7256_v36 }
 0x594   :  { %v5402_v53 = vrot.slane %v5401_v52, 1  ;;  %v5416_v30 = vrot.slane %v5415_v24, 1 }
 0x595   :  { %v7074_v51 = vpop.eup %7073  ;;  %v5409_v50 = vrot.slane %v5408_v25, 1  ;;  %v5423_v7 = vrot.slane %v5422_v44, 1 }
 0x596   :  { %v7076_v18 = vpop.eup %7075  ;;  %v5403_v48 = vadd.f32 %v5402_v53, %v5401_v52  ;;  %v5417_v23 = vadd.f32 %v5416_v30, %v5415_v24  ;;  %v9263_v53 = vrot.slane %v5892_v21, %v7256_v36 }
 0x597   :  { %v7078_v15 = vpop.eup %7077  ;;  %v5457_v56 = vcombine.low %v7074_v51, %v7076_v18  ;;  %v5458_v38 = vcombine.high %v7074_v51, %v7076_v18  ;;  %v5410_v10 = vadd.f32 %v5409_v50, %v5408_v25  ;;  %v5424_v54 = vadd.f32 %v5423_v7, %v5422_v44 }
 0x598   :  { %v7080_v9 = vpop.eup %7079  ;;  %v5429_v45 = vmul.f32 0.14285715, %v5403_v48  ;;  %v5431_v37 = vmul.f32 0.14285715, %v5417_v23  ;;  %v9260_v44 = vrot.slane %v5888_v27, %v7256_v36  ;;  %v9270_v18 = vrot.slane %v5896_v47, %v7256_v36 }
 0x599   :  { %v5459_v19 = vcombine.low %v7078_v15, %v7080_v9  ;;  %v5460_v5 = vcombine.high %v7078_v15, %v7080_v9  ;;  %v5467_v28 = vrot.slane %v5457_v56, %v8192_v8  ;;  %v5474_v59 = vrot.slane %v5458_v38, %v8192_v8 }
 0x59a   :  { %v5430_v63 = vmul.f32 0.14285715, %v5410_v10  ;;  %v5432_v17 = vmul.f32 0.14285715, %v5424_v54  ;;  %v5437_v3 = vadd.f32 1e-05, %v5429_v45  ;;  %v5834_v48 = vrot.slane %v9003_v16, %v7253_v35 }
 0x59b   :  { %v5481_v43 = vrot.slane %v5459_v19, %v8192_v8  ;;  %v5488_v55 = vrot.slane %v5460_v5, %v8192_v8  ;;  %v5439_v34 = vadd.f32 1e-05, %v5431_v37  ;;  %v5837_v23 = vsub.s32 4, %v7242_v31 }
 0x59c   :  { %v5438_v2 = vadd.f32 1e-05, %v5430_v63  ;;  %7081 = vrsqrt.f32 %v5437_v3  ;;  %v5440_v25 = vadd.f32 1e-05, %v5432_v17 }
 0x59d   :  { %v5489_v4 = vcombine.low %v5467_v28, %v5481_v43  ;;  %v5490_v62 = vcombine.high %v5467_v28, %v5481_v43  ;;  %v5491_v52 = vcombine.low %v5474_v59, %v5488_v55  ;;  %v5492_v24 = vcombine.high %v5474_v59, %v5488_v55 }
 0x59e   :  { %7083 = vrsqrt.f32 %v5438_v2 }
 0x59f   :  { %v5499_v30 = vrot.slane %v5489_v4, %v8192_v8  ;;  %v5506_v51 = vrot.slane %v5491_v52, %v8192_v8  ;;  %v5513_v50 = vrot.slane %v5490_v62, %v8192_v8  ;;  %v5520_v7 = vrot.slane %v5492_v24, %v8192_v8 }
 0x5a0   :  { %7085 = vrsqrt.f32 %v5439_v34  ;;  %v9287_v4 = vrot.slane %v5900_v22, %v7256_v36  ;;  %v9290_v62 = vrot.slane %v5834_v48, %v7253_v35  ;;  %v5945_v52 = vsub.s32 6, %v7242_v31 }
 0x5a1   :  { %v5521_v1 = vcombine.high %v5499_v30, %v5499_v30  ;;  %v5522_v15 = vcombine.high %v5506_v51, %v5506_v51  ;;  %v5523_v56 = vcombine.high %v5513_v50, %v5513_v50  ;;  %v5605_v38 = vmul.f32 %v5499_v30, %v9140_v32 }
 0x5a2   :  { %v5606_v10 = vmul.f32 %v5513_v50, %v9143_v58  ;;  %v5609_v54 = vmul.f32 %v5506_v51, %v9146_v60  ;;  %v5610_v9 = vmul.f32 %v5520_v7, %v9149_v61  ;;  %7087 = vrsqrt.f32 %v5440_v25 }
 0x5a3   :  { %v5607_v45 = vmul.f32 %v5521_v1, %v9152_v12  ;;  %v5608_v37 = vmul.f32 %v5523_v56, %v9155_v57  ;;  %v5611_v27 = vmul.f32 %v5522_v15, %v9158_v41  ;;  %vm5619_vm14 = vcmp.gt.f32.partialorder %v5605_v38, 0.0 }
 0x5a4   :  { %vm5620_vm15 = vcmp.gt.f32.partialorder %v5606_v10, 0.0  ;;  %vm5623_vm0 = vcmp.gt.f32.partialorder %v5609_v54, 0.0  ;;  %vm5624_vm1 = vcmp.gt.f32.partialorder %v5610_v9, 0.0  ;;  %v5633_v19 = vmul.f32 0.2, %v5605_v38 }
 0x5a5   :  { %v5634_v5 = vmul.f32 0.2, %v5606_v10  ;;  %v5635_v32 = vmul.f32 0.2, %v5607_v45  ;;  %v5636_v28 = vmul.f32 0.2, %v5608_v37  ;;  %v5842_v58 = vrot.slane %v9017_v11, %v7253_v35 }
 0x5a6   :  { %v5637_v60 = vmul.f32 0.2, %v5609_v54  ;;  %v5638_v61 = vmul.f32 0.2, %v5610_v9  ;;  %v5639_v59 = vmul.f32 0.2, %v5611_v27  ;;  %v5647_v63 = vsel %vm5619_vm14, %v5605_v38, %v5633_v19 }
 0x5a7   :  { %vm5621_vm3 = vcmp.gt.f32.partialorder %v5607_v45, 0.0  ;;  %vm5622_vm11 = vcmp.gt.f32.partialorder %v5608_v37, 0.0  ;;  %vm5625_vm12 = vcmp.gt.f32.partialorder %v5611_v27, 0.0  ;;  %v5648_v12 = vsel %vm5620_vm15, %v5606_v10, %v5634_v5 }
 0x5a8   :  { %v5649_v57 = vsel %vm5621_vm3, %v5607_v45, %v5635_v32  ;;  %v5650_v41 = vsel %vm5622_vm11, %v5608_v37, %v5636_v28  ;;  %v5651_v17 = vsel %vm5623_vm0, %v5609_v54, %v5637_v60  ;;  %v5652_v3 = vsel %vm5624_vm1, %v5610_v9, %v5638_v61 }
 0x5a9   :  { %v7082_v21 = vpop.eup %7081  ;;  %v5653_v43 = vsel %vm5625_vm12, %v5611_v27, %v5639_v59  ;;  %v5675_v55 = vcombine.low %v5647_v63, %v5647_v63  ;;  %v5676_v47 = vcombine.low %v5648_v12, %v5649_v57  ;;  %v5677_v2 = vcombine.low %v5650_v41, %v5651_v17 }
 0x5aa   :  { %v5678_v34 = vcombine.low %v5652_v3, %v5653_v43  ;;  %v5942_v50 = vrot.slane %v9003_v16, %v7262_v39  ;;  %v5838_v22 = vrot.slane %v9003_v16, %v5837_v23  ;;  %v5846_v38 = vrot.slane %v9017_v11, %v5837_v23 }
 0x5ab   :  { %v7084_v24 = vpop.eup %7083  ;;  %v5685_v25 = vrot.slane %v5675_v55, %v8192_v8  ;;  %v5692_v30 = vrot.slane %v5676_v47, %v8192_v8  ;;  %v5699_v51 = vrot.slane %v5677_v2, %v8192_v8  ;;  %v9302_v10 = vrot.slane %v5842_v58, %v7253_v35 }
 0x5ac   :  { %v5524_v7 = vcombine.low %v7082_v21, %v7084_v24  ;;  %v5525_v1 = vcombine.high %v7082_v21, %v7084_v24  ;;  %v5706_v36 = vrot.slane %v5678_v34, %v8192_v8  ;;  %v5946_v45 = vrot.slane %v9003_v16, %v5945_v52 }
 0x5ad   :  { %v7086_v48 = vpop.eup %7085  ;;  %v5707_v15 = vcombine.low %v5685_v25, %v5692_v30  ;;  %v5708_v56 = vcombine.high %v5685_v25, %v5692_v30  ;;  %v5950_v37 = vrot.slane %v9017_v11, %v7262_v39  ;;  %v9314_v16 = vrot.slane %v5838_v22, %v7253_v35 }
 0x5ae   :  { %v5709_v54 = vcombine.low %v5699_v51, %v5706_v36  ;;  %v5710_v9 = vcombine.high %v5699_v51, %v5706_v36  ;;  %v5534_v19 = vrot.slane %v5524_v7, %v8192_v8  ;;  %v5541_v5 = vrot.slane %v5525_v1, %v8192_v8 }
 0x5af   :  { %v7088_v27 = vpop.eup %7087  ;;  %v5717_v32 = vrot.slane %v5707_v15, %v8192_v8  ;;  %v5724_v28 = vrot.slane %v5708_v56, %v8192_v8  ;;  %v9317_v59 = vrot.slane %v5846_v38, %v7253_v35  ;;  %v9320_v63 = vrot.slane %v9017_v11, %v5945_v52 }
 0x5b0   :  { %v5526_v23 = vcombine.low %v7086_v48, %v7088_v27  ;;  %v5527_v60 = vcombine.high %v7086_v48, %v7088_v27  ;;  %v5731_v58 = vrot.slane %v5709_v54, %v8192_v8  ;;  %v5738_v61 = vrot.slane %v5710_v9, %v8192_v8 }
 0x5b1   :  { %v9323_v12 = vrot.slane %v5942_v50, %v7262_v39  ;;  %v9328_v55 = vrot.slane %v5946_v45, %v7262_v39  ;;  %v9331_v35 = vrot.slane %v5950_v37, %v7262_v39 }
 0x5b2   :  { %v5548_v57 = vrot.slane %v5526_v23, %v8192_v8  ;;  %v5555_v41 = vrot.slane %v5527_v60, %v8192_v8  ;;  %v5739_v17 = vcombine.low %v5717_v32, %v5731_v58  ;;  %v5740_v3 = vcombine.high %v5717_v32, %v5731_v58 }
 0x5b3   :  { %v5741_v21 = vcombine.low %v5724_v28, %v5738_v61  ;;  %v5742_v43 = vcombine.high %v5724_v28, %v5738_v61 }
 0x5b4   :  { %v5556_v47 = vcombine.low %v5534_v19, %v5548_v57  ;;  %v5557_v11 = vcombine.high %v5534_v19, %v5548_v57  ;;  %v5558_v2 = vcombine.low %v5541_v5, %v5555_v41  ;;  %v5559_v34 = vcombine.high %v5541_v5, %v5555_v41 }
 0x5b5   :  { %v9334_v52 = vsel %vm339_vm2, 0.0, %v5739_v17  ;;  %v9337_v24 = vsel %vm339_vm2, 0.0, %v5741_v21  ;;  %v9340_v25 = vsel %vm339_vm2, 0.0, %v5740_v3  ;;  %v9343_v30 = vsel %vm339_vm2, 0.0, %v5742_v43 }
 0x5b6   :  { %v5566_v51 = vrot.slane %v5556_v47, %v8192_v8  ;;  %v5573_v50 = vrot.slane %v5558_v2, %v8192_v8  ;;  %v5580_v7 = vrot.slane %v5557_v11, %v8192_v8  ;;  %v5587_v1 = vrot.slane %v5559_v34, %v8192_v8 }
 0x5b7   :  { %v5921_v36 = vmul.f32 %v9260_v44, %v9334_v52  ;;  %v5922_v22 = vmul.f32 %v9263_v53, %v9337_v24  ;;  %v5923_v48 = vmul.f32 %v9270_v18, %v9340_v25  ;;  %v5924_v15 = vmul.f32 %v9287_v4, %v9343_v30 }
 0x5b8   :  { %v5588_v56 = vcombine.high %v5566_v51, %v5566_v51  ;;  %v5589_v38 = vcombine.high %v5573_v50, %v5573_v50  ;;  %v5590_v54 = vcombine.high %v5580_v7, %v5580_v7  ;;  %v5612_v9 = vmul.f32 %v5566_v51, %v9202_v6 }
 0x5b9   :  { %v5613_v45 = vmul.f32 %v5580_v7, %v9205_v29  ;;  %v5616_v37 = vmul.f32 %v5573_v50, %v9214_v20  ;;  %v5617_v27 = vmul.f32 %v5587_v1, %v9217_v33  ;;  %v5929_v19 = vadd.f32 %v5922_v22, %v5921_v36 }
 0x5ba   :  { %v5614_v5 = vmul.f32 %v5588_v56, %v9208_v49  ;;  %v5615_v32 = vmul.f32 %v5590_v54, %v9211_v14  ;;  %v5618_v28 = vmul.f32 %v5589_v38, %v9220_v42  ;;  %v5867_v23 = vmul.f32 %v9290_v62, %v9334_v52 }
 0x5bb   :  { %vm5627_vm5 = vcmp.gt.f32.partialorder %v5613_v45, 0.0  ;;  %vm5631_vm6 = vcmp.gt.f32.partialorder %v5617_v27, 0.0  ;;  %v5641_v60 = vmul.f32 0.2, %v5613_v45  ;;  %v5644_v6 = vmul.f32 0.2, %v5616_v37 }
 0x5bc   :  { %vm5628_vm7 = vcmp.gt.f32.partialorder %v5614_v5, 0.0  ;;  %vm5632_vm9 = vcmp.gt.f32.partialorder %v5618_v28, 0.0  ;;  %v5642_v29 = vmul.f32 0.2, %v5614_v5  ;;  %v5643_v20 = vmul.f32 0.2, %v5615_v32 }
 0x5bd   :  { %v5645_v58 = vmul.f32 0.2, %v5617_v27  ;;  %v5646_v33 = vmul.f32 0.2, %v5618_v28  ;;  %v5930_v61 = vadd.f32 %v5929_v19, %v5923_v48  ;;  %v5868_v49 = vmul.f32 %v9314_v16, %v9337_v24 }
 0x5be   :  { %v5869_v14 = vmul.f32 %v9302_v10, %v9340_v25  ;;  %v5870_v42 = vmul.f32 %v9317_v59, %v9343_v30  ;;  %vm5626_vm10 = vcmp.gt.f32.partialorder %v5612_v9, 0.0  ;;  %vm5629_vm13 = vcmp.gt.f32.partialorder %v5615_v32, 0.0 }
 0x5bf   :  { %v5931_v57 = vadd.f32 %v5930_v61, %v5924_v15  ;;  %v5875_v41 = vadd.f32 %v5868_v49, %v5867_v23  ;;  %vm5630_vm14 = vcmp.gt.f32.partialorder %v5616_v37, 0.0  ;;  %v5640_v17 = vmul.f32 0.2, %v5612_v9 }
 0x5c0   :  { %v5655_v3 = vsel %vm5627_vm5, %v5613_v45, %v5641_v60  ;;  %v5656_v21 = vsel %vm5628_vm7, %v5614_v5, %v5642_v29  ;;  %v5657_v43 = vsel %vm5629_vm13, %v5615_v32, %v5643_v20  ;;  %v5658_v47 = vsel %vm5630_vm14, %v5616_v37, %v5644_v6 }
 0x5c1   :  { %5932 = vadd.xlane.f32.xlu1 %v5931_v57  ;;  %v5876_v11 = vadd.f32 %v5875_v41, %v5869_v14  ;;  %v5654_v2 = vsel %vm5626_vm10, %v5612_v9, %v5640_v17  ;;  %v5659_v34 = vsel %vm5631_vm6, %v5617_v27, %v5645_v58  ;;  %v5660_v51 = vsel %vm5632_vm9, %v5618_v28, %v5646_v33 }
 0x5c2   :  { %v5743_v50 = vcombine.low %v5654_v2, %v5654_v2  ;;  %v5744_v7 = vcombine.low %v5655_v3, %v5656_v21  ;;  %v5745_v1 = vcombine.low %v5657_v43, %v5658_v47  ;;  %v5746_v36 = vcombine.low %v5659_v34, %v5660_v51 }
 0x5c3   :  { %v5877_v22 = vadd.f32 %v5876_v11, %v5870_v42  ;;  %v5974_v48 = vrot.slane %v9320_v63, %v7262_v39  ;;  %v5975_v15 = vmul.f32 %v9323_v12, %v9334_v52  ;;  %v5976_v56 = vmul.f32 %v9328_v55, %v9337_v24 }
 0x5c4   :  { %v5753_v38 = vrot.slane %v5743_v50, %v8192_v8  ;;  %v5760_v54 = vrot.slane %v5744_v7, %v8192_v8  ;;  %v5767_v9 = vrot.slane %v5745_v1, %v8192_v8  ;;  %v5774_v45 = vrot.slane %v5746_v36, %v8192_v8 }
 0x5c5   :  { %5878 = vadd.xlane.f32.xlu0 %v5877_v22  ;;  %v5977_v37 = vmul.f32 %v9331_v35, %v9340_v25  ;;  %v5983_v27 = vadd.f32 %v5976_v56, %v5975_v15  ;;  %v6029_v39 = vmul.f32 %v9087_v13, %v9334_v52  ;;  %v6030_v63 = vmul.f32 %v9094_v40, %v9337_v24 }
 0x5c6   :  { %v5775_v19 = vcombine.low %v5753_v38, %v5760_v54  ;;  %v5776_v5 = vcombine.high %v5753_v38, %v5760_v54  ;;  %v5777_v32 = vcombine.low %v5767_v9, %v5774_v45  ;;  %v5778_v28 = vcombine.high %v5767_v9, %v5774_v45 }
 0x5c7   :  { %v5978_v23 = vmul.f32 %v5974_v48, %v9343_v30  ;;  %v5984_v60 = vadd.f32 %v5983_v27, %v5977_v37  ;;  %v6031_v6 = vmul.f32 %v9111_v0, %v9340_v25  ;;  %v6041_v29 = vadd.f32 %v6030_v63, %v6029_v39 }
 0x5c8   :  { %v5785_v20 = vrot.slane %v5775_v19, %v8192_v8  ;;  %v5792_v58 = vrot.slane %v5776_v5, %v8192_v8  ;;  %v5799_v52 = vrot.slane %v5777_v32, %v8192_v8  ;;  %v5806_v33 = vrot.slane %v5778_v28, %v8192_v8 }
 0x5c9   :  { %v5985_v24 = vadd.f32 %v5984_v60, %v5978_v23  ;;  %v6042_v61 = vadd.f32 %v6041_v29, %v6031_v6  ;;  %v6032_v41 = vmul.f32 %v9122_v46, %v9343_v30 }
 0x5ca   :  { %v5807_v49 = vcombine.low %v5785_v20, %v5799_v52  ;;  %v5808_v14 = vcombine.high %v5785_v20, %v5799_v52  ;;  %v5809_v42 = vcombine.low %v5792_v58, %v5806_v33  ;;  %v5810_v57 = vcombine.high %v5792_v58, %v5806_v33 }
 0x5cb   :  { %5986 = vadd.xlane.f32.xlu0 %v5985_v24  ;;  %v6043_v47 = vadd.f32 %v6042_v61, %v6032_v41  ;;  %v6109_v41 = vand.u32 127, %v91_v26 }
 0x5cc   :  { %v5823_v25 = vsel %vm339_vm2, 0.0, %v5807_v49  ;;  %v5824_v17 = vsel %vm339_vm2, 0.0, %v5809_v42  ;;  %v5825_v3 = vsel %vm339_vm2, 0.0, %v5808_v14  ;;  %v5826_v21 = vsel %vm339_vm2, 0.0, %v5810_v57 }
 0x5cd   :  { %v5871_v8 = vmul.f32 %v9290_v62, %v5823_v25  ;;  %v5872_v43 = vmul.f32 %v9314_v16, %v5824_v17  ;;  %v5979_v11 = vmul.f32 %v9323_v12, %v5823_v25  ;;  %v5980_v2 = vmul.f32 %v9328_v55, %v5824_v17 }
 0x5ce   :  { %v5873_v34 = vmul.f32 %v9302_v10, %v5825_v3  ;;  %v5925_v51 = vmul.f32 %v9260_v44, %v5823_v25  ;;  %v5926_v50 = vmul.f32 %v9263_v53, %v5824_v17  ;;  %v5874_v7 = vmul.f32 %v9317_v59, %v5826_v21 }
 0x5cf   :  { %v5880_v30 = vadd.f32 %v5872_v43, %v5871_v8  ;;  %6044 = vadd.xlane.f32.xlu0 %v6043_v47  ;;  %v5988_v1 = vadd.f32 %v5980_v2, %v5979_v11  ;;  %v6037_v62 = vmul.f32 %v9087_v13, %v5823_v25  ;;  %v6038_v16 = vmul.f32 %v9094_v40, %v5824_v17 }
 0x5d0   :  { %v5981_v12 = vmul.f32 %v9331_v35, %v5825_v3  ;;  %v5927_v55 = vmul.f32 %v9270_v18, %v5825_v3  ;;  %v5934_v22 = vadd.f32 %v5926_v50, %v5925_v51  ;;  %v5928_v10 = vmul.f32 %v9287_v4, %v5826_v21  ;;  %v6488_v18 = vld [vmem:[#allocation2] ss:$0 sm:$0xff] }
 0x5d1   :  { %v5881_v36 = vadd.f32 %v5880_v30, %v5873_v34  ;;  %v6055_v15 = vadd.f32 %v6038_v16, %v6037_v62  ;;  %v6039_v53 = vmul.f32 %v9111_v0, %v5825_v3  ;;  %v5982_v59 = vmul.f32 %v5974_v48, %v5826_v21 }
 0x5d2   :  { %v5989_v44 = vadd.f32 %v5988_v1, %v5981_v12  ;;  %v5935_v38 = vadd.f32 %v5934_v22, %v5927_v55  ;;  %v6040_v40 = vmul.f32 %v9122_v46, %v5826_v21  ;;  %v6112_v25 = vsub.s32 %v6109_v41, %v7242_v31 }
 0x5d3   :  { %v5882_v56 = vadd.f32 %v5881_v36, %v5874_v7  ;;  %v6056_v13 = vadd.f32 %v6055_v15, %v6039_v53  ;;  %vm6120_vm2 = vcmask 41984  }
 0x5d4   :  { %v5936_v54 = vadd.f32 %v5935_v38, %v5928_v10  ;;  %v5990_v9 = vadd.f32 %v5989_v44, %v5982_v59 }
 0x5d5   :  { %5883 = vadd.xlane.f32.xlu1 %v5882_v56  ;;  %v6057_v35 = vadd.f32 %v6056_v13, %v6040_v40 }
 0x5d6   :  { %5937 = vadd.xlane.f32.xlu0 %v5936_v54 }
 0x5d9   :  { %5991 = vadd.xlane.f32.xlu1 %v5990_v9 }
 0x5da   :  { %6058 = vadd.xlane.f32.xlu0 %v6057_v35 }
 0x5ea   :  { %6095 = vperm.xlu1 %6563, %v6488_v18  }
 0x60e   :  { %v6054_v45 = vpop.xlane.xlu1 %6053 }
 0x60f   :  { %v6080_v48 = vrot.slane %v6054_v45, 3 }
 0x64a   :  { %v5933_v27 = vpop.xlane.xlu1 %5932 }
 0x64b   :  { %v6062_v63 = vrot.slane %v5933_v27, 1 }
 0x64e   :  { %v5879_v4 = vpop.xlane.xlu0 %5878 }
 0x64f   :  { %v6066_v32 = vadd.f32 %v6062_v63, %v5879_v4 }
 0x654   :  { %v5987_v37 = vpop.xlane.xlu0 %5986 }
 0x655   :  { %v6070_v19 = vrot.slane %v5987_v37, 2 }
 0x657   :  { %v6074_v46 = vadd.f32 %v6070_v19, %v6066_v32 }
 0x658   :  { %v6045_v39 = vpop.xlane.xlu0 %6044 }
 0x659   :  { %v6079_v0 = vrot.slane %v6045_v39, 3 }
 0x65b   :  { %v6081_v23 = vsel %vm2361_vm8, %v6079_v0, %v6080_v48 }
 0x65c   :  { %v6086_v58 = vadd.f32 %v6081_v23, %v6074_v46 }
 0x65e   :  { %v5884_v5 = vpop.xlane.xlu1 %5883 }
 0x65f   :  { %v5938_v28 = vpop.xlane.xlu0 %5937 }
 0x660   :  { %v6063_v60 = vrot.slane %v5938_v28, 1 }
 0x662   :  { %v5992_v6 = vpop.xlane.xlu1 %5991  ;;  %v6067_v20 = vadd.f32 %v6063_v60, %v5884_v5 }
 0x663   :  { %v6071_v29 = vrot.slane %v5992_v6, 2  ;;  %v6059_v52 = vpop.xlane.xlu0 %6058 }
 0x664   :  { %v6082_v24 = vrot.slane %v6059_v52, 3 }
 0x665   :  { %v6075_v33 = vadd.f32 %v6071_v29, %v6067_v20 }
 0x666   :  { %v6096_v61 = vpop.permute.xlu1 %6095  ;;  %v6083_v14 = vsel %vm2361_vm8, %v6082_v24, %v6080_v48 }
 0x667   :  { %v6098_v49 = vadd.f32 %v6096_v61, %v6086_v58  ;;  %v6087_v42 = vadd.f32 %v6083_v14, %v6075_v33 }
 0x669   :  { %6103 = vperm.xlu0 %6564, %v6098_v49   ;;  %v6099_v57 = vadd.f32 %v6096_v61, %v6087_v42 }
 0x66b   :  { %6106 = vperm.xlu1 %6563, %v6099_v57  }
 0x6e4   :  { %v6104_v17 = vpop.permute.xlu0 %6103 }
 0x6e5   :  { %v6113_v21 = vrot.slane %v6104_v17, %v6112_v25 }
 0x6e6   :  { %v6107_v3 = vpop.permute.xlu1 %6106 }
 0x6e7   :  { %v6117_v8 = vrot.slane %v6107_v3, %v6112_v25 }
 0x6e9   :  { %v6118_v43 = vsel %vm644_vm4, %v6117_v8, %v6113_v21 }
 0x6ea   :  { %6121 = vst.msk [vmem:[#allocation3] sm:$0x3] %vm6120_vm2, %v6118_v43 }
 0x6eb   :  { %7100 = shalt.err (!%p7097_p4)
}
 0x6ec   :  { %6131 = dma.vmem_to_hbm [thread:$0]  %s6129_s2, 32, %s9439_s11, [#allocation4]  }
 0x6ed   :  { %7109 = dma.done.wait [#allocation4], 32  }
 0x6ee   :  { %7110 = vsyncadd [#allocation4], 4294967264 }
 0x6ef   :  { %6135 = vsyncpa [#allocation4], 1 }

</bundles_post_ra>
